<compile_context>
chip_gen: v7x
topology: tpu7x:2x2x1
jax: 0.10.0
libtpu: 0.0.40
codegen_flags: <defaults>
</compile_context>

<pallas_src>
import math
import functools

import numpy as np
import jax
import jax.numpy as jnp
from jax import lax
from jax.experimental import pallas as pl
from jax.experimental.pallas import tpu as pltpu

# ----------------------------- model hyper-params ----------------------------
B = 2          # batch
N = 8          # sequence length of x
M = 6          # context sequence length
DIM = 48       # model dim
DEPTH = 2
HEADS = 4
DIM_HEAD = 8
FF_MULT = 4
ATTN_INNER = HEADS * DIM_HEAD                       # 32
FF_INNER = int(DIM * FF_MULT * 2 / 3)               # 128
EPS = 1e-5
MASK_VALUE = -jnp.finfo(jnp.float32).max


# ------------------------------ in-kernel helpers ----------------------------
def _layer_norm(x, gamma):
    # F.layer_norm over the last dim (biased variance, eps=1e-5, beta = 0)
    mu = jnp.mean(x, axis=-1, keepdims=True)
    var = jnp.mean(jnp.square(x - mu), axis=-1, keepdims=True)
    return (x - mu) * lax.rsqrt(var + EPS) * gamma


def _gelu_exact(x):
    # torch.nn.functional.gelu default = exact erf formulation
    return 0.5 * x * (1.0 + lax.erf(x * (1.0 / math.sqrt(2.0))))


def _attention(xn, kv_in, bias, wq, wkv, wo, nk, nv, heads, dim_head):
    """Multi-head attention with a prepended null key/value per head.

    xn:    (N, D)  pre-normalized query input
    kv_in: (Mk, D) key/value input (xn for self-attn, raw context for cross-attn)
    bias:  (1, Mk) additive mask bias (0 = attend, -maxfloat = masked) or None
    nk/nv: (H, 1, d) null key / value
    Returns (N, D) output of the final projection (before residual add).
    """
    inner = heads * dim_head
    scale = dim_head ** (-0.5)

    # Single wide projections (one MXU dot each).
    q2 = jnp.dot(xn, wq, preferred_element_type=jnp.float32) * scale     # (N, inner)
    kv2 = jnp.dot(kv_in, wkv, preferred_element_type=jnp.float32)        # (Mk, 2*inner)

    # Split heads onto a leading (untiled) axis: cheap lane slices + leading concat.
    q3 = jnp.stack([q2[:, h * dim_head:(h + 1) * dim_head]
                    for h in range(heads)], axis=0)                      # (H, N, d)
    k3 = jnp.stack([kv2[:, h * dim_head:(h + 1) * dim_head]
                    for h in range(heads)], axis=0)                      # (H, Mk, d)
    v3 = jnp.stack([kv2[:, inner + h * dim_head: inner + (h + 1) * dim_head]
                    for h in range(heads)], axis=0)                      # (H, Mk, d)

    # All-head logits in one batched dot_general.
    s = jnp.einsum('hnd,hmd->hnm', q3, k3,
                   preferred_element_type=jnp.float32)                   # (H, N, Mk)
    if bias is not None:
        s = s + bias                                                     # hoisted additive mask
    s0 = jnp.sum(q3 * nk, axis=-1, keepdims=True)                        # null-key logit (H, N, 1)

    # Exact softmax over [null | real keys].
    m = jnp.maximum(jnp.max(s, axis=-1, keepdims=True), s0)
    e0 = jnp.exp(s0 - m)
    es = jnp.exp(s - m)
    denom = e0 + jnp.sum(es, axis=-1, keepdims=True)
    o3 = (e0 * nv + jnp.einsum('hnm,hmd->hnd', es, v3,
                               preferred_element_type=jnp.float32)) / denom   # (H, N, d)

    # Merge heads back onto the lane dim and do ONE output projection.
    o2 = jnp.concatenate([o3[h] for h in range(heads)], axis=-1)          # (N, inner)
    return jnp.dot(o2, wo, preferred_element_type=jnp.float32)            # (N, D)


# ------------------------------ fused kernel ----------------------------------
def fused_transformer_kernel(
        x_ref, ctx_ref, bias_ref,
        sa_gamma_ref, sa_wq_ref, sa_wkv_ref, sa_wo_ref, sa_nk_ref, sa_nv_ref,
        ca_gamma_ref, ca_wq_ref, ca_wkv_ref, ca_wo_ref, ca_nk_ref, ca_nv_ref,
        ff_g1_ref, ff_w1_ref, ff_g2_ref, ff_w2_ref, fin_gamma_ref,
        out_ref, *, depth, heads, dim_head, ff_inner):
    x = x_ref[0]                                  # (N, D)  residual stream (stays resident)
    ctx = ctx_ref[0]                              # (M, D)
    bias = bias_ref[0]                            # (1, M) additive mask bias

    for l in range(depth):                        # static unroll (DEPTH is small)
        # ---- self attention ----
        xn = _layer_norm(x, sa_gamma_ref[l])
        x = x + _attention(xn, xn, None,
                           sa_wq_ref[l], sa_wkv_ref[l], sa_wo_ref[l],
                           sa_nk_ref[l], sa_nv_ref[l], heads, dim_head)
        # ---- cross attention ----
        xn = _layer_norm(x, ca_gamma_ref[l])
        x = x + _attention(xn, ctx, bias,
                           ca_wq_ref[l], ca_wkv_ref[l], ca_wo_ref[l],
                           ca_nk_ref[l], ca_nv_ref[l], heads, dim_head)
        # ---- feed-forward (GEGLU) ----
        xn = _layer_norm(x, ff_g1_ref[l])
        h = jnp.dot(xn, ff_w1_ref[l], preferred_element_type=jnp.float32)   # (N, 2*ff_inner)
        act = h[:, ff_inner:] * _gelu_exact(h[:, :ff_inner])
        gn = _layer_norm(act, ff_g2_ref[l])
        x = x + jnp.dot(gn, ff_w2_ref[l], preferred_element_type=jnp.float32)

    out_ref[0] = _layer_norm(x, fin_gamma_ref[...]).astype(out_ref.dtype)


# --------------------------------- wrapper -------------------------------------
def transformer_blocks(x, context, context_mask, params):
    Bx, Nx, D = x.shape
    Mx = context.shape[1]

    # Hoisted additive mask bias (0 = attend, -maxfloat = masked).
    if context_mask is None:
        bias = jnp.zeros((Bx, 1, Mx), jnp.float32)
    else:
        bias = jnp.where(context_mask, 0.0, MASK_VALUE).astype(jnp.float32)
        bias = bias.reshape(Bx, 1, Mx)

    layers = params["layers"]

    def stack_attn(name):
        p = [L[name] for L in layers]
        return dict(
            gamma=jnp.stack([q["gamma"] for q in p]).reshape(DEPTH, 1, D),
            wq=jnp.stack([q["wq"] for q in p]),                                # (DEPTH, D, INNER)
            wkv=jnp.stack([q["wkv"] for q in p]),                              # (DEPTH, D, 2*INNER)
            wo=jnp.stack([q["wo"] for q in p]),                                # (DEPTH, INNER, D)
            nk=jnp.stack([q["nk"] for q in p]).reshape(DEPTH, HEADS, 1, DIM_HEAD),
            nv=jnp.stack([q["nv"] for q in p]).reshape(DEPTH, HEADS, 1, DIM_HEAD),
        )

    sa = stack_attn("self_attn")
    ca = stack_attn("cross_attn")
    ff = dict(
        g1=jnp.stack([L["ff"]["g1"] for L in layers]).reshape(DEPTH, 1, D),
        w1=jnp.stack([L["ff"]["w1"] for L in layers]),                         # (DEPTH, D, 2*FF_INNER)
        g2=jnp.stack([L["ff"]["g2"] for L in layers]).reshape(DEPTH, 1, FF_INNER),
        w2=jnp.stack([L["ff"]["w2"] for L in layers]),                         # (DEPTH, FF_INNER, D)
    )
    fin_gamma = params["final_gamma"].reshape(1, D)

    def rep(a):   # replicated (weight) operand: full-array block, same at every grid step
        n = a.ndim
        return pl.BlockSpec(a.shape, lambda b, _n=n: (0,) * _n)

    def bat(shape):  # batched operand: one batch element per grid step
        n = len(shape)
        return pl.BlockSpec(shape, lambda b, _n=n: (b,) + (0,) * (_n - 1))

    kernel = functools.partial(fused_transformer_kernel, depth=DEPTH, heads=HEADS,
                               dim_head=DIM_HEAD, ff_inner=FF_INNER)

    in_specs = [
        bat((1, Nx, D)), bat((1, Mx, D)), bat((1, 1, Mx)),
        rep(sa["gamma"]), rep(sa["wq"]), rep(sa["wkv"]), rep(sa["wo"]), rep(sa["nk"]), rep(sa["nv"]),
        rep(ca["gamma"]), rep(ca["wq"]), rep(ca["wkv"]), rep(ca["wo"]), rep(ca["nk"]), rep(ca["nv"]),
        rep(ff["g1"]), rep(ff["w1"]), rep(ff["g2"]), rep(ff["w2"]),
        rep(fin_gamma),
    ]

    return pl.pallas_call(
        kernel,
        out_shape=jax.ShapeDtypeStruct((Bx, Nx, D), x.dtype),
        grid=(Bx,),
        in_specs=in_specs,
        out_specs=bat((1, Nx, D)),
        compiler_params=pltpu.CompilerParams(dimension_semantics=("parallel",)),
    )(x, context, bias,
      sa["gamma"], sa["wq"], sa["wkv"], sa["wo"], sa["nk"], sa["nv"],
      ca["gamma"], ca["wq"], ca["wkv"], ca["wo"], ca["nk"], ca["nv"],
      ff["g1"], ff["w1"], ff["g2"], ff["w2"],
      fin_gamma)


# --------------------------- pure-JAX reference -------------------------------
def _ref_ln(x, gamma):
    mu = x.mean(-1, keepdims=True)
    var = ((x - mu) ** 2).mean(-1, keepdims=True)
    return (x - mu) / jnp.sqrt(var + EPS) * gamma


def _ref_attn(x, p, context=None, context_mask=None):
    Bx, Nx, D = x.shape
    xn = _ref_ln(x, p["gamma"])
    kv_in = context if context is not None else xn
    scale = DIM_HEAD ** (-0.5)
    q = (xn @ p["wq"]) * scale
    kv = kv_in @ p["wkv"]
    k, v = jnp.split(kv, 2, axis=-1)

    def split_heads(t):
        return t.reshape(Bx, -1, HEADS, DIM_HEAD).transpose(0, 2, 1, 3)

    q, k, v = map(split_heads, (q, k, v))
    nk = jnp.broadcast_to(p["nk"][None, :, None, :], (Bx, HEADS, 1, DIM_HEAD))
    nv = jnp.broadcast_to(p["nv"][None, :, None, :], (Bx, HEADS, 1, DIM_HEAD))
    k = jnp.concatenate([nk, k], axis=2)
    v = jnp.concatenate([nv, v], axis=2)
    sim = jnp.einsum("bhid,bhjd->bhij", q, k)
    if context_mask is not None:
        m = jnp.pad(context_mask, ((0, 0), (1, 0)), constant_values=True)
        sim = jnp.where(m[:, None, None, :], sim, MASK_VALUE)
    attn = jax.nn.softmax(sim, axis=-1)
    out = jnp.einsum("bhij,bhjd->bhid", attn, v)
    out = out.transpose(0, 2, 1, 3).reshape(Bx, Nx, HEADS * DIM_HEAD)
    return out @ p["wo"]


def _ref_ff(x, p):
    xn = _ref_ln(x, p["g1"])
    h = xn @ p["w1"]
    a, gate = h[..., :FF_INNER], h[..., FF_INNER:]
    act = gate * (0.5 * a * (1.0 + lax.erf(a / math.sqrt(2.0))))
    gn = _ref_ln(act, p["g2"])
    return gn @ p["w2"]


def ref_forward(x, context, context_mask, params):
    for layer in params["layers"]:
        x = _ref_attn(x, layer["self_attn"]) + x
        x = _ref_attn(x, layer["cross_attn"], context=context, context_mask=context_mask) + x
        x = _ref_ff(x, layer["ff"]) + x
    return _ref_ln(x, params["final_gamma"])


# ------------------------------ parameter init --------------------------------
def init_params(key):
    def attn_params(k):
        ks = jax.random.split(k, 5)
        return {
            "gamma": jnp.ones((DIM,), jnp.float32),
            "wq": 0.05 * jax.random.normal(ks[0], (DIM, ATTN_INNER), jnp.float32),
            "wkv": 0.05 * jax.random.normal(ks[1], (DIM, 2 * ATTN_INNER), jnp.float32),
            "wo": 0.05 * jax.random.normal(ks[2], (ATTN_INNER, DIM), jnp.float32),
            "nk": jax.random.normal(ks[3], (HEADS, DIM_HEAD), jnp.float32),
            "nv": jax.random.normal(ks[4], (HEADS, DIM_HEAD), jnp.float32),
        }

    def ff_params(k):
        ks = jax.random.split(k, 2)
        return {
            "g1": jnp.ones((DIM,), jnp.float32),
            "w1": 0.05 * jax.random.normal(ks[0], (DIM, 2 * FF_INNER), jnp.float32),
            "g2": jnp.ones((FF_INNER,), jnp.float32),
            "w2": 0.05 * jax.random.normal(ks[1], (FF_INNER, DIM), jnp.float32),
        }

    keys = jax.random.split(key, 3 * DEPTH)
    layers = []
    for i in range(DEPTH):
        layers.append({
            "self_attn": attn_params(keys[3 * i]),
            "cross_attn": attn_params(keys[3 * i + 1]),
            "ff": ff_params(keys[3 * i + 2]),
        })
    return {"layers": layers, "final_gamma": jnp.ones((DIM,), jnp.float32)}


# ------------------------------------ main -------------------------------------
if __name__ == "__main__":
    root = jax.random.PRNGKey(0)
    k_param, k_x, k_ctx, k_mask = jax.random.split(root, 4)

    params = init_params(k_param)
    x = jax.random.normal(k_x, (B, N, DIM), jnp.float32)
    context = jax.random.normal(k_ctx, (B, M, DIM), jnp.float32)
    context_mask = jax.random.bernoulli(k_mask, 0.7, (B, M))

    out = transformer_blocks(x, context, context_mask, params)
    out = jax.block_until_ready(out)

    ref = ref_forward(x, context, context_mask, params)
    assert out.shape == (B, N, DIM)
    assert np.allclose(np.asarray(out), np.asarray(ref), atol=1e-4, rtol=1e-4), (
        "Pallas output does not match reference")

    print("KERNEL_OK")
</pallas_src>

<mosaic_0001>
module attributes {stable_mosaic.version = 11 : i64} {
  func.func @fused_transformer_kernel(%arg0: i32, %arg1: memref<1x8x48xf32, #tpu.memory_space<vmem>>, %arg2: memref<1x6x48xf32, #tpu.memory_space<vmem>>, %arg3: memref<1x1x6xf32, #tpu.memory_space<vmem>>, %arg4: memref<2x1x48xf32, #tpu.memory_space<vmem>>, %arg5: memref<2x48x32xf32, #tpu.memory_space<vmem>>, %arg6: memref<2x48x64xf32, #tpu.memory_space<vmem>>, %arg7: memref<2x32x48xf32, #tpu.memory_space<vmem>>, %arg8: memref<2x4x1x8xf32, #tpu.memory_space<vmem>>, %arg9: memref<2x4x1x8xf32, #tpu.memory_space<vmem>>, %arg10: memref<2x1x48xf32, #tpu.memory_space<vmem>>, %arg11: memref<2x48x32xf32, #tpu.memory_space<vmem>>, %arg12: memref<2x48x64xf32, #tpu.memory_space<vmem>>, %arg13: memref<2x32x48xf32, #tpu.memory_space<vmem>>, %arg14: memref<2x4x1x8xf32, #tpu.memory_space<vmem>>, %arg15: memref<2x4x1x8xf32, #tpu.memory_space<vmem>>, %arg16: memref<2x1x48xf32, #tpu.memory_space<vmem>>, %arg17: memref<2x48x256xf32, #tpu.memory_space<vmem>>, %arg18: memref<2x1x128xf32, #tpu.memory_space<vmem>>, %arg19: memref<2x128x48xf32, #tpu.memory_space<vmem>>, %arg20: memref<1x48xf32, #tpu.memory_space<vmem>>, %arg21: memref<1x8x48xf32, #tpu.memory_space<vmem>>) attributes {dimension_semantics = [#tpu.dimension_semantics<parallel>], iteration_bounds = array<i64: 2>, scalar_prefetch = 0 : i64, scratch_operands = 0 : i64, tpu.core_type = #tpu.core_type<tc>, window_params = [{transform_indices = @transform_0, window_bounds = array<i64: 1, 8, 48>}, {transform_indices = @transform_1, window_bounds = array<i64: 1, 6, 48>}, {transform_indices = @transform_2, window_bounds = array<i64: 1, 1, 6>}, {pipeline_mode = #tpu.pipeline_mode<synchronous>, transform_indices = @transform_3, window_bounds = array<i64: 2, 1, 48>}, {pipeline_mode = #tpu.pipeline_mode<synchronous>, transform_indices = @transform_4, window_bounds = array<i64: 2, 48, 32>}, {pipeline_mode = #tpu.pipeline_mode<synchronous>, transform_indices = @transform_5, window_bounds = array<i64: 2, 48, 64>}, {pipeline_mode = #tpu.pipeline_mode<synchronous>, transform_indices = @transform_6, window_bounds = array<i64: 2, 32, 48>}, {pipeline_mode = #tpu.pipeline_mode<synchronous>, transform_indices = @transform_7, window_bounds = array<i64: 2, 4, 1, 8>}, {pipeline_mode = #tpu.pipeline_mode<synchronous>, transform_indices = @transform_8, window_bounds = array<i64: 2, 4, 1, 8>}, {pipeline_mode = #tpu.pipeline_mode<synchronous>, transform_indices = @transform_9, window_bounds = array<i64: 2, 1, 48>}, {pipeline_mode = #tpu.pipeline_mode<synchronous>, transform_indices = @transform_10, window_bounds = array<i64: 2, 48, 32>}, {pipeline_mode = #tpu.pipeline_mode<synchronous>, transform_indices = @transform_11, window_bounds = array<i64: 2, 48, 64>}, {pipeline_mode = #tpu.pipeline_mode<synchronous>, transform_indices = @transform_12, window_bounds = array<i64: 2, 32, 48>}, {pipeline_mode = #tpu.pipeline_mode<synchronous>, transform_indices = @transform_13, window_bounds = array<i64: 2, 4, 1, 8>}, {pipeline_mode = #tpu.pipeline_mode<synchronous>, transform_indices = @transform_14, window_bounds = array<i64: 2, 4, 1, 8>}, {pipeline_mode = #tpu.pipeline_mode<synchronous>, transform_indices = @transform_15, window_bounds = array<i64: 2, 1, 48>}, {pipeline_mode = #tpu.pipeline_mode<synchronous>, transform_indices = @transform_16, window_bounds = array<i64: 2, 48, 256>}, {pipeline_mode = #tpu.pipeline_mode<synchronous>, transform_indices = @transform_17, window_bounds = array<i64: 2, 1, 128>}, {pipeline_mode = #tpu.pipeline_mode<synchronous>, transform_indices = @transform_18, window_bounds = array<i64: 2, 128, 48>}, {pipeline_mode = #tpu.pipeline_mode<synchronous>, transform_indices = @transform_19, window_bounds = array<i64: 1, 48>}, {transform_indices = @transform_20, window_bounds = array<i64: 1, 8, 48>}]} {
    %c0 = arith.constant 0 : index
    %c0_0 = arith.constant 0 : index
    %c0_1 = arith.constant 0 : index
    %0 = vector.load %arg1[%c0, %c0_0, %c0_1] : memref<1x8x48xf32, #tpu.memory_space<vmem>>, vector<1x8x48xf32>
    %1 = vector.shape_cast %0 : vector<1x8x48xf32> to vector<8x48xf32>
    %c0_2 = arith.constant 0 : index
    %c0_3 = arith.constant 0 : index
    %c0_4 = arith.constant 0 : index
    %2 = vector.load %arg2[%c0_2, %c0_3, %c0_4] : memref<1x6x48xf32, #tpu.memory_space<vmem>>, vector<1x6x48xf32>
    %3 = vector.shape_cast %2 : vector<1x6x48xf32> to vector<6x48xf32>
    %c0_5 = arith.constant 0 : index
    %c0_6 = arith.constant 0 : index
    %c0_7 = arith.constant 0 : index
    %4 = vector.load %arg3[%c0_5, %c0_6, %c0_7] : memref<1x1x6xf32, #tpu.memory_space<vmem>>, vector<1x1x6xf32>
    %5 = vector.shape_cast %4 : vector<1x1x6xf32> to vector<1x6xf32>
    %c0_8 = arith.constant 0 : index
    %c0_9 = arith.constant 0 : index
    %c0_10 = arith.constant 0 : index
    %6 = vector.load %arg4[%c0_8, %c0_9, %c0_10] : memref<2x1x48xf32, #tpu.memory_space<vmem>>, vector<1x1x48xf32>
    %7 = vector.shape_cast %6 : vector<1x1x48xf32> to vector<1x48xf32>
    %cst = arith.constant dense<0.000000e+00> : vector<8xf32>
    %8 = vector.multi_reduction <add>, %1, %cst [1] : vector<8x48xf32> to vector<8xf32>
    %9 = vector.shape_cast %8 : vector<8xf32> to vector<8x1xf32>
    %cst_11 = arith.constant 4.800000e+01 : f32
    %10 = vector.broadcast %cst_11 : f32 to vector<8x1xf32>
    %11 = arith.divf %9, %10 : vector<8x1xf32>
    %12 = vector.broadcast %11 : vector<8x1xf32> to vector<8x48xf32>
    %13 = arith.subf %1, %12 : vector<8x48xf32>
    %14 = arith.mulf %13, %13 : vector<8x48xf32>
    %cst_12 = arith.constant dense<0.000000e+00> : vector<8xf32>
    %15 = vector.multi_reduction <add>, %14, %cst_12 [1] : vector<8x48xf32> to vector<8xf32>
    %16 = vector.shape_cast %15 : vector<8xf32> to vector<8x1xf32>
    %cst_13 = arith.constant 4.800000e+01 : f32
    %17 = vector.broadcast %cst_13 : f32 to vector<8x1xf32>
    %18 = arith.divf %16, %17 : vector<8x1xf32>
    %19 = vector.broadcast %11 : vector<8x1xf32> to vector<8x48xf32>
    %20 = arith.subf %1, %19 : vector<8x48xf32>
    %cst_14 = arith.constant 9.99999974E-6 : f32
    %21 = vector.broadcast %cst_14 : f32 to vector<8x1xf32>
    %22 = arith.addf %18, %21 : vector<8x1xf32>
    %23 = math.rsqrt %22 : vector<8x1xf32>
    %24 = vector.broadcast %23 : vector<8x1xf32> to vector<8x48xf32>
    %25 = arith.mulf %20, %24 : vector<8x48xf32>
    %26 = vector.broadcast %7 : vector<1x48xf32> to vector<8x48xf32>
    %27 = arith.mulf %25, %26 : vector<8x48xf32>
    %c0_15 = arith.constant 0 : index
    %c0_16 = arith.constant 0 : index
    %c0_17 = arith.constant 0 : index
    %28 = vector.load %arg5[%c0_15, %c0_16, %c0_17] : memref<2x48x32xf32, #tpu.memory_space<vmem>>, vector<1x48x32xf32>
    %29 = vector.shape_cast %28 : vector<1x48x32xf32> to vector<48x32xf32>
    %c0_18 = arith.constant 0 : index
    %c0_19 = arith.constant 0 : index
    %c0_20 = arith.constant 0 : index
    %30 = vector.load %arg6[%c0_18, %c0_19, %c0_20] : memref<2x48x64xf32, #tpu.memory_space<vmem>>, vector<1x48x64xf32>
    %31 = vector.shape_cast %30 : vector<1x48x64xf32> to vector<48x64xf32>
    %c0_21 = arith.constant 0 : index
    %c0_22 = arith.constant 0 : index
    %c0_23 = arith.constant 0 : index
    %32 = vector.load %arg7[%c0_21, %c0_22, %c0_23] : memref<2x32x48xf32, #tpu.memory_space<vmem>>, vector<1x32x48xf32>
    %33 = vector.shape_cast %32 : vector<1x32x48xf32> to vector<32x48xf32>
    %c0_24 = arith.constant 0 : index
    %c0_25 = arith.constant 0 : index
    %c0_26 = arith.constant 0 : index
    %c0_27 = arith.constant 0 : index
    %34 = vector.load %arg8[%c0_24, %c0_25, %c0_26, %c0_27] : memref<2x4x1x8xf32, #tpu.memory_space<vmem>>, vector<1x4x1x8xf32>
    %35 = vector.shape_cast %34 : vector<1x4x1x8xf32> to vector<4x1x8xf32>
    %c0_28 = arith.constant 0 : index
    %c0_29 = arith.constant 0 : index
    %c0_30 = arith.constant 0 : index
    %c0_31 = arith.constant 0 : index
    %36 = vector.load %arg9[%c0_28, %c0_29, %c0_30, %c0_31] : memref<2x4x1x8xf32, #tpu.memory_space<vmem>>, vector<1x4x1x8xf32>
    %37 = vector.shape_cast %36 : vector<1x4x1x8xf32> to vector<4x1x8xf32>
    %cst_32 = arith.constant dense<0.000000e+00> : vector<8x32xf32>
    %38 = tpu.matmul %27, %29, %cst_32 {dimension_numbers = #tpu.dot_dimension_numbers<[1], [0], [0], [1], [0, 0, 1, 1], [], []>} : vector<8x48xf32>, vector<48x32xf32>, vector<8x32xf32> -> vector<8x32xf32>
    %cst_33 = arith.constant 0.353553385 : f32
    %39 = vector.broadcast %cst_33 : f32 to vector<8x32xf32>
    %40 = arith.mulf %38, %39 : vector<8x32xf32>
    %cst_34 = arith.constant dense<0.000000e+00> : vector<8x64xf32>
    %41 = tpu.matmul %27, %31, %cst_34 {dimension_numbers = #tpu.dot_dimension_numbers<[1], [0], [0], [1], [0, 0, 1, 1], [], []>} : vector<8x48xf32>, vector<48x64xf32>, vector<8x64xf32> -> vector<8x64xf32>
    %42 = vector.extract_strided_slice %40 {offsets = [0, 0], sizes = [8, 8], strides = [1, 1]} : vector<8x32xf32> to vector<8x8xf32>
    %43 = vector.extract_strided_slice %40 {offsets = [0, 8], sizes = [8, 8], strides = [1, 1]} : vector<8x32xf32> to vector<8x8xf32>
    %44 = vector.extract_strided_slice %40 {offsets = [0, 16], sizes = [8, 8], strides = [1, 1]} : vector<8x32xf32> to vector<8x8xf32>
    %45 = vector.extract_strided_slice %40 {offsets = [0, 24], sizes = [8, 8], strides = [1, 1]} : vector<8x32xf32> to vector<8x8xf32>
    %46 = vector.shape_cast %42 : vector<8x8xf32> to vector<1x8x8xf32>
    %47 = vector.shape_cast %43 : vector<8x8xf32> to vector<1x8x8xf32>
    %48 = vector.shape_cast %44 : vector<8x8xf32> to vector<1x8x8xf32>
    %49 = vector.shape_cast %45 : vector<8x8xf32> to vector<1x8x8xf32>
    %50 = tpu.concatenate %46, %47, %48, %49 in 0 : vector<1x8x8xf32>, vector<1x8x8xf32>, vector<1x8x8xf32>, vector<1x8x8xf32> -> vector<4x8x8xf32>
    %51 = vector.extract_strided_slice %41 {offsets = [0, 0], sizes = [8, 8], strides = [1, 1]} : vector<8x64xf32> to vector<8x8xf32>
    %52 = vector.extract_strided_slice %41 {offsets = [0, 8], sizes = [8, 8], strides = [1, 1]} : vector<8x64xf32> to vector<8x8xf32>
    %53 = vector.extract_strided_slice %41 {offsets = [0, 16], sizes = [8, 8], strides = [1, 1]} : vector<8x64xf32> to vector<8x8xf32>
    %54 = vector.extract_strided_slice %41 {offsets = [0, 24], sizes = [8, 8], strides = [1, 1]} : vector<8x64xf32> to vector<8x8xf32>
    %55 = vector.shape_cast %51 : vector<8x8xf32> to vector<1x8x8xf32>
    %56 = vector.shape_cast %52 : vector<8x8xf32> to vector<1x8x8xf32>
    %57 = vector.shape_cast %53 : vector<8x8xf32> to vector<1x8x8xf32>
    %58 = vector.shape_cast %54 : vector<8x8xf32> to vector<1x8x8xf32>
    %59 = tpu.concatenate %55, %56, %57, %58 in 0 : vector<1x8x8xf32>, vector<1x8x8xf32>, vector<1x8x8xf32>, vector<1x8x8xf32> -> vector<4x8x8xf32>
    %60 = vector.extract_strided_slice %41 {offsets = [0, 32], sizes = [8, 8], strides = [1, 1]} : vector<8x64xf32> to vector<8x8xf32>
    %61 = vector.extract_strided_slice %41 {offsets = [0, 40], sizes = [8, 8], strides = [1, 1]} : vector<8x64xf32> to vector<8x8xf32>
    %62 = vector.extract_strided_slice %41 {offsets = [0, 48], sizes = [8, 8], strides = [1, 1]} : vector<8x64xf32> to vector<8x8xf32>
    %63 = vector.extract_strided_slice %41 {offsets = [0, 56], sizes = [8, 8], strides = [1, 1]} : vector<8x64xf32> to vector<8x8xf32>
    %64 = vector.shape_cast %60 : vector<8x8xf32> to vector<1x8x8xf32>
    %65 = vector.shape_cast %61 : vector<8x8xf32> to vector<1x8x8xf32>
    %66 = vector.shape_cast %62 : vector<8x8xf32> to vector<1x8x8xf32>
    %67 = vector.shape_cast %63 : vector<8x8xf32> to vector<1x8x8xf32>
    %68 = tpu.concatenate %64, %65, %66, %67 in 0 : vector<1x8x8xf32>, vector<1x8x8xf32>, vector<1x8x8xf32>, vector<1x8x8xf32> -> vector<4x8x8xf32>
    "tpu.trace_start"() <{level = 10 : i32, message = "hnd,hmd->hnm"}> : () -> ()
    %cst_35 = arith.constant dense<0.000000e+00> : vector<4x8x8xf32>
    %69 = tpu.matmul %50, %59, %cst_35 {dimension_numbers = #tpu.dot_dimension_numbers<[2], [2], [1], [1], [0, 0, 0, 1, 1, 1], [0], [0]>} : vector<4x8x8xf32>, vector<4x8x8xf32>, vector<4x8x8xf32> -> vector<4x8x8xf32>
    "tpu.trace_stop"() : () -> ()
    %70 = vector.broadcast %35 : vector<4x1x8xf32> to vector<4x8x8xf32>
    %71 = arith.mulf %50, %70 : vector<4x8x8xf32>
    %cst_36 = arith.constant dense<0.000000e+00> : vector<4x8xf32>
    %72 = vector.multi_reduction <add>, %71, %cst_36 [2] : vector<4x8x8xf32> to vector<4x8xf32>
    %73 = vector.shape_cast %72 : vector<4x8xf32> to vector<4x8x1xf32>
    %cst_37 = arith.constant dense<0xFF800000> : vector<4x8xf32>
    %74 = vector.multi_reduction <maximumf>, %69, %cst_37 [2] : vector<4x8x8xf32> to vector<4x8xf32>
    %75 = vector.shape_cast %74 : vector<4x8xf32> to vector<4x8x1xf32>
    %76 = arith.maximumf %75, %73 : vector<4x8x1xf32>
    %77 = arith.subf %73, %76 : vector<4x8x1xf32>
    %78 = math.exp %77 : vector<4x8x1xf32>
    %79 = vector.broadcast %76 : vector<4x8x1xf32> to vector<4x8x8xf32>
    %80 = arith.subf %69, %79 : vector<4x8x8xf32>
    %81 = math.exp %80 : vector<4x8x8xf32>
    %cst_38 = arith.constant dense<0.000000e+00> : vector<4x8xf32>
    %82 = vector.multi_reduction <add>, %81, %cst_38 [2] : vector<4x8x8xf32> to vector<4x8xf32>
    %83 = vector.shape_cast %82 : vector<4x8xf32> to vector<4x8x1xf32>
    %84 = arith.addf %78, %83 : vector<4x8x1xf32>
    %85 = vector.broadcast %78 : vector<4x8x1xf32> to vector<4x8x8xf32>
    %86 = vector.broadcast %37 : vector<4x1x8xf32> to vector<4x8x8xf32>
    %87 = arith.mulf %85, %86 : vector<4x8x8xf32>
    "tpu.trace_start"() <{level = 10 : i32, message = "hnm,hmd->hnd"}> : () -> ()
    %cst_39 = arith.constant dense<0.000000e+00> : vector<4x8x8xf32>
    %88 = tpu.matmul %81, %68, %cst_39 {dimension_numbers = #tpu.dot_dimension_numbers<[2], [1], [1], [2], [0, 0, 0, 1, 1, 2], [0], [0]>} : vector<4x8x8xf32>, vector<4x8x8xf32>, vector<4x8x8xf32> -> vector<4x8x8xf32>
    "tpu.trace_stop"() : () -> ()
    %89 = arith.addf %87, %88 : vector<4x8x8xf32>
    %90 = vector.broadcast %84 : vector<4x8x1xf32> to vector<4x8x8xf32>
    %91 = arith.divf %89, %90 : vector<4x8x8xf32>
    %92 = vector.extract_strided_slice %91 {offsets = [0, 0, 0], sizes = [1, 8, 8], strides = [1, 1, 1]} : vector<4x8x8xf32> to vector<1x8x8xf32>
    %93 = vector.shape_cast %92 : vector<1x8x8xf32> to vector<8x8xf32>
    %94 = vector.extract_strided_slice %91 {offsets = [1, 0, 0], sizes = [1, 8, 8], strides = [1, 1, 1]} : vector<4x8x8xf32> to vector<1x8x8xf32>
    %95 = vector.shape_cast %94 : vector<1x8x8xf32> to vector<8x8xf32>
    %96 = vector.extract_strided_slice %91 {offsets = [2, 0, 0], sizes = [1, 8, 8], strides = [1, 1, 1]} : vector<4x8x8xf32> to vector<1x8x8xf32>
    %97 = vector.shape_cast %96 : vector<1x8x8xf32> to vector<8x8xf32>
    %98 = vector.extract_strided_slice %91 {offsets = [3, 0, 0], sizes = [1, 8, 8], strides = [1, 1, 1]} : vector<4x8x8xf32> to vector<1x8x8xf32>
    %99 = vector.shape_cast %98 : vector<1x8x8xf32> to vector<8x8xf32>
    %100 = tpu.concatenate %93, %95, %97, %99 in 1 : vector<8x8xf32>, vector<8x8xf32>, vector<8x8xf32>, vector<8x8xf32> -> vector<8x32xf32>
    %cst_40 = arith.constant dense<0.000000e+00> : vector<8x48xf32>
    %101 = tpu.matmul %100, %33, %cst_40 {dimension_numbers = #tpu.dot_dimension_numbers<[1], [0], [0], [1], [0, 0, 1, 1], [], []>} : vector<8x32xf32>, vector<32x48xf32>, vector<8x48xf32> -> vector<8x48xf32>
    %102 = arith.addf %1, %101 : vector<8x48xf32>
    %c0_41 = arith.constant 0 : index
    %c0_42 = arith.constant 0 : index
    %c0_43 = arith.constant 0 : index
    %103 = vector.load %arg10[%c0_41, %c0_42, %c0_43] : memref<2x1x48xf32, #tpu.memory_space<vmem>>, vector<1x1x48xf32>
    %104 = vector.shape_cast %103 : vector<1x1x48xf32> to vector<1x48xf32>
    %cst_44 = arith.constant dense<0.000000e+00> : vector<8xf32>
    %105 = vector.multi_reduction <add>, %102, %cst_44 [1] : vector<8x48xf32> to vector<8xf32>
    %106 = vector.shape_cast %105 : vector<8xf32> to vector<8x1xf32>
    %cst_45 = arith.constant 4.800000e+01 : f32
    %107 = vector.broadcast %cst_45 : f32 to vector<8x1xf32>
    %108 = arith.divf %106, %107 : vector<8x1xf32>
    %109 = vector.broadcast %108 : vector<8x1xf32> to vector<8x48xf32>
    %110 = arith.subf %102, %109 : vector<8x48xf32>
    %111 = arith.mulf %110, %110 : vector<8x48xf32>
    %cst_46 = arith.constant dense<0.000000e+00> : vector<8xf32>
    %112 = vector.multi_reduction <add>, %111, %cst_46 [1] : vector<8x48xf32> to vector<8xf32>
    %113 = vector.shape_cast %112 : vector<8xf32> to vector<8x1xf32>
    %cst_47 = arith.constant 4.800000e+01 : f32
    %114 = vector.broadcast %cst_47 : f32 to vector<8x1xf32>
    %115 = arith.divf %113, %114 : vector<8x1xf32>
    %116 = vector.broadcast %108 : vector<8x1xf32> to vector<8x48xf32>
    %117 = arith.subf %102, %116 : vector<8x48xf32>
    %cst_48 = arith.constant 9.99999974E-6 : f32
    %118 = vector.broadcast %cst_48 : f32 to vector<8x1xf32>
    %119 = arith.addf %115, %118 : vector<8x1xf32>
    %120 = math.rsqrt %119 : vector<8x1xf32>
    %121 = vector.broadcast %120 : vector<8x1xf32> to vector<8x48xf32>
    %122 = arith.mulf %117, %121 : vector<8x48xf32>
    %123 = vector.broadcast %104 : vector<1x48xf32> to vector<8x48xf32>
    %124 = arith.mulf %122, %123 : vector<8x48xf32>
    %c0_49 = arith.constant 0 : index
    %c0_50 = arith.constant 0 : index
    %c0_51 = arith.constant 0 : index
    %125 = vector.load %arg11[%c0_49, %c0_50, %c0_51] : memref<2x48x32xf32, #tpu.memory_space<vmem>>, vector<1x48x32xf32>
    %126 = vector.shape_cast %125 : vector<1x48x32xf32> to vector<48x32xf32>
    %c0_52 = arith.constant 0 : index
    %c0_53 = arith.constant 0 : index
    %c0_54 = arith.constant 0 : index
    %127 = vector.load %arg12[%c0_52, %c0_53, %c0_54] : memref<2x48x64xf32, #tpu.memory_space<vmem>>, vector<1x48x64xf32>
    %128 = vector.shape_cast %127 : vector<1x48x64xf32> to vector<48x64xf32>
    %c0_55 = arith.constant 0 : index
    %c0_56 = arith.constant 0 : index
    %c0_57 = arith.constant 0 : index
    %129 = vector.load %arg13[%c0_55, %c0_56, %c0_57] : memref<2x32x48xf32, #tpu.memory_space<vmem>>, vector<1x32x48xf32>
    %130 = vector.shape_cast %129 : vector<1x32x48xf32> to vector<32x48xf32>
    %c0_58 = arith.constant 0 : index
    %c0_59 = arith.constant 0 : index
    %c0_60 = arith.constant 0 : index
    %c0_61 = arith.constant 0 : index
    %131 = vector.load %arg14[%c0_58, %c0_59, %c0_60, %c0_61] : memref<2x4x1x8xf32, #tpu.memory_space<vmem>>, vector<1x4x1x8xf32>
    %132 = vector.shape_cast %131 : vector<1x4x1x8xf32> to vector<4x1x8xf32>
    %c0_62 = arith.constant 0 : index
    %c0_63 = arith.constant 0 : index
    %c0_64 = arith.constant 0 : index
    %c0_65 = arith.constant 0 : index
    %133 = vector.load %arg15[%c0_62, %c0_63, %c0_64, %c0_65] : memref<2x4x1x8xf32, #tpu.memory_space<vmem>>, vector<1x4x1x8xf32>
    %134 = vector.shape_cast %133 : vector<1x4x1x8xf32> to vector<4x1x8xf32>
    %cst_66 = arith.constant dense<0.000000e+00> : vector<8x32xf32>
    %135 = tpu.matmul %124, %126, %cst_66 {dimension_numbers = #tpu.dot_dimension_numbers<[1], [0], [0], [1], [0, 0, 1, 1], [], []>} : vector<8x48xf32>, vector<48x32xf32>, vector<8x32xf32> -> vector<8x32xf32>
    %cst_67 = arith.constant 0.353553385 : f32
    %136 = vector.broadcast %cst_67 : f32 to vector<8x32xf32>
    %137 = arith.mulf %135, %136 : vector<8x32xf32>
    %cst_68 = arith.constant dense<0.000000e+00> : vector<6x64xf32>
    %138 = tpu.matmul %3, %128, %cst_68 {dimension_numbers = #tpu.dot_dimension_numbers<[1], [0], [0], [1], [0, 0, 1, 1], [], []>} : vector<6x48xf32>, vector<48x64xf32>, vector<6x64xf32> -> vector<6x64xf32>
    %139 = vector.extract_strided_slice %137 {offsets = [0, 0], sizes = [8, 8], strides = [1, 1]} : vector<8x32xf32> to vector<8x8xf32>
    %140 = vector.extract_strided_slice %137 {offsets = [0, 8], sizes = [8, 8], strides = [1, 1]} : vector<8x32xf32> to vector<8x8xf32>
    %141 = vector.extract_strided_slice %137 {offsets = [0, 16], sizes = [8, 8], strides = [1, 1]} : vector<8x32xf32> to vector<8x8xf32>
    %142 = vector.extract_strided_slice %137 {offsets = [0, 24], sizes = [8, 8], strides = [1, 1]} : vector<8x32xf32> to vector<8x8xf32>
    %143 = vector.shape_cast %139 : vector<8x8xf32> to vector<1x8x8xf32>
    %144 = vector.shape_cast %140 : vector<8x8xf32> to vector<1x8x8xf32>
    %145 = vector.shape_cast %141 : vector<8x8xf32> to vector<1x8x8xf32>
    %146 = vector.shape_cast %142 : vector<8x8xf32> to vector<1x8x8xf32>
    %147 = tpu.concatenate %143, %144, %145, %146 in 0 : vector<1x8x8xf32>, vector<1x8x8xf32>, vector<1x8x8xf32>, vector<1x8x8xf32> -> vector<4x8x8xf32>
    %148 = vector.extract_strided_slice %138 {offsets = [0, 0], sizes = [6, 8], strides = [1, 1]} : vector<6x64xf32> to vector<6x8xf32>
    %149 = vector.extract_strided_slice %138 {offsets = [0, 8], sizes = [6, 8], strides = [1, 1]} : vector<6x64xf32> to vector<6x8xf32>
    %150 = vector.extract_strided_slice %138 {offsets = [0, 16], sizes = [6, 8], strides = [1, 1]} : vector<6x64xf32> to vector<6x8xf32>
    %151 = vector.extract_strided_slice %138 {offsets = [0, 24], sizes = [6, 8], strides = [1, 1]} : vector<6x64xf32> to vector<6x8xf32>
    %152 = vector.shape_cast %148 : vector<6x8xf32> to vector<1x6x8xf32>
    %153 = vector.shape_cast %149 : vector<6x8xf32> to vector<1x6x8xf32>
    %154 = vector.shape_cast %150 : vector<6x8xf32> to vector<1x6x8xf32>
    %155 = vector.shape_cast %151 : vector<6x8xf32> to vector<1x6x8xf32>
    %156 = tpu.concatenate %152, %153, %154, %155 in 0 : vector<1x6x8xf32>, vector<1x6x8xf32>, vector<1x6x8xf32>, vector<1x6x8xf32> -> vector<4x6x8xf32>
    %157 = vector.extract_strided_slice %138 {offsets = [0, 32], sizes = [6, 8], strides = [1, 1]} : vector<6x64xf32> to vector<6x8xf32>
    %158 = vector.extract_strided_slice %138 {offsets = [0, 40], sizes = [6, 8], strides = [1, 1]} : vector<6x64xf32> to vector<6x8xf32>
    %159 = vector.extract_strided_slice %138 {offsets = [0, 48], sizes = [6, 8], strides = [1, 1]} : vector<6x64xf32> to vector<6x8xf32>
    %160 = vector.extract_strided_slice %138 {offsets = [0, 56], sizes = [6, 8], strides = [1, 1]} : vector<6x64xf32> to vector<6x8xf32>
    %161 = vector.shape_cast %157 : vector<6x8xf32> to vector<1x6x8xf32>
    %162 = vector.shape_cast %158 : vector<6x8xf32> to vector<1x6x8xf32>
    %163 = vector.shape_cast %159 : vector<6x8xf32> to vector<1x6x8xf32>
    %164 = vector.shape_cast %160 : vector<6x8xf32> to vector<1x6x8xf32>
    %165 = tpu.concatenate %161, %162, %163, %164 in 0 : vector<1x6x8xf32>, vector<1x6x8xf32>, vector<1x6x8xf32>, vector<1x6x8xf32> -> vector<4x6x8xf32>
    "tpu.trace_start"() <{level = 10 : i32, message = "hnd,hmd->hnm"}> : () -> ()
    %cst_69 = arith.constant dense<0.000000e+00> : vector<4x8x6xf32>
    %166 = tpu.matmul %147, %156, %cst_69 {dimension_numbers = #tpu.dot_dimension_numbers<[2], [2], [1], [1], [0, 0, 0, 1, 1, 1], [0], [0]>} : vector<4x8x8xf32>, vector<4x6x8xf32>, vector<4x8x6xf32> -> vector<4x8x6xf32>
    "tpu.trace_stop"() : () -> ()
    %167 = vector.shape_cast %5 : vector<1x6xf32> to vector<1x1x6xf32>
    %168 = vector.broadcast %167 : vector<1x1x6xf32> to vector<4x8x6xf32>
    %169 = arith.addf %166, %168 : vector<4x8x6xf32>
    %170 = vector.broadcast %132 : vector<4x1x8xf32> to vector<4x8x8xf32>
    %171 = arith.mulf %147, %170 : vector<4x8x8xf32>
    %cst_70 = arith.constant dense<0.000000e+00> : vector<4x8xf32>
    %172 = vector.multi_reduction <add>, %171, %cst_70 [2] : vector<4x8x8xf32> to vector<4x8xf32>
    %173 = vector.shape_cast %172 : vector<4x8xf32> to vector<4x8x1xf32>
    %cst_71 = arith.constant dense<0xFF800000> : vector<4x8xf32>
    %174 = vector.multi_reduction <maximumf>, %169, %cst_71 [2] : vector<4x8x6xf32> to vector<4x8xf32>
    %175 = vector.shape_cast %174 : vector<4x8xf32> to vector<4x8x1xf32>
    %176 = arith.maximumf %175, %173 : vector<4x8x1xf32>
    %177 = arith.subf %173, %176 : vector<4x8x1xf32>
    %178 = math.exp %177 : vector<4x8x1xf32>
    %179 = vector.broadcast %176 : vector<4x8x1xf32> to vector<4x8x6xf32>
    %180 = arith.subf %169, %179 : vector<4x8x6xf32>
    %181 = math.exp %180 : vector<4x8x6xf32>
    %cst_72 = arith.constant dense<0.000000e+00> : vector<4x8xf32>
    %182 = vector.multi_reduction <add>, %181, %cst_72 [2] : vector<4x8x6xf32> to vector<4x8xf32>
    %183 = vector.shape_cast %182 : vector<4x8xf32> to vector<4x8x1xf32>
    %184 = arith.addf %178, %183 : vector<4x8x1xf32>
    %185 = vector.broadcast %178 : vector<4x8x1xf32> to vector<4x8x8xf32>
    %186 = vector.broadcast %134 : vector<4x1x8xf32> to vector<4x8x8xf32>
    %187 = arith.mulf %185, %186 : vector<4x8x8xf32>
    "tpu.trace_start"() <{level = 10 : i32, message = "hnm,hmd->hnd"}> : () -> ()
    %cst_73 = arith.constant dense<0.000000e+00> : vector<4x8x8xf32>
    %188 = tpu.matmul %181, %165, %cst_73 {dimension_numbers = #tpu.dot_dimension_numbers<[2], [1], [1], [2], [0, 0, 0, 1, 1, 2], [0], [0]>} : vector<4x8x6xf32>, vector<4x6x8xf32>, vector<4x8x8xf32> -> vector<4x8x8xf32>
    "tpu.trace_stop"() : () -> ()
    %189 = arith.addf %187, %188 : vector<4x8x8xf32>
    %190 = vector.broadcast %184 : vector<4x8x1xf32> to vector<4x8x8xf32>
    %191 = arith.divf %189, %190 : vector<4x8x8xf32>
    %192 = vector.extract_strided_slice %191 {offsets = [0, 0, 0], sizes = [1, 8, 8], strides = [1, 1, 1]} : vector<4x8x8xf32> to vector<1x8x8xf32>
    %193 = vector.shape_cast %192 : vector<1x8x8xf32> to vector<8x8xf32>
    %194 = vector.extract_strided_slice %191 {offsets = [1, 0, 0], sizes = [1, 8, 8], strides = [1, 1, 1]} : vector<4x8x8xf32> to vector<1x8x8xf32>
    %195 = vector.shape_cast %194 : vector<1x8x8xf32> to vector<8x8xf32>
    %196 = vector.extract_strided_slice %191 {offsets = [2, 0, 0], sizes = [1, 8, 8], strides = [1, 1, 1]} : vector<4x8x8xf32> to vector<1x8x8xf32>
    %197 = vector.shape_cast %196 : vector<1x8x8xf32> to vector<8x8xf32>
    %198 = vector.extract_strided_slice %191 {offsets = [3, 0, 0], sizes = [1, 8, 8], strides = [1, 1, 1]} : vector<4x8x8xf32> to vector<1x8x8xf32>
    %199 = vector.shape_cast %198 : vector<1x8x8xf32> to vector<8x8xf32>
    %200 = tpu.concatenate %193, %195, %197, %199 in 1 : vector<8x8xf32>, vector<8x8xf32>, vector<8x8xf32>, vector<8x8xf32> -> vector<8x32xf32>
    %cst_74 = arith.constant dense<0.000000e+00> : vector<8x48xf32>
    %201 = tpu.matmul %200, %130, %cst_74 {dimension_numbers = #tpu.dot_dimension_numbers<[1], [0], [0], [1], [0, 0, 1, 1], [], []>} : vector<8x32xf32>, vector<32x48xf32>, vector<8x48xf32> -> vector<8x48xf32>
    %202 = arith.addf %102, %201 : vector<8x48xf32>
    %c0_75 = arith.constant 0 : index
    %c0_76 = arith.constant 0 : index
    %c0_77 = arith.constant 0 : index
    %203 = vector.load %arg16[%c0_75, %c0_76, %c0_77] : memref<2x1x48xf32, #tpu.memory_space<vmem>>, vector<1x1x48xf32>
    %204 = vector.shape_cast %203 : vector<1x1x48xf32> to vector<1x48xf32>
    %cst_78 = arith.constant dense<0.000000e+00> : vector<8xf32>
    %205 = vector.multi_reduction <add>, %202, %cst_78 [1] : vector<8x48xf32> to vector<8xf32>
    %206 = vector.shape_cast %205 : vector<8xf32> to vector<8x1xf32>
    %cst_79 = arith.constant 4.800000e+01 : f32
    %207 = vector.broadcast %cst_79 : f32 to vector<8x1xf32>
    %208 = arith.divf %206, %207 : vector<8x1xf32>
    %209 = vector.broadcast %208 : vector<8x1xf32> to vector<8x48xf32>
    %210 = arith.subf %202, %209 : vector<8x48xf32>
    %211 = arith.mulf %210, %210 : vector<8x48xf32>
    %cst_80 = arith.constant dense<0.000000e+00> : vector<8xf32>
    %212 = vector.multi_reduction <add>, %211, %cst_80 [1] : vector<8x48xf32> to vector<8xf32>
    %213 = vector.shape_cast %212 : vector<8xf32> to vector<8x1xf32>
    %cst_81 = arith.constant 4.800000e+01 : f32
    %214 = vector.broadcast %cst_81 : f32 to vector<8x1xf32>
    %215 = arith.divf %213, %214 : vector<8x1xf32>
    %216 = vector.broadcast %208 : vector<8x1xf32> to vector<8x48xf32>
    %217 = arith.subf %202, %216 : vector<8x48xf32>
    %cst_82 = arith.constant 9.99999974E-6 : f32
    %218 = vector.broadcast %cst_82 : f32 to vector<8x1xf32>
    %219 = arith.addf %215, %218 : vector<8x1xf32>
    %220 = math.rsqrt %219 : vector<8x1xf32>
    %221 = vector.broadcast %220 : vector<8x1xf32> to vector<8x48xf32>
    %222 = arith.mulf %217, %221 : vector<8x48xf32>
    %223 = vector.broadcast %204 : vector<1x48xf32> to vector<8x48xf32>
    %224 = arith.mulf %222, %223 : vector<8x48xf32>
    %c0_83 = arith.constant 0 : index
    %c0_84 = arith.constant 0 : index
    %c0_85 = arith.constant 0 : index
    %225 = vector.load %arg17[%c0_83, %c0_84, %c0_85] : memref<2x48x256xf32, #tpu.memory_space<vmem>>, vector<1x48x256xf32>
    %226 = vector.shape_cast %225 : vector<1x48x256xf32> to vector<48x256xf32>
    %cst_86 = arith.constant dense<0.000000e+00> : vector<8x256xf32>
    %227 = tpu.matmul %224, %226, %cst_86 {dimension_numbers = #tpu.dot_dimension_numbers<[1], [0], [0], [1], [0, 0, 1, 1], [], []>} : vector<8x48xf32>, vector<48x256xf32>, vector<8x256xf32> -> vector<8x256xf32>
    %228 = vector.extract_strided_slice %227 {offsets = [0, 128], sizes = [8, 128], strides = [1, 1]} : vector<8x256xf32> to vector<8x128xf32>
    %229 = vector.extract_strided_slice %227 {offsets = [0, 0], sizes = [8, 128], strides = [1, 1]} : vector<8x256xf32> to vector<8x128xf32>
    %cst_87 = arith.constant 5.000000e-01 : f32
    %230 = vector.broadcast %cst_87 : f32 to vector<8x128xf32>
    %231 = arith.mulf %230, %229 : vector<8x128xf32>
    %cst_88 = arith.constant 0.707106769 : f32
    %232 = vector.broadcast %cst_88 : f32 to vector<8x128xf32>
    %233 = arith.mulf %229, %232 : vector<8x128xf32>
    %234 = math.erf %233 : vector<8x128xf32>
    %cst_89 = arith.constant 1.000000e+00 : f32
    %235 = vector.broadcast %cst_89 : f32 to vector<8x128xf32>
    %236 = arith.addf %235, %234 : vector<8x128xf32>
    %237 = arith.mulf %231, %236 : vector<8x128xf32>
    %238 = arith.mulf %228, %237 : vector<8x128xf32>
    %c0_90 = arith.constant 0 : index
    %c0_91 = arith.constant 0 : index
    %c0_92 = arith.constant 0 : index
    %239 = vector.load %arg18[%c0_90, %c0_91, %c0_92] : memref<2x1x128xf32, #tpu.memory_space<vmem>>, vector<1x1x128xf32>
    %240 = vector.shape_cast %239 : vector<1x1x128xf32> to vector<1x128xf32>
    %cst_93 = arith.constant dense<0.000000e+00> : vector<8xf32>
    %241 = vector.multi_reduction <add>, %238, %cst_93 [1] : vector<8x128xf32> to vector<8xf32>
    %242 = vector.shape_cast %241 : vector<8xf32> to vector<8x1xf32>
    %cst_94 = arith.constant 1.280000e+02 : f32
    %243 = vector.broadcast %cst_94 : f32 to vector<8x1xf32>
    %244 = arith.divf %242, %243 : vector<8x1xf32>
    %245 = vector.broadcast %244 : vector<8x1xf32> to vector<8x128xf32>
    %246 = arith.subf %238, %245 : vector<8x128xf32>
    %247 = arith.mulf %246, %246 : vector<8x128xf32>
    %cst_95 = arith.constant dense<0.000000e+00> : vector<8xf32>
    %248 = vector.multi_reduction <add>, %247, %cst_95 [1] : vector<8x128xf32> to vector<8xf32>
    %249 = vector.shape_cast %248 : vector<8xf32> to vector<8x1xf32>
    %cst_96 = arith.constant 1.280000e+02 : f32
    %250 = vector.broadcast %cst_96 : f32 to vector<8x1xf32>
    %251 = arith.divf %249, %250 : vector<8x1xf32>
    %252 = vector.broadcast %244 : vector<8x1xf32> to vector<8x128xf32>
    %253 = arith.subf %238, %252 : vector<8x128xf32>
    %cst_97 = arith.constant 9.99999974E-6 : f32
    %254 = vector.broadcast %cst_97 : f32 to vector<8x1xf32>
    %255 = arith.addf %251, %254 : vector<8x1xf32>
    %256 = math.rsqrt %255 : vector<8x1xf32>
    %257 = vector.broadcast %256 : vector<8x1xf32> to vector<8x128xf32>
    %258 = arith.mulf %253, %257 : vector<8x128xf32>
    %259 = vector.broadcast %240 : vector<1x128xf32> to vector<8x128xf32>
    %260 = arith.mulf %258, %259 : vector<8x128xf32>
    %c0_98 = arith.constant 0 : index
    %c0_99 = arith.constant 0 : index
    %c0_100 = arith.constant 0 : index
    %261 = vector.load %arg19[%c0_98, %c0_99, %c0_100] : memref<2x128x48xf32, #tpu.memory_space<vmem>>, vector<1x128x48xf32>
    %262 = vector.shape_cast %261 : vector<1x128x48xf32> to vector<128x48xf32>
    %cst_101 = arith.constant dense<0.000000e+00> : vector<8x48xf32>
    %263 = tpu.matmul %260, %262, %cst_101 {dimension_numbers = #tpu.dot_dimension_numbers<[1], [0], [0], [1], [0, 0, 1, 1], [], []>} : vector<8x128xf32>, vector<128x48xf32>, vector<8x48xf32> -> vector<8x48xf32>
    %264 = arith.addf %202, %263 : vector<8x48xf32>
    %c1 = arith.constant 1 : index
    %c0_102 = arith.constant 0 : index
    %c0_103 = arith.constant 0 : index
    %265 = vector.load %arg4[%c1, %c0_102, %c0_103] : memref<2x1x48xf32, #tpu.memory_space<vmem>>, vector<1x1x48xf32>
    %266 = vector.shape_cast %265 : vector<1x1x48xf32> to vector<1x48xf32>
    %cst_104 = arith.constant dense<0.000000e+00> : vector<8xf32>
    %267 = vector.multi_reduction <add>, %264, %cst_104 [1] : vector<8x48xf32> to vector<8xf32>
    %268 = vector.shape_cast %267 : vector<8xf32> to vector<8x1xf32>
    %cst_105 = arith.constant 4.800000e+01 : f32
    %269 = vector.broadcast %cst_105 : f32 to vector<8x1xf32>
    %270 = arith.divf %268, %269 : vector<8x1xf32>
    %271 = vector.broadcast %270 : vector<8x1xf32> to vector<8x48xf32>
    %272 = arith.subf %264, %271 : vector<8x48xf32>
    %273 = arith.mulf %272, %272 : vector<8x48xf32>
    %cst_106 = arith.constant dense<0.000000e+00> : vector<8xf32>
    %274 = vector.multi_reduction <add>, %273, %cst_106 [1] : vector<8x48xf32> to vector<8xf32>
    %275 = vector.shape_cast %274 : vector<8xf32> to vector<8x1xf32>
    %cst_107 = arith.constant 4.800000e+01 : f32
    %276 = vector.broadcast %cst_107 : f32 to vector<8x1xf32>
    %277 = arith.divf %275, %276 : vector<8x1xf32>
    %278 = vector.broadcast %270 : vector<8x1xf32> to vector<8x48xf32>
    %279 = arith.subf %264, %278 : vector<8x48xf32>
    %cst_108 = arith.constant 9.99999974E-6 : f32
    %280 = vector.broadcast %cst_108 : f32 to vector<8x1xf32>
    %281 = arith.addf %277, %280 : vector<8x1xf32>
    %282 = math.rsqrt %281 : vector<8x1xf32>
    %283 = vector.broadcast %282 : vector<8x1xf32> to vector<8x48xf32>
    %284 = arith.mulf %279, %283 : vector<8x48xf32>
    %285 = vector.broadcast %266 : vector<1x48xf32> to vector<8x48xf32>
    %286 = arith.mulf %284, %285 : vector<8x48xf32>
    %c1_109 = arith.constant 1 : index
    %c0_110 = arith.constant 0 : index
    %c0_111 = arith.constant 0 : index
    %287 = vector.load %arg5[%c1_109, %c0_110, %c0_111] : memref<2x48x32xf32, #tpu.memory_space<vmem>>, vector<1x48x32xf32>
    %288 = vector.shape_cast %287 : vector<1x48x32xf32> to vector<48x32xf32>
    %c1_112 = arith.constant 1 : index
    %c0_113 = arith.constant 0 : index
    %c0_114 = arith.constant 0 : index
    %289 = vector.load %arg6[%c1_112, %c0_113, %c0_114] : memref<2x48x64xf32, #tpu.memory_space<vmem>>, vector<1x48x64xf32>
    %290 = vector.shape_cast %289 : vector<1x48x64xf32> to vector<48x64xf32>
    %c1_115 = arith.constant 1 : index
    %c0_116 = arith.constant 0 : index
    %c0_117 = arith.constant 0 : index
    %291 = vector.load %arg7[%c1_115, %c0_116, %c0_117] : memref<2x32x48xf32, #tpu.memory_space<vmem>>, vector<1x32x48xf32>
    %292 = vector.shape_cast %291 : vector<1x32x48xf32> to vector<32x48xf32>
    %c1_118 = arith.constant 1 : index
    %c0_119 = arith.constant 0 : index
    %c0_120 = arith.constant 0 : index
    %c0_121 = arith.constant 0 : index
    %293 = vector.load %arg8[%c1_118, %c0_119, %c0_120, %c0_121] : memref<2x4x1x8xf32, #tpu.memory_space<vmem>>, vector<1x4x1x8xf32>
    %294 = vector.shape_cast %293 : vector<1x4x1x8xf32> to vector<4x1x8xf32>
    %c1_122 = arith.constant 1 : index
    %c0_123 = arith.constant 0 : index
    %c0_124 = arith.constant 0 : index
    %c0_125 = arith.constant 0 : index
    %295 = vector.load %arg9[%c1_122, %c0_123, %c0_124, %c0_125] : memref<2x4x1x8xf32, #tpu.memory_space<vmem>>, vector<1x4x1x8xf32>
    %296 = vector.shape_cast %295 : vector<1x4x1x8xf32> to vector<4x1x8xf32>
    %cst_126 = arith.constant dense<0.000000e+00> : vector<8x32xf32>
    %297 = tpu.matmul %286, %288, %cst_126 {dimension_numbers = #tpu.dot_dimension_numbers<[1], [0], [0], [1], [0, 0, 1, 1], [], []>} : vector<8x48xf32>, vector<48x32xf32>, vector<8x32xf32> -> vector<8x32xf32>
    %cst_127 = arith.constant 0.353553385 : f32
    %298 = vector.broadcast %cst_127 : f32 to vector<8x32xf32>
    %299 = arith.mulf %297, %298 : vector<8x32xf32>
    %cst_128 = arith.constant dense<0.000000e+00> : vector<8x64xf32>
    %300 = tpu.matmul %286, %290, %cst_128 {dimension_numbers = #tpu.dot_dimension_numbers<[1], [0], [0], [1], [0, 0, 1, 1], [], []>} : vector<8x48xf32>, vector<48x64xf32>, vector<8x64xf32> -> vector<8x64xf32>
    %301 = vector.extract_strided_slice %299 {offsets = [0, 0], sizes = [8, 8], strides = [1, 1]} : vector<8x32xf32> to vector<8x8xf32>
    %302 = vector.extract_strided_slice %299 {offsets = [0, 8], sizes = [8, 8], strides = [1, 1]} : vector<8x32xf32> to vector<8x8xf32>
    %303 = vector.extract_strided_slice %299 {offsets = [0, 16], sizes = [8, 8], strides = [1, 1]} : vector<8x32xf32> to vector<8x8xf32>
    %304 = vector.extract_strided_slice %299 {offsets = [0, 24], sizes = [8, 8], strides = [1, 1]} : vector<8x32xf32> to vector<8x8xf32>
    %305 = vector.shape_cast %301 : vector<8x8xf32> to vector<1x8x8xf32>
    %306 = vector.shape_cast %302 : vector<8x8xf32> to vector<1x8x8xf32>
    %307 = vector.shape_cast %303 : vector<8x8xf32> to vector<1x8x8xf32>
    %308 = vector.shape_cast %304 : vector<8x8xf32> to vector<1x8x8xf32>
    %309 = tpu.concatenate %305, %306, %307, %308 in 0 : vector<1x8x8xf32>, vector<1x8x8xf32>, vector<1x8x8xf32>, vector<1x8x8xf32> -> vector<4x8x8xf32>
    %310 = vector.extract_strided_slice %300 {offsets = [0, 0], sizes = [8, 8], strides = [1, 1]} : vector<8x64xf32> to vector<8x8xf32>
    %311 = vector.extract_strided_slice %300 {offsets = [0, 8], sizes = [8, 8], strides = [1, 1]} : vector<8x64xf32> to vector<8x8xf32>
    %312 = vector.extract_strided_slice %300 {offsets = [0, 16], sizes = [8, 8], strides = [1, 1]} : vector<8x64xf32> to vector<8x8xf32>
    %313 = vector.extract_strided_slice %300 {offsets = [0, 24], sizes = [8, 8], strides = [1, 1]} : vector<8x64xf32> to vector<8x8xf32>
    %314 = vector.shape_cast %310 : vector<8x8xf32> to vector<1x8x8xf32>
    %315 = vector.shape_cast %311 : vector<8x8xf32> to vector<1x8x8xf32>
    %316 = vector.shape_cast %312 : vector<8x8xf32> to vector<1x8x8xf32>
    %317 = vector.shape_cast %313 : vector<8x8xf32> to vector<1x8x8xf32>
    %318 = tpu.concatenate %314, %315, %316, %317 in 0 : vector<1x8x8xf32>, vector<1x8x8xf32>, vector<1x8x8xf32>, vector<1x8x8xf32> -> vector<4x8x8xf32>
    %319 = vector.extract_strided_slice %300 {offsets = [0, 32], sizes = [8, 8], strides = [1, 1]} : vector<8x64xf32> to vector<8x8xf32>
    %320 = vector.extract_strided_slice %300 {offsets = [0, 40], sizes = [8, 8], strides = [1, 1]} : vector<8x64xf32> to vector<8x8xf32>
    %321 = vector.extract_strided_slice %300 {offsets = [0, 48], sizes = [8, 8], strides = [1, 1]} : vector<8x64xf32> to vector<8x8xf32>
    %322 = vector.extract_strided_slice %300 {offsets = [0, 56], sizes = [8, 8], strides = [1, 1]} : vector<8x64xf32> to vector<8x8xf32>
    %323 = vector.shape_cast %319 : vector<8x8xf32> to vector<1x8x8xf32>
    %324 = vector.shape_cast %320 : vector<8x8xf32> to vector<1x8x8xf32>
    %325 = vector.shape_cast %321 : vector<8x8xf32> to vector<1x8x8xf32>
    %326 = vector.shape_cast %322 : vector<8x8xf32> to vector<1x8x8xf32>
    %327 = tpu.concatenate %323, %324, %325, %326 in 0 : vector<1x8x8xf32>, vector<1x8x8xf32>, vector<1x8x8xf32>, vector<1x8x8xf32> -> vector<4x8x8xf32>
    "tpu.trace_start"() <{level = 10 : i32, message = "hnd,hmd->hnm"}> : () -> ()
    %cst_129 = arith.constant dense<0.000000e+00> : vector<4x8x8xf32>
    %328 = tpu.matmul %309, %318, %cst_129 {dimension_numbers = #tpu.dot_dimension_numbers<[2], [2], [1], [1], [0, 0, 0, 1, 1, 1], [0], [0]>} : vector<4x8x8xf32>, vector<4x8x8xf32>, vector<4x8x8xf32> -> vector<4x8x8xf32>
    "tpu.trace_stop"() : () -> ()
    %329 = vector.broadcast %294 : vector<4x1x8xf32> to vector<4x8x8xf32>
    %330 = arith.mulf %309, %329 : vector<4x8x8xf32>
    %cst_130 = arith.constant dense<0.000000e+00> : vector<4x8xf32>
    %331 = vector.multi_reduction <add>, %330, %cst_130 [2] : vector<4x8x8xf32> to vector<4x8xf32>
    %332 = vector.shape_cast %331 : vector<4x8xf32> to vector<4x8x1xf32>
    %cst_131 = arith.constant dense<0xFF800000> : vector<4x8xf32>
    %333 = vector.multi_reduction <maximumf>, %328, %cst_131 [2] : vector<4x8x8xf32> to vector<4x8xf32>
    %334 = vector.shape_cast %333 : vector<4x8xf32> to vector<4x8x1xf32>
    %335 = arith.maximumf %334, %332 : vector<4x8x1xf32>
    %336 = arith.subf %332, %335 : vector<4x8x1xf32>
    %337 = math.exp %336 : vector<4x8x1xf32>
    %338 = vector.broadcast %335 : vector<4x8x1xf32> to vector<4x8x8xf32>
    %339 = arith.subf %328, %338 : vector<4x8x8xf32>
    %340 = math.exp %339 : vector<4x8x8xf32>
    %cst_132 = arith.constant dense<0.000000e+00> : vector<4x8xf32>
    %341 = vector.multi_reduction <add>, %340, %cst_132 [2] : vector<4x8x8xf32> to vector<4x8xf32>
    %342 = vector.shape_cast %341 : vector<4x8xf32> to vector<4x8x1xf32>
    %343 = arith.addf %337, %342 : vector<4x8x1xf32>
    %344 = vector.broadcast %337 : vector<4x8x1xf32> to vector<4x8x8xf32>
    %345 = vector.broadcast %296 : vector<4x1x8xf32> to vector<4x8x8xf32>
    %346 = arith.mulf %344, %345 : vector<4x8x8xf32>
    "tpu.trace_start"() <{level = 10 : i32, message = "hnm,hmd->hnd"}> : () -> ()
    %cst_133 = arith.constant dense<0.000000e+00> : vector<4x8x8xf32>
    %347 = tpu.matmul %340, %327, %cst_133 {dimension_numbers = #tpu.dot_dimension_numbers<[2], [1], [1], [2], [0, 0, 0, 1, 1, 2], [0], [0]>} : vector<4x8x8xf32>, vector<4x8x8xf32>, vector<4x8x8xf32> -> vector<4x8x8xf32>
    "tpu.trace_stop"() : () -> ()
    %348 = arith.addf %346, %347 : vector<4x8x8xf32>
    %349 = vector.broadcast %343 : vector<4x8x1xf32> to vector<4x8x8xf32>
    %350 = arith.divf %348, %349 : vector<4x8x8xf32>
    %351 = vector.extract_strided_slice %350 {offsets = [0, 0, 0], sizes = [1, 8, 8], strides = [1, 1, 1]} : vector<4x8x8xf32> to vector<1x8x8xf32>
    %352 = vector.shape_cast %351 : vector<1x8x8xf32> to vector<8x8xf32>
    %353 = vector.extract_strided_slice %350 {offsets = [1, 0, 0], sizes = [1, 8, 8], strides = [1, 1, 1]} : vector<4x8x8xf32> to vector<1x8x8xf32>
    %354 = vector.shape_cast %353 : vector<1x8x8xf32> to vector<8x8xf32>
    %355 = vector.extract_strided_slice %350 {offsets = [2, 0, 0], sizes = [1, 8, 8], strides = [1, 1, 1]} : vector<4x8x8xf32> to vector<1x8x8xf32>
    %356 = vector.shape_cast %355 : vector<1x8x8xf32> to vector<8x8xf32>
    %357 = vector.extract_strided_slice %350 {offsets = [3, 0, 0], sizes = [1, 8, 8], strides = [1, 1, 1]} : vector<4x8x8xf32> to vector<1x8x8xf32>
    %358 = vector.shape_cast %357 : vector<1x8x8xf32> to vector<8x8xf32>
    %359 = tpu.concatenate %352, %354, %356, %358 in 1 : vector<8x8xf32>, vector<8x8xf32>, vector<8x8xf32>, vector<8x8xf32> -> vector<8x32xf32>
    %cst_134 = arith.constant dense<0.000000e+00> : vector<8x48xf32>
    %360 = tpu.matmul %359, %292, %cst_134 {dimension_numbers = #tpu.dot_dimension_numbers<[1], [0], [0], [1], [0, 0, 1, 1], [], []>} : vector<8x32xf32>, vector<32x48xf32>, vector<8x48xf32> -> vector<8x48xf32>
    %361 = arith.addf %264, %360 : vector<8x48xf32>
    %c1_135 = arith.constant 1 : index
    %c0_136 = arith.constant 0 : index
    %c0_137 = arith.constant 0 : index
    %362 = vector.load %arg10[%c1_135, %c0_136, %c0_137] : memref<2x1x48xf32, #tpu.memory_space<vmem>>, vector<1x1x48xf32>
    %363 = vector.shape_cast %362 : vector<1x1x48xf32> to vector<1x48xf32>
    %cst_138 = arith.constant dense<0.000000e+00> : vector<8xf32>
    %364 = vector.multi_reduction <add>, %361, %cst_138 [1] : vector<8x48xf32> to vector<8xf32>
    %365 = vector.shape_cast %364 : vector<8xf32> to vector<8x1xf32>
    %cst_139 = arith.constant 4.800000e+01 : f32
    %366 = vector.broadcast %cst_139 : f32 to vector<8x1xf32>
    %367 = arith.divf %365, %366 : vector<8x1xf32>
    %368 = vector.broadcast %367 : vector<8x1xf32> to vector<8x48xf32>
    %369 = arith.subf %361, %368 : vector<8x48xf32>
    %370 = arith.mulf %369, %369 : vector<8x48xf32>
    %cst_140 = arith.constant dense<0.000000e+00> : vector<8xf32>
    %371 = vector.multi_reduction <add>, %370, %cst_140 [1] : vector<8x48xf32> to vector<8xf32>
    %372 = vector.shape_cast %371 : vector<8xf32> to vector<8x1xf32>
    %cst_141 = arith.constant 4.800000e+01 : f32
    %373 = vector.broadcast %cst_141 : f32 to vector<8x1xf32>
    %374 = arith.divf %372, %373 : vector<8x1xf32>
    %375 = vector.broadcast %367 : vector<8x1xf32> to vector<8x48xf32>
    %376 = arith.subf %361, %375 : vector<8x48xf32>
    %cst_142 = arith.constant 9.99999974E-6 : f32
    %377 = vector.broadcast %cst_142 : f32 to vector<8x1xf32>
    %378 = arith.addf %374, %377 : vector<8x1xf32>
    %379 = math.rsqrt %378 : vector<8x1xf32>
    %380 = vector.broadcast %379 : vector<8x1xf32> to vector<8x48xf32>
    %381 = arith.mulf %376, %380 : vector<8x48xf32>
    %382 = vector.broadcast %363 : vector<1x48xf32> to vector<8x48xf32>
    %383 = arith.mulf %381, %382 : vector<8x48xf32>
    %c1_143 = arith.constant 1 : index
    %c0_144 = arith.constant 0 : index
    %c0_145 = arith.constant 0 : index
    %384 = vector.load %arg11[%c1_143, %c0_144, %c0_145] : memref<2x48x32xf32, #tpu.memory_space<vmem>>, vector<1x48x32xf32>
    %385 = vector.shape_cast %384 : vector<1x48x32xf32> to vector<48x32xf32>
    %c1_146 = arith.constant 1 : index
    %c0_147 = arith.constant 0 : index
    %c0_148 = arith.constant 0 : index
    %386 = vector.load %arg12[%c1_146, %c0_147, %c0_148] : memref<2x48x64xf32, #tpu.memory_space<vmem>>, vector<1x48x64xf32>
    %387 = vector.shape_cast %386 : vector<1x48x64xf32> to vector<48x64xf32>
    %c1_149 = arith.constant 1 : index
    %c0_150 = arith.constant 0 : index
    %c0_151 = arith.constant 0 : index
    %388 = vector.load %arg13[%c1_149, %c0_150, %c0_151] : memref<2x32x48xf32, #tpu.memory_space<vmem>>, vector<1x32x48xf32>
    %389 = vector.shape_cast %388 : vector<1x32x48xf32> to vector<32x48xf32>
    %c1_152 = arith.constant 1 : index
    %c0_153 = arith.constant 0 : index
    %c0_154 = arith.constant 0 : index
    %c0_155 = arith.constant 0 : index
    %390 = vector.load %arg14[%c1_152, %c0_153, %c0_154, %c0_155] : memref<2x4x1x8xf32, #tpu.memory_space<vmem>>, vector<1x4x1x8xf32>
    %391 = vector.shape_cast %390 : vector<1x4x1x8xf32> to vector<4x1x8xf32>
    %c1_156 = arith.constant 1 : index
    %c0_157 = arith.constant 0 : index
    %c0_158 = arith.constant 0 : index
    %c0_159 = arith.constant 0 : index
    %392 = vector.load %arg15[%c1_156, %c0_157, %c0_158, %c0_159] : memref<2x4x1x8xf32, #tpu.memory_space<vmem>>, vector<1x4x1x8xf32>
    %393 = vector.shape_cast %392 : vector<1x4x1x8xf32> to vector<4x1x8xf32>
    %cst_160 = arith.constant dense<0.000000e+00> : vector<8x32xf32>
    %394 = tpu.matmul %383, %385, %cst_160 {dimension_numbers = #tpu.dot_dimension_numbers<[1], [0], [0], [1], [0, 0, 1, 1], [], []>} : vector<8x48xf32>, vector<48x32xf32>, vector<8x32xf32> -> vector<8x32xf32>
    %cst_161 = arith.constant 0.353553385 : f32
    %395 = vector.broadcast %cst_161 : f32 to vector<8x32xf32>
    %396 = arith.mulf %394, %395 : vector<8x32xf32>
    %cst_162 = arith.constant dense<0.000000e+00> : vector<6x64xf32>
    %397 = tpu.matmul %3, %387, %cst_162 {dimension_numbers = #tpu.dot_dimension_numbers<[1], [0], [0], [1], [0, 0, 1, 1], [], []>} : vector<6x48xf32>, vector<48x64xf32>, vector<6x64xf32> -> vector<6x64xf32>
    %398 = vector.extract_strided_slice %396 {offsets = [0, 0], sizes = [8, 8], strides = [1, 1]} : vector<8x32xf32> to vector<8x8xf32>
    %399 = vector.extract_strided_slice %396 {offsets = [0, 8], sizes = [8, 8], strides = [1, 1]} : vector<8x32xf32> to vector<8x8xf32>
    %400 = vector.extract_strided_slice %396 {offsets = [0, 16], sizes = [8, 8], strides = [1, 1]} : vector<8x32xf32> to vector<8x8xf32>
    %401 = vector.extract_strided_slice %396 {offsets = [0, 24], sizes = [8, 8], strides = [1, 1]} : vector<8x32xf32> to vector<8x8xf32>
    %402 = vector.shape_cast %398 : vector<8x8xf32> to vector<1x8x8xf32>
    %403 = vector.shape_cast %399 : vector<8x8xf32> to vector<1x8x8xf32>
    %404 = vector.shape_cast %400 : vector<8x8xf32> to vector<1x8x8xf32>
    %405 = vector.shape_cast %401 : vector<8x8xf32> to vector<1x8x8xf32>
    %406 = tpu.concatenate %402, %403, %404, %405 in 0 : vector<1x8x8xf32>, vector<1x8x8xf32>, vector<1x8x8xf32>, vector<1x8x8xf32> -> vector<4x8x8xf32>
    %407 = vector.extract_strided_slice %397 {offsets = [0, 0], sizes = [6, 8], strides = [1, 1]} : vector<6x64xf32> to vector<6x8xf32>
    %408 = vector.extract_strided_slice %397 {offsets = [0, 8], sizes = [6, 8], strides = [1, 1]} : vector<6x64xf32> to vector<6x8xf32>
    %409 = vector.extract_strided_slice %397 {offsets = [0, 16], sizes = [6, 8], strides = [1, 1]} : vector<6x64xf32> to vector<6x8xf32>
    %410 = vector.extract_strided_slice %397 {offsets = [0, 24], sizes = [6, 8], strides = [1, 1]} : vector<6x64xf32> to vector<6x8xf32>
    %411 = vector.shape_cast %407 : vector<6x8xf32> to vector<1x6x8xf32>
    %412 = vector.shape_cast %408 : vector<6x8xf32> to vector<1x6x8xf32>
    %413 = vector.shape_cast %409 : vector<6x8xf32> to vector<1x6x8xf32>
    %414 = vector.shape_cast %410 : vector<6x8xf32> to vector<1x6x8xf32>
    %415 = tpu.concatenate %411, %412, %413, %414 in 0 : vector<1x6x8xf32>, vector<1x6x8xf32>, vector<1x6x8xf32>, vector<1x6x8xf32> -> vector<4x6x8xf32>
    %416 = vector.extract_strided_slice %397 {offsets = [0, 32], sizes = [6, 8], strides = [1, 1]} : vector<6x64xf32> to vector<6x8xf32>
    %417 = vector.extract_strided_slice %397 {offsets = [0, 40], sizes = [6, 8], strides = [1, 1]} : vector<6x64xf32> to vector<6x8xf32>
    %418 = vector.extract_strided_slice %397 {offsets = [0, 48], sizes = [6, 8], strides = [1, 1]} : vector<6x64xf32> to vector<6x8xf32>
    %419 = vector.extract_strided_slice %397 {offsets = [0, 56], sizes = [6, 8], strides = [1, 1]} : vector<6x64xf32> to vector<6x8xf32>
    %420 = vector.shape_cast %416 : vector<6x8xf32> to vector<1x6x8xf32>
    %421 = vector.shape_cast %417 : vector<6x8xf32> to vector<1x6x8xf32>
    %422 = vector.shape_cast %418 : vector<6x8xf32> to vector<1x6x8xf32>
    %423 = vector.shape_cast %419 : vector<6x8xf32> to vector<1x6x8xf32>
    %424 = tpu.concatenate %420, %421, %422, %423 in 0 : vector<1x6x8xf32>, vector<1x6x8xf32>, vector<1x6x8xf32>, vector<1x6x8xf32> -> vector<4x6x8xf32>
    "tpu.trace_start"() <{level = 10 : i32, message = "hnd,hmd->hnm"}> : () -> ()
    %cst_163 = arith.constant dense<0.000000e+00> : vector<4x8x6xf32>
    %425 = tpu.matmul %406, %415, %cst_163 {dimension_numbers = #tpu.dot_dimension_numbers<[2], [2], [1], [1], [0, 0, 0, 1, 1, 1], [0], [0]>} : vector<4x8x8xf32>, vector<4x6x8xf32>, vector<4x8x6xf32> -> vector<4x8x6xf32>
    "tpu.trace_stop"() : () -> ()
    %426 = vector.shape_cast %5 : vector<1x6xf32> to vector<1x1x6xf32>
    %427 = vector.broadcast %426 : vector<1x1x6xf32> to vector<4x8x6xf32>
    %428 = arith.addf %425, %427 : vector<4x8x6xf32>
    %429 = vector.broadcast %391 : vector<4x1x8xf32> to vector<4x8x8xf32>
    %430 = arith.mulf %406, %429 : vector<4x8x8xf32>
    %cst_164 = arith.constant dense<0.000000e+00> : vector<4x8xf32>
    %431 = vector.multi_reduction <add>, %430, %cst_164 [2] : vector<4x8x8xf32> to vector<4x8xf32>
    %432 = vector.shape_cast %431 : vector<4x8xf32> to vector<4x8x1xf32>
    %cst_165 = arith.constant dense<0xFF800000> : vector<4x8xf32>
    %433 = vector.multi_reduction <maximumf>, %428, %cst_165 [2] : vector<4x8x6xf32> to vector<4x8xf32>
    %434 = vector.shape_cast %433 : vector<4x8xf32> to vector<4x8x1xf32>
    %435 = arith.maximumf %434, %432 : vector<4x8x1xf32>
    %436 = arith.subf %432, %435 : vector<4x8x1xf32>
    %437 = math.exp %436 : vector<4x8x1xf32>
    %438 = vector.broadcast %435 : vector<4x8x1xf32> to vector<4x8x6xf32>
    %439 = arith.subf %428, %438 : vector<4x8x6xf32>
    %440 = math.exp %439 : vector<4x8x6xf32>
    %cst_166 = arith.constant dense<0.000000e+00> : vector<4x8xf32>
    %441 = vector.multi_reduction <add>, %440, %cst_166 [2] : vector<4x8x6xf32> to vector<4x8xf32>
    %442 = vector.shape_cast %441 : vector<4x8xf32> to vector<4x8x1xf32>
    %443 = arith.addf %437, %442 : vector<4x8x1xf32>
    %444 = vector.broadcast %437 : vector<4x8x1xf32> to vector<4x8x8xf32>
    %445 = vector.broadcast %393 : vector<4x1x8xf32> to vector<4x8x8xf32>
    %446 = arith.mulf %444, %445 : vector<4x8x8xf32>
    "tpu.trace_start"() <{level = 10 : i32, message = "hnm,hmd->hnd"}> : () -> ()
    %cst_167 = arith.constant dense<0.000000e+00> : vector<4x8x8xf32>
    %447 = tpu.matmul %440, %424, %cst_167 {dimension_numbers = #tpu.dot_dimension_numbers<[2], [1], [1], [2], [0, 0, 0, 1, 1, 2], [0], [0]>} : vector<4x8x6xf32>, vector<4x6x8xf32>, vector<4x8x8xf32> -> vector<4x8x8xf32>
    "tpu.trace_stop"() : () -> ()
    %448 = arith.addf %446, %447 : vector<4x8x8xf32>
    %449 = vector.broadcast %443 : vector<4x8x1xf32> to vector<4x8x8xf32>
    %450 = arith.divf %448, %449 : vector<4x8x8xf32>
    %451 = vector.extract_strided_slice %450 {offsets = [0, 0, 0], sizes = [1, 8, 8], strides = [1, 1, 1]} : vector<4x8x8xf32> to vector<1x8x8xf32>
    %452 = vector.shape_cast %451 : vector<1x8x8xf32> to vector<8x8xf32>
    %453 = vector.extract_strided_slice %450 {offsets = [1, 0, 0], sizes = [1, 8, 8], strides = [1, 1, 1]} : vector<4x8x8xf32> to vector<1x8x8xf32>
    %454 = vector.shape_cast %453 : vector<1x8x8xf32> to vector<8x8xf32>
    %455 = vector.extract_strided_slice %450 {offsets = [2, 0, 0], sizes = [1, 8, 8], strides = [1, 1, 1]} : vector<4x8x8xf32> to vector<1x8x8xf32>
    %456 = vector.shape_cast %455 : vector<1x8x8xf32> to vector<8x8xf32>
    %457 = vector.extract_strided_slice %450 {offsets = [3, 0, 0], sizes = [1, 8, 8], strides = [1, 1, 1]} : vector<4x8x8xf32> to vector<1x8x8xf32>
    %458 = vector.shape_cast %457 : vector<1x8x8xf32> to vector<8x8xf32>
    %459 = tpu.concatenate %452, %454, %456, %458 in 1 : vector<8x8xf32>, vector<8x8xf32>, vector<8x8xf32>, vector<8x8xf32> -> vector<8x32xf32>
    %cst_168 = arith.constant dense<0.000000e+00> : vector<8x48xf32>
    %460 = tpu.matmul %459, %389, %cst_168 {dimension_numbers = #tpu.dot_dimension_numbers<[1], [0], [0], [1], [0, 0, 1, 1], [], []>} : vector<8x32xf32>, vector<32x48xf32>, vector<8x48xf32> -> vector<8x48xf32>
    %461 = arith.addf %361, %460 : vector<8x48xf32>
    %c1_169 = arith.constant 1 : index
    %c0_170 = arith.constant 0 : index
    %c0_171 = arith.constant 0 : index
    %462 = vector.load %arg16[%c1_169, %c0_170, %c0_171] : memref<2x1x48xf32, #tpu.memory_space<vmem>>, vector<1x1x48xf32>
    %463 = vector.shape_cast %462 : vector<1x1x48xf32> to vector<1x48xf32>
    %cst_172 = arith.constant dense<0.000000e+00> : vector<8xf32>
    %464 = vector.multi_reduction <add>, %461, %cst_172 [1] : vector<8x48xf32> to vector<8xf32>
    %465 = vector.shape_cast %464 : vector<8xf32> to vector<8x1xf32>
    %cst_173 = arith.constant 4.800000e+01 : f32
    %466 = vector.broadcast %cst_173 : f32 to vector<8x1xf32>
    %467 = arith.divf %465, %466 : vector<8x1xf32>
    %468 = vector.broadcast %467 : vector<8x1xf32> to vector<8x48xf32>
    %469 = arith.subf %461, %468 : vector<8x48xf32>
    %470 = arith.mulf %469, %469 : vector<8x48xf32>
    %cst_174 = arith.constant dense<0.000000e+00> : vector<8xf32>
    %471 = vector.multi_reduction <add>, %470, %cst_174 [1] : vector<8x48xf32> to vector<8xf32>
    %472 = vector.shape_cast %471 : vector<8xf32> to vector<8x1xf32>
    %cst_175 = arith.constant 4.800000e+01 : f32
    %473 = vector.broadcast %cst_175 : f32 to vector<8x1xf32>
    %474 = arith.divf %472, %473 : vector<8x1xf32>
    %475 = vector.broadcast %467 : vector<8x1xf32> to vector<8x48xf32>
    %476 = arith.subf %461, %475 : vector<8x48xf32>
    %cst_176 = arith.constant 9.99999974E-6 : f32
    %477 = vector.broadcast %cst_176 : f32 to vector<8x1xf32>
    %478 = arith.addf %474, %477 : vector<8x1xf32>
    %479 = math.rsqrt %478 : vector<8x1xf32>
    %480 = vector.broadcast %479 : vector<8x1xf32> to vector<8x48xf32>
    %481 = arith.mulf %476, %480 : vector<8x48xf32>
    %482 = vector.broadcast %463 : vector<1x48xf32> to vector<8x48xf32>
    %483 = arith.mulf %481, %482 : vector<8x48xf32>
    %c1_177 = arith.constant 1 : index
    %c0_178 = arith.constant 0 : index
    %c0_179 = arith.constant 0 : index
    %484 = vector.load %arg17[%c1_177, %c0_178, %c0_179] : memref<2x48x256xf32, #tpu.memory_space<vmem>>, vector<1x48x256xf32>
    %485 = vector.shape_cast %484 : vector<1x48x256xf32> to vector<48x256xf32>
    %cst_180 = arith.constant dense<0.000000e+00> : vector<8x256xf32>
    %486 = tpu.matmul %483, %485, %cst_180 {dimension_numbers = #tpu.dot_dimension_numbers<[1], [0], [0], [1], [0, 0, 1, 1], [], []>} : vector<8x48xf32>, vector<48x256xf32>, vector<8x256xf32> -> vector<8x256xf32>
    %487 = vector.extract_strided_slice %486 {offsets = [0, 128], sizes = [8, 128], strides = [1, 1]} : vector<8x256xf32> to vector<8x128xf32>
    %488 = vector.extract_strided_slice %486 {offsets = [0, 0], sizes = [8, 128], strides = [1, 1]} : vector<8x256xf32> to vector<8x128xf32>
    %cst_181 = arith.constant 5.000000e-01 : f32
    %489 = vector.broadcast %cst_181 : f32 to vector<8x128xf32>
    %490 = arith.mulf %489, %488 : vector<8x128xf32>
    %cst_182 = arith.constant 0.707106769 : f32
    %491 = vector.broadcast %cst_182 : f32 to vector<8x128xf32>
    %492 = arith.mulf %488, %491 : vector<8x128xf32>
    %493 = math.erf %492 : vector<8x128xf32>
    %cst_183 = arith.constant 1.000000e+00 : f32
    %494 = vector.broadcast %cst_183 : f32 to vector<8x128xf32>
    %495 = arith.addf %494, %493 : vector<8x128xf32>
    %496 = arith.mulf %490, %495 : vector<8x128xf32>
    %497 = arith.mulf %487, %496 : vector<8x128xf32>
    %c1_184 = arith.constant 1 : index
    %c0_185 = arith.constant 0 : index
    %c0_186 = arith.constant 0 : index
    %498 = vector.load %arg18[%c1_184, %c0_185, %c0_186] : memref<2x1x128xf32, #tpu.memory_space<vmem>>, vector<1x1x128xf32>
    %499 = vector.shape_cast %498 : vector<1x1x128xf32> to vector<1x128xf32>
    %cst_187 = arith.constant dense<0.000000e+00> : vector<8xf32>
    %500 = vector.multi_reduction <add>, %497, %cst_187 [1] : vector<8x128xf32> to vector<8xf32>
    %501 = vector.shape_cast %500 : vector<8xf32> to vector<8x1xf32>
    %cst_188 = arith.constant 1.280000e+02 : f32
    %502 = vector.broadcast %cst_188 : f32 to vector<8x1xf32>
    %503 = arith.divf %501, %502 : vector<8x1xf32>
    %504 = vector.broadcast %503 : vector<8x1xf32> to vector<8x128xf32>
    %505 = arith.subf %497, %504 : vector<8x128xf32>
    %506 = arith.mulf %505, %505 : vector<8x128xf32>
    %cst_189 = arith.constant dense<0.000000e+00> : vector<8xf32>
    %507 = vector.multi_reduction <add>, %506, %cst_189 [1] : vector<8x128xf32> to vector<8xf32>
    %508 = vector.shape_cast %507 : vector<8xf32> to vector<8x1xf32>
    %cst_190 = arith.constant 1.280000e+02 : f32
    %509 = vector.broadcast %cst_190 : f32 to vector<8x1xf32>
    %510 = arith.divf %508, %509 : vector<8x1xf32>
    %511 = vector.broadcast %503 : vector<8x1xf32> to vector<8x128xf32>
    %512 = arith.subf %497, %511 : vector<8x128xf32>
    %cst_191 = arith.constant 9.99999974E-6 : f32
    %513 = vector.broadcast %cst_191 : f32 to vector<8x1xf32>
    %514 = arith.addf %510, %513 : vector<8x1xf32>
    %515 = math.rsqrt %514 : vector<8x1xf32>
    %516 = vector.broadcast %515 : vector<8x1xf32> to vector<8x128xf32>
    %517 = arith.mulf %512, %516 : vector<8x128xf32>
    %518 = vector.broadcast %499 : vector<1x128xf32> to vector<8x128xf32>
    %519 = arith.mulf %517, %518 : vector<8x128xf32>
    %c1_192 = arith.constant 1 : index
    %c0_193 = arith.constant 0 : index
    %c0_194 = arith.constant 0 : index
    %520 = vector.load %arg19[%c1_192, %c0_193, %c0_194] : memref<2x128x48xf32, #tpu.memory_space<vmem>>, vector<1x128x48xf32>
    %521 = vector.shape_cast %520 : vector<1x128x48xf32> to vector<128x48xf32>
    %cst_195 = arith.constant dense<0.000000e+00> : vector<8x48xf32>
    %522 = tpu.matmul %519, %521, %cst_195 {dimension_numbers = #tpu.dot_dimension_numbers<[1], [0], [0], [1], [0, 0, 1, 1], [], []>} : vector<8x128xf32>, vector<128x48xf32>, vector<8x48xf32> -> vector<8x48xf32>
    %523 = arith.addf %461, %522 : vector<8x48xf32>
    %c0_196 = arith.constant 0 : index
    %c0_197 = arith.constant 0 : index
    %524 = vector.load %arg20[%c0_196, %c0_197] : memref<1x48xf32, #tpu.memory_space<vmem>>, vector<1x48xf32>
    %cst_198 = arith.constant dense<0.000000e+00> : vector<8xf32>
    %525 = vector.multi_reduction <add>, %523, %cst_198 [1] : vector<8x48xf32> to vector<8xf32>
    %526 = vector.shape_cast %525 : vector<8xf32> to vector<8x1xf32>
    %cst_199 = arith.constant 4.800000e+01 : f32
    %527 = vector.broadcast %cst_199 : f32 to vector<8x1xf32>
    %528 = arith.divf %526, %527 : vector<8x1xf32>
    %529 = vector.broadcast %528 : vector<8x1xf32> to vector<8x48xf32>
    %530 = arith.subf %523, %529 : vector<8x48xf32>
    %531 = arith.mulf %530, %530 : vector<8x48xf32>
    %cst_200 = arith.constant dense<0.000000e+00> : vector<8xf32>
    %532 = vector.multi_reduction <add>, %531, %cst_200 [1] : vector<8x48xf32> to vector<8xf32>
    %533 = vector.shape_cast %532 : vector<8xf32> to vector<8x1xf32>
    %cst_201 = arith.constant 4.800000e+01 : f32
    %534 = vector.broadcast %cst_201 : f32 to vector<8x1xf32>
    %535 = arith.divf %533, %534 : vector<8x1xf32>
    %536 = vector.broadcast %528 : vector<8x1xf32> to vector<8x48xf32>
    %537 = arith.subf %523, %536 : vector<8x48xf32>
    %cst_202 = arith.constant 9.99999974E-6 : f32
    %538 = vector.broadcast %cst_202 : f32 to vector<8x1xf32>
    %539 = arith.addf %535, %538 : vector<8x1xf32>
    %540 = math.rsqrt %539 : vector<8x1xf32>
    %541 = vector.broadcast %540 : vector<8x1xf32> to vector<8x48xf32>
    %542 = arith.mulf %537, %541 : vector<8x48xf32>
    %543 = vector.broadcast %524 : vector<1x48xf32> to vector<8x48xf32>
    %544 = arith.mulf %542, %543 : vector<8x48xf32>
    %c0_203 = arith.constant 0 : index
    %c0_204 = arith.constant 0 : index
    %c0_205 = arith.constant 0 : index
    %545 = vector.load %arg21[%c0_203, %c0_204, %c0_205] : memref<1x8x48xf32, #tpu.memory_space<vmem>>, vector<1x8x48xf32>
    %546 = vector.shape_cast %545 : vector<1x8x48xf32> to vector<8x48xf32>
    %547 = vector.shape_cast %544 : vector<8x48xf32> to vector<1x8x48xf32>
    tpu.vector_store %arg21[%c0_203, %c0_204, %c0_205], %547 {strides = array<i32>} : memref<1x8x48xf32, #tpu.memory_space<vmem>>, vector<1x8x48xf32>,
    return
  }
  func.func @transform_0(%arg0: i32) -> (i32, i32, i32) {
    %c0_i32 = arith.constant 0 : i32
    %c0_i32_0 = arith.constant 0 : i32
    %c0_i32_1 = arith.constant 0 : i32
    return %arg0, %c0_i32, %c0_i32_0 : i32, i32, i32
  }
  func.func @transform_1(%arg0: i32) -> (i32, i32, i32) {
    %c0_i32 = arith.constant 0 : i32
    %c0_i32_0 = arith.constant 0 : i32
    %c0_i32_1 = arith.constant 0 : i32
    return %arg0, %c0_i32, %c0_i32_0 : i32, i32, i32
  }
  func.func @transform_2(%arg0: i32) -> (i32, i32, i32) {
    %c0_i32 = arith.constant 0 : i32
    %c0_i32_0 = arith.constant 0 : i32
    %c0_i32_1 = arith.constant 0 : i32
    return %arg0, %c0_i32, %c0_i32_0 : i32, i32, i32
  }
  func.func @transform_3(%arg0: i32) -> (i32, i32, i32) {
    %c0_i32 = arith.constant 0 : i32
    %c0_i32_0 = arith.constant 0 : i32
    %c0_i32_1 = arith.constant 0 : i32
    %c0_i32_2 = arith.constant 0 : i32
    return %c0_i32, %c0_i32_0, %c0_i32_1 : i32, i32, i32
  }
  func.func @transform_4(%arg0: i32) -> (i32, i32, i32) {
    %c0_i32 = arith.constant 0 : i32
    %c0_i32_0 = arith.constant 0 : i32
    %c0_i32_1 = arith.constant 0 : i32
    %c0_i32_2 = arith.constant 0 : i32
    return %c0_i32, %c0_i32_0, %c0_i32_1 : i32, i32, i32
  }
  func.func @transform_5(%arg0: i32) -> (i32, i32, i32) {
    %c0_i32 = arith.constant 0 : i32
    %c0_i32_0 = arith.constant 0 : i32
    %c0_i32_1 = arith.constant 0 : i32
    %c0_i32_2 = arith.constant 0 : i32
    return %c0_i32, %c0_i32_0, %c0_i32_1 : i32, i32, i32
  }
  func.func @transform_6(%arg0: i32) -> (i32, i32, i32) {
    %c0_i32 = arith.constant 0 : i32
    %c0_i32_0 = arith.constant 0 : i32
    %c0_i32_1 = arith.constant 0 : i32
    %c0_i32_2 = arith.constant 0 : i32
    return %c0_i32, %c0_i32_0, %c0_i32_1 : i32, i32, i32
  }
  func.func @transform_7(%arg0: i32) -> (i32, i32, i32, i32) {
    %c0_i32 = arith.constant 0 : i32
    %c0_i32_0 = arith.constant 0 : i32
    %c0_i32_1 = arith.constant 0 : i32
    %c0_i32_2 = arith.constant 0 : i32
    %c0_i32_3 = arith.constant 0 : i32
    return %c0_i32, %c0_i32_0, %c0_i32_1, %c0_i32_2 : i32, i32, i32, i32
  }
  func.func @transform_8(%arg0: i32) -> (i32, i32, i32, i32) {
    %c0_i32 = arith.constant 0 : i32
    %c0_i32_0 = arith.constant 0 : i32
    %c0_i32_1 = arith.constant 0 : i32
    %c0_i32_2 = arith.constant 0 : i32
    %c0_i32_3 = arith.constant 0 : i32
    return %c0_i32, %c0_i32_0, %c0_i32_1, %c0_i32_2 : i32, i32, i32, i32
  }
  func.func @transform_9(%arg0: i32) -> (i32, i32, i32) {
    %c0_i32 = arith.constant 0 : i32
    %c0_i32_0 = arith.constant 0 : i32
    %c0_i32_1 = arith.constant 0 : i32
    %c0_i32_2 = arith.constant 0 : i32
    return %c0_i32, %c0_i32_0, %c0_i32_1 : i32, i32, i32
  }
  func.func @transform_10(%arg0: i32) -> (i32, i32, i32) {
    %c0_i32 = arith.constant 0 : i32
    %c0_i32_0 = arith.constant 0 : i32
    %c0_i32_1 = arith.constant 0 : i32
    %c0_i32_2 = arith.constant 0 : i32
    return %c0_i32, %c0_i32_0, %c0_i32_1 : i32, i32, i32
  }
  func.func @transform_11(%arg0: i32) -> (i32, i32, i32) {
    %c0_i32 = arith.constant 0 : i32
    %c0_i32_0 = arith.constant 0 : i32
    %c0_i32_1 = arith.constant 0 : i32
    %c0_i32_2 = arith.constant 0 : i32
    return %c0_i32, %c0_i32_0, %c0_i32_1 : i32, i32, i32
  }
  func.func @transform_12(%arg0: i32) -> (i32, i32, i32) {
    %c0_i32 = arith.constant 0 : i32
    %c0_i32_0 = arith.constant 0 : i32
    %c0_i32_1 = arith.constant 0 : i32
    %c0_i32_2 = arith.constant 0 : i32
    return %c0_i32, %c0_i32_0, %c0_i32_1 : i32, i32, i32
  }
  func.func @transform_13(%arg0: i32) -> (i32, i32, i32, i32) {
    %c0_i32 = arith.constant 0 : i32
    %c0_i32_0 = arith.constant 0 : i32
    %c0_i32_1 = arith.constant 0 : i32
    %c0_i32_2 = arith.constant 0 : i32
    %c0_i32_3 = arith.constant 0 : i32
    return %c0_i32, %c0_i32_0, %c0_i32_1, %c0_i32_2 : i32, i32, i32, i32
  }
  func.func @transform_14(%arg0: i32) -> (i32, i32, i32, i32) {
    %c0_i32 = arith.constant 0 : i32
    %c0_i32_0 = arith.constant 0 : i32
    %c0_i32_1 = arith.constant 0 : i32
    %c0_i32_2 = arith.constant 0 : i32
    %c0_i32_3 = arith.constant 0 : i32
    return %c0_i32, %c0_i32_0, %c0_i32_1, %c0_i32_2 : i32, i32, i32, i32
  }
  func.func @transform_15(%arg0: i32) -> (i32, i32, i32) {
    %c0_i32 = arith.constant 0 : i32
    %c0_i32_0 = arith.constant 0 : i32
    %c0_i32_1 = arith.constant 0 : i32
    %c0_i32_2 = arith.constant 0 : i32
    return %c0_i32, %c0_i32_0, %c0_i32_1 : i32, i32, i32
  }
  func.func @transform_16(%arg0: i32) -> (i32, i32, i32) {
    %c0_i32 = arith.constant 0 : i32
    %c0_i32_0 = arith.constant 0 : i32
    %c0_i32_1 = arith.constant 0 : i32
    %c0_i32_2 = arith.constant 0 : i32
    return %c0_i32, %c0_i32_0, %c0_i32_1 : i32, i32, i32
  }
  func.func @transform_17(%arg0: i32) -> (i32, i32, i32) {
    %c0_i32 = arith.constant 0 : i32
    %c0_i32_0 = arith.constant 0 : i32
    %c0_i32_1 = arith.constant 0 : i32
    %c0_i32_2 = arith.constant 0 : i32
    return %c0_i32, %c0_i32_0, %c0_i32_1 : i32, i32, i32
  }
  func.func @transform_18(%arg0: i32) -> (i32, i32, i32) {
    %c0_i32 = arith.constant 0 : i32
    %c0_i32_0 = arith.constant 0 : i32
    %c0_i32_1 = arith.constant 0 : i32
    %c0_i32_2 = arith.constant 0 : i32
    return %c0_i32, %c0_i32_0, %c0_i32_1 : i32, i32, i32
  }
  func.func @transform_19(%arg0: i32) -> (i32, i32) {
    %c0_i32 = arith.constant 0 : i32
    %c0_i32_0 = arith.constant 0 : i32
    %c0_i32_1 = arith.constant 0 : i32
    return %c0_i32, %c0_i32_0 : i32, i32
  }
  func.func @transform_20(%arg0: i32) -> (i32, i32, i32) {
    %c0_i32 = arith.constant 0 : i32
    %c0_i32_0 = arith.constant 0 : i32
    %c0_i32_1 = arith.constant 0 : i32
    return %arg0, %c0_i32, %c0_i32_0 : i32, i32, i32
  }
}

</mosaic_0001>

<bundles_post_ra>
// kernel: tpu_custom_call.1
= control target key start
LH: loop header
LB: loop body
LE: loop exit
PB: predicated region body
PF: predicated region fallthrough
CT: control target
= control target key end

     0   :  { %s7837_s0 = inlined_call_operand.vmem [shape: f32[2,8,48], index: 0, kind: input, shape index: {}]   ;;  %s7838_s1 = inlined_call_operand.vmem [shape: f32[2,6,48], index: 1, kind: input, shape index: {}]   ;;  %s7839_s2 = inlined_call_operand.vmem [shape: f32[2,1,6], index: 2, kind: input, shape index: {}]   ;;  %s7840_s3 = inlined_call_operand.hbm [shape: f32[2,1,48], index: 3, kind: input, shape index: {}]   ;;  %s7841_s4 = inlined_call_operand.vmem [shape: f32[2,48,32], index: 4, kind: input, shape index: {}]   ;;  %s7842_s5 = inlined_call_operand.vmem [shape: f32[2,48,64], index: 5, kind: input, shape index: {}]   ;;  %s7843_s6 = inlined_call_operand.vmem [shape: f32[2,32,48], index: 6, kind: input, shape index: {}]   ;;  %s7844_s7 = inlined_call_operand.vmem [shape: f32[2,4,1,8], index: 7, kind: input, shape index: {}]   ;;  %s7845_s8 = inlined_call_operand.vmem [shape: f32[2,4,1,8], index: 8, kind: input, shape index: {}]   ;;  %s7846_s9 = inlined_call_operand.vmem [shape: f32[2,1,48], index: 9, kind: input, shape index: {}]   ;;  %s7847_s10 = inlined_call_operand.vmem [shape: f32[2,48,32], index: 10, kind: input, shape index: {}]   ;;  %s7848_s11 = inlined_call_operand.vmem [shape: f32[2,48,64], index: 11, kind: input, shape index: {}]   ;;  %s7849_s12 = inlined_call_operand.vmem [shape: f32[2,32,48], index: 12, kind: input, shape index: {}]   ;;  %s7850_s13 = inlined_call_operand.vmem [shape: f32[2,4,1,8], index: 13, kind: input, shape index: {}]   ;;  %s7851_s14 = inlined_call_operand.vmem [shape: f32[2,4,1,8], index: 14, kind: input, shape index: {}]   ;;  %s7852_s15 = inlined_call_operand.vmem [shape: f32[2,1,48], index: 15, kind: input, shape index: {}]   ;;  %s7853_s16 = inlined_call_operand.vmem [shape: f32[2,48,256], index: 16, kind: input, shape index: {}]   ;;  %s7854_s17 = inlined_call_operand.vmem [shape: f32[2,1,128], index: 17, kind: input, shape index: {}]   ;;  %s7855_s18 = inlined_call_operand.vmem [shape: f32[2,128,48], index: 18, kind: input, shape index: {}]   ;;  %s7856_s19 = inlined_call_operand.vmem [shape: f32[1,48], index: 19, kind: input, shape index: {}]   ;;  %s7857_s20 = inlined_call_operand.hbm [shape: f32[2,8,48], index: 20, kind: output, shape index: {}]  }
   0x1   :  { %7893 = sst [smem:[#allocation18_spill]] %s7837_s0 }
   0x2   :  { %7894 = sst [smem:[#allocation19_spill]] %s7838_s1 }
   0x3   :  { %7895 = sst [smem:[#allocation20_spill]] %s7839_s2 }
   0x4   :  { %7896 = sst [smem:[#allocation21_spill]] %s7840_s3 }
   0x5   :  { %7897 = sst [smem:[#allocation22_spill]] %s7841_s4 }
   0x6   :  { %7898 = sst [smem:[#allocation23_spill]] %s7849_s12 }
   0x7   :  { %7899 = sst [smem:[#allocation24_spill]] %s7851_s14 }
   0x8   :  { %7900 = sst [smem:[#allocation25_spill]] %s7856_s19 }
   0x9   :  { %7901 = sst [smem:[#allocation26_spill]] %s7857_s20 }
   0xa   :  { %25 = vsyncpa [#allocation3], 0 }
   0xb   :  { %26 = vsyncpa [#allocation4], 0 }
   0xc   :  { %28 = vsyncpa [#allocation4 + $0x1], 0  ;;  %s6743_s1 = smov 0   ;;  %s6745_s22 = smov 0  }
   0xd   :  { %s6747_s23 = smov 0   ;;  %s6749_s24 = smov 0  }
   0xe LB: > { %7902 = sst [smem:[#allocation8_spill]] %s6610_s1  ;;  %s6764_s2 = sadd.s32 4294967295, %s6622_s24   ;;  %s6622_s24 = sphi %s6749_s24, %s7947_s24   ;;  %s6618_s23 = sphi %s6747_s23, %s7950_s23   ;;  %s6614_s22 = sphi %s6745_s22, %s7949_s22   ;;  %s6610_s1 = sphi %s6743_s1, %s7948_s1  }
   0xf   : > { %7903 = sst [smem:[#allocation9_spill]] %s6614_s22  ;;  %s5406_s25 = sadd.s32 4294967294, %s6622_s24  }
  0x10   : > { %7904 = sst [smem:[#allocation10_spill]] %s6618_s23  ;;  %s6768_s3 = sadd.s32 1, %s6622_s24  }
  0x11   : > { %7905 = sst [smem:[#allocation11_spill]] %s6622_s24  ;;  %s476_s26 = sadd.s32 1, %s6618_s23 }
  0x12   : > { %7906 = sst [smem:[#allocation12_spill]] %s6764_s2  ;;  %s473_s27 = ssub.s32 %s6622_s24, %s6768_s3 }
  0x13   : > { %7907 = sst [smem:[#allocation13_spill]] %s6768_s3  ;;  %p486_p0 = scmp.ne.s32.totalorder %s6618_s23, %s6614_s22 }
  0x14   : > { %p474_p1 = scmp.eq.s32.totalorder %s473_s27, 0  ;;  %p487_p2 = scmp.eq.s32.totalorder %s6764_s2, 1 }
  0x15   : > { %p492_p3 = scmp.ne.s32.totalorder %s6614_s22, %s6610_s1  ;;  %p493_p4 = scmp.eq.s32.totalorder %s5406_s25, 1 }
  0x16   : > { %s6779_s28 = scalar_select %p474_p1, %s6618_s23, %s476_s26  }
  0x17   : > { %p6781_p5 = por %p487_p2, %p486_p0  ;;  %p6785_p6 = por %p493_p4, %p492_p3 }
  0x18   : > { %7908 = sst [smem:[#allocation14_spill]] %s6779_s28  ;;  %p5407_p7 = scmp.ge.s32.totalorder %s6622_s24, 1 }
  0x19   : > { %s7909_s4 = scalar_select %p6781_p5, 1, 0 }
  0x1a   : > { %s7911_s29 = scalar_select %p6785_p6, 1, 0 }
  0x1b   : > { %7910 = sst [smem:[#allocation15_spill]] %s7909_s4  ;;  %p500_p8 = scmp.lt.s32.totalorder %s6622_s24, 3 }
  0x1c   : > { %7912 = sst [smem:[#allocation16_spill]] %s7911_s29  ;;  %p7866_p9 = scmp.eq.s32.totalorder %s6764_s2, 0 }
  0x1d   : > { %p6792_p10 = pnand %p5407_p7, %p500_p8  ;;  %s6624_s0 = smov [#allocation2]  }
  0x1e   : > { %s512_s21 = sshll.u32 %s6624_s0, 4  ;;  %s7915_s28 = sld [smem:[#allocation21_spill]]  ;;  %s513_s21 = int_to_ptr.vmem [resolvable:$true] %s512_s21 }
  0x1f   : > { %s7913_s30 = scalar_select %p6792_p10, 1, 0 }
  0x20   : > { %p6352_p11 = pneg %p6792_p10 }
  0x22   : > { %p6800_p12 = pnand %p7866_p9, %p6352_p11 }
  0x24   : > { %s6528_s23 = scalar_lea.hbm %s7915_s28, 32  ;;  %p6530_p0 = pneg %p6800_p12 }
  0x25   : > { %p6529_p13 = scmp.ne.s32.totalorder %s7915_s28, %s6528_s23  ;;  %p6535_p3 = scmp.lt.u32.totalorder %s6528_s23, %s7915_s28 }
  0x27   : > { %p6531_p1 = pnand %p6530_p0, %p6529_p13 }
  0x29   : > { %p6532_p2 = pneg %p6531_p1 }
  0x2b   : > { %p6537_p4 = pnand %p6535_p3, %p6532_p2 }
  0x2d   : > { %6540 = shalt.err (!%p6537_p4)
}
  0x2e   : > { %s6541_s24 = scalar_lea.vmem %s513_s21, 32  ;;  %p6549_p9 = scmp.lt.s32.totalorder %s513_s21, %s513_s21 }
  0x2f   : > { %p6542_p7 = scmp.ne.s32.totalorder %s513_s21, %s6541_s24  ;;  %p6550_p6 = scmp.lt.s32.totalorder %s6541_s24, %s6541_s24 }
  0x31   : > { %p6544_p8 = pnand %p6542_p7, %p6530_p0  ;;  %p6551_p5 = por %p6550_p6, %p6549_p9 }
  0x33   : > { %p6545_p11 = pneg %p6544_p8 }
  0x35   : > { %p6552_p10 = pnand %p6551_p5, %p6545_p11 }
  0x37   : > { %6555 = shalt.err (!%p6552_p10)
}
  0x38   : > { %s6625_s3 = smov 16   ;;  %s6626_s29 = smov 1  }
  0x39   : > { %6355 = dma.hbm_to_vmem [thread:$0]  (!%p6800_p12), %s7915_s28, 32, %s513_s21, [#allocation3], %s6625_s3, %s6625_s3, %s6626_s29  }
  0x3a   : > { %p7916_p13 = scmp.ne.s32.totalorder %s7913_s30, 0 }
  0x3c   : > { %596 = sbr.rel (%p7916_p13) target bundleno = 8828 (0x227c), region = 100 }
  0x43   : > { %p7917_p1 = scmp.eq.s32.totalorder %s6764_s2, 0 }
  0x45   : > { %6601 = dma.done.wait (%p7917_p1), [#allocation3], 32   ;;  %p7918_p0 = pmov %p7917_p1 }
  0x46   : > { %p660_p5 = scmp.lt.s32.totalorder %s6764_s2, 1  ;;  %s7919_s25 = sld [smem:[#allocation18_spill]]  ;;  %vm675_vm0 = vcmask 392192   ;;  %v6627_v10 = vmov 0.0|0.0   ;;  %vm6628_vm1 = vmmov 0   ;;  %v6629_v13 = vmov 0.0  }
  0x47   : > { %6603 = vsyncadd (%p7918_p0), [#allocation3], 4294967264  ;;  %s7920_s29 = sld [smem:[#allocation22_spill]]  ;;  %6178 = vmatprep.subr.bf16.mxu0 %v6627_v10  ;;  %5796 = vmatprep.mubr.msk.f32.mxu0 %vm6628_vm1, %v6629_v13  ;;  %v703_v21 = vld [vmem:[%s7842_s5] sm:$0xff]  ;;  %v704_v22 = vld [vmem:[%s7842_s5 + $0x8] sm:$0xff]  ;;  %s7875_s0 = smov 120  }
  0x48   : > { %s6828_s1 = scalar_select %p660_p5, %s6764_s2, 1  ;;  %5819 = vmatprep.subr.mxu1 %v6629_v13  ;;  %5821 = vmatprep.mubr.msk.f32.mxu1 %vm6628_vm1, %v6629_v13  ;;  %v5415_v24 = vld [vmem:[#allocation2] ss:$0 sm:$0xff]  ;;  %v6188_v26 = vpack.c.bf16 %v704_v22, %v703_v21  ;;  %v705_v28 = vld [vmem:[%s7842_s5 + $0x10] sm:$0xff]  ;;  %v706_v29 = vld [vmem:[%s7842_s5 + $0x18] sm:$0xff]  ;;  %vm882_vm2 = vcmask 64512  }
  0x49   : > { %v6191_v30 = vpack.c.bf16 %v706_v29, %v705_v28  ;;  %v707_v31 = vld [vmem:[%s7842_s5 + $0x20] sm:$0xff]  ;;  %v708_v32 = vld [vmem:[%s7842_s5 + $0x28] sm:$0xff]  ;;  %s7871_s3 = smov 112   ;;  %s7873_s26 = smov 104   ;;  %vm1632_vm3 = vcmask 130048   ;;  %vm1634_vm4 = vcmask 195584  }
  0x4a   : > { %s7883_s23 = sshll.u32 %s6828_s1, 3  ;;  %v6194_v33 = vpack.c.bf16 %v708_v32, %v707_v31  ;;  %v5426_v39 = vld [vmem:[%s7844_s7] ss:$0 sm:$0xff]  ;;  %v5427_v42 = vld [vmem:[%s7844_s7 + $0x1] ss:$0 sm:$0xff]  ;;  %s7877_s24 = smov 24  }
  0x4b   : > { %v5428_v48 = vld [vmem:[%s7844_s7 + $0x2] ss:$0 sm:$0xff]  ;;  %v5429_v53 = vld [vmem:[%s7844_s7 + $0x3] ss:$0 sm:$0xff]  ;;  %vm1636_vm5 = vcmask 261120   ;;  %s7922_s28 = sld [smem:[#allocation19_spill]] }
  0x4c   : > { %s663_s30 = scalar_lea.vmem %s7919_s25, %s7883_s23  ;;  %s7869_s25 = smov 96   ;;  %vm2352_vm6 = vcmask 1045504   ;;  %vm2262_vm7 = vcmask 48128  }
  0x4d   : > { %v6836_v0 = vld [vmem:[%s663_s30] sm:$0xff]  ;;  %v698_v8 = vld [vmem:[%s7920_s29 + $0x8] sm:$0xff]  ;;  %v699_v9 = vld [vmem:[%s7920_s29 + $0x10] sm:$0xff]  ;;  %s7923_s30 = smov 120   ;;  %s7925_s23 = smov 112  }
  0x4e   : > { %v676_v1 = vsel %vm675_vm0, %v6836_v0, 0.0  ;;  %v697_v7 = vld [vmem:[%s7920_s29] sm:$0xff]  ;;  %v700_v12 = vld [vmem:[%s7920_s29 + $0x18] sm:$0xff]  ;;  %v702_v16 = vld [vmem:[%s7920_s29 + $0x28] sm:$0xff]  ;;  %s7929_s14 = sld [smem:[#allocation24_spill]]  ;;  %s7930_s12 = sld [smem:[#allocation23_spill]] }
  0x4f   : > { %677 = vadd.xlane.f32.xlu0 %v676_v1  ;;  %v6179_v11 = vpack.c.bf16 %v698_v8, %v697_v7  ;;  %v6182_v14 = vpack.c.bf16 %v700_v12, %v699_v9  ;;  %v701_v15 = vld [vmem:[%s7920_s29 + $0x20] sm:$0xff]  ;;  %s7935_s20 = sld [smem:[#allocation24_spill]]  ;;  %s7937_s19 = sld [smem:[#allocation9_spill]] }
  0x50   : > { %v6185_v17 = vpack.c.bf16 %v702_v16, %v701_v15  ;;  %s7938_s2 = sld [smem:[#allocation12_spill]] }
  0x51   : > { %6180 = vmatpush3.bf16.msra.mxu0 %v6179_v11  ;;  %s7940_s22 = sld [smem:[#allocation25_spill]] }
  0x52   : > { %6181 = vmatprep.subr.bf16.mxu0 %v6627_v10 }
  0x55   : > { %6183 = vmatpush3.bf16.msra.mxu0 %v6182_v14 }
  0x56   : > { %6184 = vmatprep.subr.bf16.mxu0 %v6627_v10 }
  0x59   : > { %6186 = vmatpush3.bf16.msra.mxu0 %v6185_v17 }
  0x5a   : > { %6187 = vmatprep.subr.bf16.mxu0 %v6627_v10 }
  0xdc   : > { %v678_v2 = vpop.xlane.xlu0 %677 }
  0xdd   : > { %v680_v3 = vmul.f32 0.020833334, %v678_v2 }
  0xdf   : > { %v681_v4 = vsub.f32 %v6836_v0, %v680_v3 }
  0xe1   : > { %v682_v5 = vmul.f32 %v681_v4, %v681_v4 }
  0xe3   : > { %v683_v6 = vsel %vm675_vm0, %v682_v5, 0.0 }
  0xe4   : > { %684 = vadd.xlane.f32.xlu0 %v683_v6 }
 0x171   : > { %v685_v18 = vpop.xlane.xlu0 %684 }
 0x172   : > { %v686_v19 = vmul.f32 0.020833334, %v685_v18 }
 0x174   : > { %v687_v20 = vadd.f32 1e-05, %v686_v19 }
 0x176   : > { %6408 = vrsqrt.f32 %v687_v20 }
 0x180   : > { %v6409_v23 = vpop.eup %6408 }
 0x181   : > { %v689_v25 = vmul.f32 %v6409_v23, %v681_v4 }
 0x183   : > { %v696_v27 = vmul.f32 %v5415_v24, %v689_v25 }
 0x185   : > { %5797 = vmatmul.mubr.msk.f32.vlgmr.msra.gmra.mrb[0].mxu0 %vm675_vm0, %v696_v27 }
 0x186   : > { %6189 = vmatpush3.bf16.msra.mxu0 %v6188_v26  ;;  %5811 = vmatprep.mubr.msk.f32.mxu0 %vm6628_vm1, %v6629_v13 }
 0x187   : > { %6190 = vmatprep.subr.bf16.mxu0 %v6627_v10 }
 0x18a   : > { %6192 = vmatpush3.bf16.msra.mxu0 %v6191_v30 }
 0x18b   : > { %6193 = vmatprep.subr.bf16.mxu0 %v6627_v10 }
 0x18e   : > { %6195 = vmatpush3.bf16.msra.mxu0 %v6194_v33 }
 0x18f   : > { %5814 = vmatprep.subr.mxu0 %v6629_v13 }
 0x191   : > { %5812 = vmatmul.mubr.msk.f32.vlgmr.msra.gmra.mrb[2].mxu0 %vm675_vm0, %v696_v27 }
 0x192   : > { %5816 = vmatprep.mubr.msk.f32.mxu0 %vm6628_vm1, %v6629_v13 }
 0x258   : > { %v790_v34 = vpop.f32.mrb[0].mxu0 }
 0x259   : > { %v794_v35 = vmul.f32 0.35355338, %v790_v34  ;;  %v5798_v36 = vpop.f32.mrb[1].mxu0 }
 0x25b   : > { %866 = vrot.lane.b32.xlu1 %v794_v35, %s7875_s0  ;;  %v1203_v40 = vmul.f32 %v5426_v39, %v794_v35 }
 0x25d   : > { %v1207_v41 = vsel %vm882_vm2, %v1203_v40, 0.0 }
 0x264   : > { %v861_v37 = vpop.f32.mrb[2].mxu0 }
 0x265   : > { %878 = vrot.lane.b32.xlu0 %v861_v37, %s7871_s3  ;;  %876 = vrot.lane.b32.xlu1 %v861_v37, %s7875_s0  ;;  %v5813_v38 = vpop.f32.mrb[3].mxu0  ;;  %s7881_s0 = smov 8  }
 0x266   : > { %5815 = vmatpush3.xpose.msk.msra.mxu0 %vm882_vm2, %v861_v37 }
 0x267   : > { %5824 = vmatprep.subr.mxu0 %v6629_v13 }
 0x269   : > { %5817 = vmatmul.mubr.msk.f32.vlgmr.msra.gmra.mrb[4].mxu0 %vm882_vm2, %v794_v35  ;;  %869 = vrot.lane.b32.xlu1 %v794_v35, %s7871_s3  ;;  %s7924_s3 = smov 104  }
 0x26a   : > { %5826 = vmatprep.mubr.msk.f32.mxu0 %vm6628_vm1, %v6629_v13 }
 0x26d   : > { %880 = vrot.lane.b32.xlu1 %v861_v37, %s7873_s26 }
 0x271   : > { %872 = vrot.lane.b32.xlu1 %v794_v35, %s7873_s26  ;;  %s7933_s26 = smov 24  }
 0x295   : > { %1208 = vadd.xlane.f32.xlu1 %v1207_v41 }
 0x2cd   : > { %v867_v43 = vpop.permute.xlu1 %866 }
 0x2ce   : > { %v1204_v44 = vmul.f32 %v5427_v42, %v867_v43 }
 0x2d0   : > { %v1210_v45 = vsel %vm882_vm2, %v1204_v44, 0.0 }
 0x2d1   : > { %1211 = vadd.xlane.f32.xlu1 %v1210_v45 }
 0x2d7   : > { %v879_v46 = vpop.permute.xlu0 %878  ;;  %v877_v47 = vpop.permute.xlu1 %876 }
 0x2d8   : > { %5820 = vmatpush3.xpose.msk.msra.mxu1 %vm882_vm2, %v877_v47  ;;  %5825 = vmatpush3.xpose.msk.msra.mxu0 %vm882_vm2, %v879_v46 }
 0x2d9   : > { %5829 = vmatprep.subr.mxu1 %v6629_v13  ;;  %5834 = vmatprep.subr.mxu0 %v6629_v13 }
 0x2db   : > { %5822 = vmatmul.mubr.msk.f32.vlgmr.msra.gmra.mrb[0].mxu1 %vm882_vm2, %v867_v43  ;;  %v870_v49 = vpop.permute.xlu1 %869  ;;  %v5430_v43 = vld [vmem:[%s7845_s8] ss:$0 sm:$0xff] }
 0x2dc   : > { %5827 = vmatmul.mubr.msk.f32.vlgmr.msra.gmra.mrb[6].mxu0 %vm882_vm2, %v870_v49  ;;  %v1205_v50 = vmul.f32 %v5428_v48, %v870_v49  ;;  %5831 = vmatprep.mubr.msk.f32.mxu1 %vm6628_vm1, %v6629_v13 }
 0x2dd   : > { %5836 = vmatprep.mubr.msk.f32.mxu0 %vm6628_vm1, %v6629_v13 }
 0x2de   : > { %v1213_v51 = vsel %vm882_vm2, %v1205_v50, 0.0 }
 0x2df   : > { %1214 = vadd.xlane.f32.xlu0 %v1213_v51  ;;  %v881_v52 = vpop.permute.xlu1 %880 }
 0x2e0   : > { %5830 = vmatpush3.xpose.msk.msra.mxu1 %vm882_vm2, %v881_v52 }
 0x2e1   : > { %5839 = vmatprep.subr.mxu1 %v6629_v13 }
 0x2e2   : > { %1379 = vrot.lane.b32.xlu1 %v877_v47, %s7869_s25 }
 0x2e3   : > { %v873_v54 = vpop.permute.xlu1 %872 }
 0x2e4   : > { %5832 = vmatmul.mubr.msk.f32.vlgmr.msra.gmra.mrb[2].mxu1 %vm882_vm2, %v873_v54  ;;  %v1206_v55 = vmul.f32 %v5429_v53, %v873_v54 }
 0x2e5   : > { %5841 = vmatprep.mubr.msk.f32.mxu1 %vm6628_vm1, %v6629_v13 }
 0x2e6   : > { %v1216_v56 = vsel %vm882_vm2, %v1206_v55, 0.0 }
 0x2e7   : > { %1217 = vadd.xlane.f32.xlu0 %v1216_v56 }
 0x322   : > { %v6942_v60 = vpop.xlane.xlu1 %1208 }
 0x33c   : > { %v953_v57 = vpop.f32.mrb[4].mxu0 }
 0x33d   : > { %v5818_v58 = vpop.f32.mrb[5].mxu0  ;;  %v1219_v59 = vsel %vm882_vm2, %v953_v57, -inf }
 0x33e   : > { %1220 = vmax.xlane.f32.xlu0 %v1219_v59 }
 0x354   : > { %1303 = vrot.lane.b32.xlu0 %v861_v37, %s7869_s25 }
 0x358   : > { %1531 = vrot.lane.b32.xlu0 %v881_v52, %s7869_s25 }
 0x35e   : > { %v6944_v61 = vpop.xlane.xlu1 %1211 }
 0x362   : > { %v1380_v62 = vpop.permute.xlu1 %1379 }
 0x363   : > { %5840 = vmatpush3.msra.mxu1 %v1380_v62 }
 0x364   : > { %5849 = vmatprep.subr.mxu1 %v6629_v13 }
 0x36c   : > { %v6950_v9 = vpop.xlane.xlu0 %1214 }
 0x374   : > { %v6952_v11 = vpop.xlane.xlu0 %1217 }
 0x3ae   : > { %v1027_v63 = vpop.f32.mrb[0].mxu1 }
 0x3af   : > { %v5823_v1 = vpop.f32.mrb[1].mxu1  ;;  %v1101_v2 = vpop.f32.mrb[6].mxu0  ;;  %v1222_v3 = vsel %vm882_vm2, %v1027_v63, -inf }
 0x3b0   : > { %1223 = vmax.xlane.f32.xlu1 %v1222_v3  ;;  %v5828_v4 = vpop.f32.mrb[7].mxu0  ;;  %v1225_v5 = vsel %vm882_vm2, %v1101_v2, -inf }
 0x3b4   : > { %1226 = vmax.xlane.f32.xlu1 %v1225_v5 }
 0x3b7   : > { %v1175_v6 = vpop.f32.mrb[2].mxu1 }
 0x3b8   : > { %v5833_v7 = vpop.f32.mrb[3].mxu1  ;;  %v1228_v8 = vsel %vm882_vm2, %v1175_v6, -inf }
 0x3b9   : > { %1229 = vmax.xlane.f32.xlu1 %v1228_v8  ;;  %v711_v7 = vld [vmem:[%s7843_s6 + $0x10] sm:$0xff]  ;;  %v712_v8 = vld [vmem:[%s7843_s6 + $0x18] sm:$0xff] }
 0x3ca   : > { %1455 = vrot.lane.b32.xlu1 %v879_v46, %s7869_s25  ;;  %s7879_s25 = smov 16  }
 0x3cb   : > { %v1221_v12 = vpop.xlane.xlu0 %1220 }
 0x3cc   : > { %v1231_v14 = vmax.f32 %v1221_v12, %v6942_v60 }
 0x3ce   : > { %v1247_v15 = vsub.f32 %v953_v57, %v1231_v14  ;;  %v1235_v40 = vsub.f32 %v6942_v60, %v1231_v14 }
 0x3cf   : > { %v1304_v16 = vpop.permute.xlu0 %1303 }
 0x3d0   : > { %v1251_v17 = vmul.f32 1.442695, %v1247_v15  ;;  %5835 = vmatpush3.msra.mxu0 %v1304_v16  ;;  %v1239_v41 = vmul.f32 1.442695, %v1235_v40  ;;  %v5432_v15 = vld [vmem:[%s7845_s8 + $0x2] ss:$0 sm:$0xff] }
 0x3d1   : > { %5844 = vmatprep.subr.mxu0 %v6629_v13 }
 0x3d2   : > { %6410 = vpow2.f32 %v1251_v17 }
 0x3d3   : > { %v1532_v33 = vpop.permute.xlu0 %1531 }
 0x3dc   : > { %v6411_v18 = vpop.eup %6410 }
 0x3dd   : > { %5837 = vmatmul.mubr.msk.f32.vlgmr.msra.gmra.mrb[8].mxu0 %vm882_vm2, %v6411_v18  ;;  %v1259_v36 = vsel %vm882_vm2, %v6411_v18, 0.0 }
 0x3de   : > { %5846 = vmatprep.mubr.msk.f32.mxu0 %vm6628_vm1, %v6629_v13 }
 0x43d   : > { %v1224_v19 = vpop.xlane.xlu1 %1223 }
 0x43e   : > { %v1232_v20 = vmax.f32 %v1224_v19, %v6944_v61 }
 0x440   : > { %v1248_v21 = vsub.f32 %v1027_v63, %v1232_v20  ;;  %v1236_v53 = vsub.f32 %v6944_v61, %v1232_v20  ;;  %v709_v61 = vld [vmem:[%s7843_s6] sm:$0xff] }
 0x441   : > { %v1227_v22 = vpop.xlane.xlu1 %1226 }
 0x442   : > { %v1253_v23 = vmul.f32 1.442695, %v1248_v21  ;;  %v1233_v24 = vmax.f32 %v1227_v22, %v6950_v9  ;;  %v1241_v54 = vmul.f32 1.442695, %v1236_v53  ;;  %v1732_v53 = vld [vmem:[%s7847_s10] sm:$0xff] }
 0x444   : > { %v1249_v25 = vsub.f32 %v1101_v2, %v1233_v24  ;;  %6412 = vpow2.f32 %v1253_v23  ;;  %v1237_v55 = vsub.f32 %v6950_v9, %v1233_v24  ;;  %v710_v2 = vld [vmem:[%s7843_s6 + $0x8] sm:$0xff]  ;;  %v5433_v24 = vld [vmem:[%s7845_s8 + $0x3] ss:$0 sm:$0xff] }
 0x445   : > { %v6197_v3 = vpack.c.bf16 %v710_v2, %v709_v61  ;;  %v1737_v61 = vld [vmem:[%s7847_s10 + $0x28] sm:$0xff] }
 0x446   : > { %v1255_v26 = vmul.f32 1.442695, %v1249_v25  ;;  %v1230_v27 = vpop.xlane.xlu1 %1229  ;;  %v1243_v56 = vmul.f32 1.442695, %v1237_v55 }
 0x447   : > { %v1234_v28 = vmax.f32 %v1230_v27, %v6952_v11 }
 0x448   : > { %6414 = vpow2.f32 %v1255_v26 }
 0x449   : > { %v1250_v29 = vsub.f32 %v1175_v6, %v1234_v28  ;;  %v1238_v57 = vsub.f32 %v6952_v11, %v1234_v28  ;;  %v5431_v6 = vld [vmem:[%s7845_s8 + $0x1] ss:$0 sm:$0xff]  ;;  %v6200_v11 = vpack.c.bf16 %v712_v8, %v711_v7  ;;  %v5439_v7 = vld [vmem:[%s7846_s9] ss:$0 sm:$0xff] }
 0x44a   : > { %v1456_v30 = vpop.permute.xlu1 %1455 }
 0x44b   : > { %v1257_v31 = vmul.f32 1.442695, %v1250_v29  ;;  %5845 = vmatpush3.msra.mxu0 %v1456_v30  ;;  %v1245_v58 = vmul.f32 1.442695, %v1238_v57  ;;  %v1743_v57 = vld [vmem:[%s7848_s11 + $0x28] sm:$0xff] }
 0x44c   : > { %6196 = vmatprep.subr.bf16.mxu0 %v6627_v10 }
 0x44d   : > { %6416 = vpow2.f32 %v1257_v31 }
 0x44e   : > { %v6413_v32 = vpop.eup %6412  ;;  %6418 = vpow2.f32 %v1239_v41 }
 0x44f   : > { %5842 = vmatmul.mubr.msk.f32.vlgmr.msra.gmra.mrb[4].mxu1 %vm882_vm2, %v6413_v32  ;;  %v1262_v34 = vsel %vm882_vm2, %v6413_v32, 0.0 }
 0x450   : > { %5850 = vmatpush3.msra.mxu1 %v1532_v33  ;;  %1263 = vadd.xlane.f32.xlu1 %v1262_v34 }
 0x451   : > { %5851 = vmatprep.mubr.msk.f32.mxu1 %vm6628_vm1, %v6629_v13  ;;  %6202 = vmatprep.subr.bf16.mxu1 %v6627_v10 }
 0x452   : > { %v6415_v35 = vpop.eup %6414 }
 0x453   : > { %5847 = vmatmul.mubr.msk.f32.vlgmr.msra.gmra.mrb[10].mxu0 %vm882_vm2, %v6415_v35  ;;  %v1265_v37 = vsel %vm882_vm2, %v6415_v35, 0.0 }
 0x454   : > { %1260 = vadd.xlane.f32.xlu1 %v1259_v36  ;;  %1266 = vadd.xlane.f32.xlu0 %v1265_v37 }
 0x455   : > { %5862 = vmatprep.mubr.msk.f32.mxu0 %vm6628_vm1, %v6629_v13  ;;  %6198 = vmatpush3.bf16.msra.mxu0 %v6197_v3 }
 0x456   : > { %6199 = vmatprep.subr.bf16.mxu0 %v6627_v10 }
 0x457   : > { %v6417_v38 = vpop.eup %6416 }
 0x458   : > { %5852 = vmatmul.mubr.msk.f32.vlgmr.msra.gmra.mrb[6].mxu1 %vm882_vm2, %v6417_v38  ;;  %v1268_v39 = vsel %vm882_vm2, %v6417_v38, 0.0  ;;  %v6419_v42 = vpop.eup %6418 }
 0x459   : > { %1269 = vadd.xlane.f32.xlu0 %v1268_v39  ;;  %5877 = vmatprep.mubr.msk.f32.mxu1 %vm6628_vm1, %v6629_v13  ;;  %v1299_v44 = vmul.f32 %v6419_v42, %v5430_v43 }
 0x45a   : > { %6201 = vmatpush3.bf16.msra.mxu0 %v6200_v11 }
 0x45b   : > { %6211 = vmatprep.subr.bf16.mxu0 %v6627_v10 }
 0x4b0   : > { %v1375_v45 = vpop.f32.mrb[8].mxu0 }
 0x4b1   : > { %v1607_v46 = vadd.f32 %v1375_v45, %v1299_v44  ;;  %v5838_v47 = vpop.f32.mrb[9].mxu0 }
 0x4dd   : > { %v1264_v48 = vpop.xlane.xlu1 %1263 }
 0x4e1   : > { %v1261_v49 = vpop.xlane.xlu1 %1260  ;;  %v1267_v62 = vpop.xlane.xlu0 %1266 }
 0x4e2   : > { %v1271_v50 = vadd.f32 %v6419_v42, %v1261_v49 }
 0x4e4   : > { %6420 = vrcp.f32 %v1271_v50  ;;  %v1740_v50 = vld [vmem:[%s7848_s11 + $0x10] sm:$0xff] }
 0x4e5   : > { %6422 = vpow2.f32 %v1241_v54  ;;  %v1733_v54 = vld [vmem:[%s7847_s10 + $0x8] sm:$0xff] }
 0x4e6   : > { %6424 = vpow2.f32 %v1243_v56  ;;  %v1270_v4 = vpop.xlane.xlu0 %1269  ;;  %v6203_v55 = vpack.c.bf16 %v1733_v54, %v1732_v53  ;;  %v1742_v56 = vld [vmem:[%s7848_s11 + $0x20] sm:$0xff] }
 0x4e7   : > { %6426 = vpow2.f32 %v1245_v58  ;;  %v6218_v58 = vpack.c.bf16 %v1743_v57, %v1742_v56 }
 0x4e8   : > { %6204 = vmatpush3.bf16.msra.mxu1 %v6203_v55 }
 0x4e9   : > { %6205 = vmatprep.subr.bf16.mxu1 %v6627_v10 }
 0x4ee   : > { %v6421_v51 = vpop.eup %6420 }
 0x4ef   : > { %v6982_v52 = vmul.f32 %v6421_v51, %v1607_v46  ;;  %v6423_v59 = vpop.eup %6422  ;;  %v1741_v51 = vld [vmem:[%s7848_s11 + $0x18] sm:$0xff] }
 0x4f0   : > { %v1272_v60 = vadd.f32 %v6423_v59, %v1264_v48  ;;  %v6425_v63 = vpop.eup %6424  ;;  %v1300_v12 = vmul.f32 %v6423_v59, %v5431_v6  ;;  %v1738_v48 = vld [vmem:[%s7848_s11] sm:$0xff]  ;;  %v1734_v59 = vld [vmem:[%s7847_s10 + $0x10] sm:$0xff] }
 0x4f1   : > { %v1273_v1 = vadd.f32 %v6425_v63, %v1267_v62  ;;  %v6427_v5 = vpop.eup %6426  ;;  %v1301_v20 = vmul.f32 %v6425_v63, %v5432_v15 }
 0x4f2   : > { %6428 = vrcp.f32 %v1272_v60  ;;  %v1274_v9 = vadd.f32 %v6427_v5, %v1270_v4  ;;  %v1302_v27 = vmul.f32 %v6427_v5, %v5433_v24  ;;  %v1735_v60 = vld [vmem:[%s7847_s10 + $0x18] sm:$0xff]  ;;  %v5453_v24 = vld [vmem:[%s7850_s13 + $0x2] ss:$0 sm:$0xff] }
 0x4f3   : > { %6430 = vrcp.f32 %v1273_v1  ;;  %v6206_v62 = vpack.c.bf16 %v1735_v60, %v1734_v59  ;;  %v1736_v1 = vld [vmem:[%s7847_s10 + $0x20] sm:$0xff] }
 0x4f4   : > { %6432 = vrcp.f32 %v1274_v9  ;;  %v6209_v2 = vpack.c.bf16 %v1737_v61, %v1736_v1 }
 0x4f5   : > { %6207 = vmatpush3.bf16.msra.mxu1 %v6206_v62 }
 0x4f6   : > { %6208 = vmatprep.subr.bf16.mxu1 %v6627_v10 }
 0x4f9   : > { %6210 = vmatpush3.bf16.msra.mxu1 %v6209_v2 }
 0x4fa   : > { %5895 = vmatprep.subr.mxu1 %v6629_v13 }
 0x4fc   : > { %v6429_v18 = vpop.eup %6428 }
 0x4fd   : > { %v6431_v25 = vpop.eup %6430 }
 0x4fe   : > { %v6433_v31 = vpop.eup %6432 }
 0x522   : > { %v1451_v14 = vpop.f32.mrb[4].mxu1 }
 0x523   : > { %v1608_v16 = vadd.f32 %v1451_v14, %v1300_v12  ;;  %v5843_v17 = vpop.f32.mrb[5].mxu1 }
 0x525   : > { %v1614_v19 = vmul.f32 %v6429_v18, %v1608_v16 }
 0x526   : > { %v1527_v21 = vpop.f32.mrb[10].mxu0 }
 0x527   : > { %v1609_v22 = vadd.f32 %v1527_v21, %v1301_v20  ;;  %1620 = vrot.lane.b32.xlu0 %v1614_v19, %s7881_s0  ;;  %v5848_v23 = vpop.f32.mrb[11].mxu0  ;;  %v5451_v19 = vld [vmem:[%s7850_s13] ss:$0 sm:$0xff] }
 0x528   : > { %v5452_v23 = vld [vmem:[%s7850_s13 + $0x1] ss:$0 sm:$0xff] }
 0x529   : > { %v1616_v26 = vmul.f32 %v6431_v25, %v1609_v22 }
 0x52b   : > { %v1603_v28 = vpop.f32.mrb[6].mxu1  ;;  %1624 = vrot.lane.b32.xlu1 %v1616_v26, %s7879_s25  ;;  %s7921_s25 = sshll.u32 %s6828_s1, 3 }
 0x52c   : > { %v1610_v29 = vadd.f32 %v1603_v28, %v1302_v27  ;;  %v5853_v30 = vpop.f32.mrb[7].mxu1  ;;  %s7058_s27 = scalar_lea.vmem %s7922_s28, %s7921_s25  ;;  %s7927_s25 = sld [smem:[#allocation20_spill]] }
 0x52d   : > { %v672_v63 = vld [vmem:[%s7058_s27] sm:$0x3f]  ;;  %s7932_s28 = smov 16  }
 0x52e   : > { %v1618_v32 = vmul.f32 %v6433_v31, %v1610_v29  ;;  %v5454_v29 = vld [vmem:[%s7850_s13 + $0x3] ss:$0 sm:$0xff] }
 0x530   : > { %1628 = vrot.lane.b32.xlu1 %v1618_v32, %s7877_s24  ;;  %s7926_s24 = smov 96  }
 0x532   : > { %s7138_s21 = scalar_lea.vmem %s7927_s25, %s6828_s1  ;;  %s7931_s1 = smov 8  }
 0x533   : > { %7928 = sst [smem:[#allocation17_spill]] %s7138_s21  ;;  %s7936_s25 = sld [smem:[#allocation23_spill]] }
 0x599   : > { %v1621_v34 = vpop.permute.xlu0 %1620 }
 0x59a   : > { %v1631_v35 = vsel %vm882_vm2, %v6982_v52, %v1621_v34  ;;  %v6215_v52 = vpack.c.bf16 %v1741_v51, %v1740_v50 }
 0x59d   : > { %v1625_v33 = vpop.permute.xlu1 %1624 }
 0x59e   : > { %v1633_v36 = vsel %vm1632_vm3, %v1631_v35, %v1625_v33 }
 0x5a2   : > { %v1629_v37 = vpop.permute.xlu1 %1628 }
 0x5a3   : > { %v1635_v38 = vsel %vm1634_vm4, %v1633_v36, %v1629_v37  ;;  %v5442_v36 = vld [vmem:[%s7138_s21] ss:$0 sm:$0xff] }
 0x5a4   : > { %5863 = vmatmul.mubr.msk.f32.vlgmr.msra.gmra.mrb[12].mxu0 %vm1636_vm5, %v1635_v38 }
 0x5a5   : > { %5892 = vmatprep.mubr.msk.f32.mxu0 %vm6628_vm1, %v6629_v13 }
 0x677   : > { %v1706_v39 = vpop.f32.mrb[12].mxu0 }
 0x678   : > { %v7021_v40 = vadd.f32 %v1706_v39, %v6836_v0  ;;  %v5864_v41 = vpop.f32.mrb[13].mxu0  ;;  %v1739_v0 = vld [vmem:[%s7848_s11 + $0x8] sm:$0xff] }
 0x679   : > { %v6212_v49 = vpack.c.bf16 %v1739_v0, %v1738_v48 }
 0x67a   : > { %v1712_v42 = vsel %vm675_vm0, %v7021_v40, 0.0 }
 0x67b   : > { %1713 = vadd.xlane.f32.xlu0 %v1712_v42  ;;  %6213 = vmatpush3.bf16.msra.mxu0 %v6212_v49 }
 0x67c   : > { %6214 = vmatprep.subr.bf16.mxu0 %v6627_v10 }
 0x67f   : > { %6216 = vmatpush3.bf16.msra.mxu0 %v6215_v52 }
 0x680   : > { %6217 = vmatprep.subr.bf16.mxu0 %v6627_v10 }
 0x683   : > { %6219 = vmatpush3.bf16.msra.mxu0 %v6218_v58 }
 0x684   : > { %5905 = vmatprep.subr.mxu0 %v6629_v13 }
 0x686   : > { %5893 = vmatmul.mubr.msk.f32.vlgmr.msra.gmra.mrb[14].mxu0 %vm675_vm0, %v672_v63 }
 0x687   : > { %5907 = vmatprep.mubr.msk.f32.mxu0 %vm6628_vm1, %v6629_v13 }
 0x708   : > { %v1714_v43 = vpop.xlane.xlu0 %1713 }
 0x709   : > { %v1715_v44 = vmul.f32 0.020833334, %v1714_v43 }
 0x70b   : > { %v1716_v45 = vsub.f32 %v7021_v40, %v1715_v44 }
 0x70d   : > { %v1717_v46 = vmul.f32 %v1716_v45, %v1716_v45 }
 0x70f   : > { %v1718_v47 = vsel %vm675_vm0, %v1717_v46, 0.0 }
 0x710   : > { %1719 = vadd.xlane.f32.xlu1 %v1718_v47 }
 0x759   : > { %v1899_v11 = vpop.f32.mrb[14].mxu0 }
 0x75a   : > { %1914 = vrot.lane.b32.xlu0 %v1899_v11, %s7923_s30  ;;  %v5894_v12 = vpop.f32.mrb[15].mxu0  ;;  %1918 = vrot.lane.b32.xlu1 %v1899_v11, %s7924_s3 }
 0x75e   : > { %1916 = vrot.lane.b32.xlu0 %v1899_v11, %s7925_s23 }
 0x79d   : > { %v1720_v3 = vpop.xlane.xlu1 %1719 }
 0x79e   : > { %v1721_v4 = vmul.f32 0.020833334, %v1720_v3 }
 0x7a0   : > { %v1722_v5 = vadd.f32 1e-05, %v1721_v4 }
 0x7a2   : > { %6434 = vrsqrt.f32 %v1722_v5 }
 0x7ac   : > { %v6435_v6 = vpop.eup %6434 }
 0x7ad   : > { %v1724_v8 = vmul.f32 %v6435_v6, %v1716_v45 }
 0x7af   : > { %v1731_v9 = vmul.f32 %v5439_v7, %v1724_v8 }
 0x7b1   : > { %5878 = vmatmul.mubr.msk.f32.vlgmr.msra.gmra.mrb[8].mxu1 %vm675_vm0, %v1731_v9 }
 0x7b2   : > { %5897 = vmatprep.mubr.msk.f32.mxu1 %vm6628_vm1, %v6629_v13  ;;  %5896 = vmatpush3.xpose.msk.msra.mxu1 %vm882_vm2, %v1899_v11 }
 0x7b3   : > { %5900 = vmatprep.subr.mxu1 %v6629_v13 }
 0x7cc   : > { %v7091_v14 = vpop.permute.xlu0 %1914  ;;  %v1919_v22 = vpop.permute.xlu1 %1918 }
 0x7d0   : > { %v1917_v15 = vpop.permute.xlu0 %1916 }
 0x7d1   : > { %5906 = vmatpush3.xpose.msk.msra.mxu0 %vm882_vm2, %v1917_v15 }
 0x7d2   : > { %5915 = vmatprep.subr.mxu0 %v6629_v13 }
 0x884   : > { %v1825_v16 = vpop.f32.mrb[8].mxu1 }
 0x885   : > { %v1829_v17 = vmul.f32 0.35355338, %v1825_v16  ;;  %v5879_v18 = vpop.f32.mrb[9].mxu1 }
 0x887   : > { %1904 = vrot.lane.b32.xlu1 %v1829_v17, %s7923_s30  ;;  %1907 = vrot.lane.b32.xlu0 %v1829_v17, %s7925_s23  ;;  %v2246_v20 = vmul.f32 %v5451_v19, %v1829_v17 }
 0x888   : > { %5898 = vmatmul.mubr.msk.f32.vlgmr.msra.gmra.mrb[10].mxu1 %vm882_vm2, %v1829_v17 }
 0x889   : > { %5901 = vmatpush3.xpose.msk.msra.mxu1 %vm882_vm2, %v7091_v14  ;;  %5902 = vmatprep.mubr.msk.f32.mxu1 %vm6628_vm1, %v6629_v13  ;;  %v2250_v21 = vsel %vm882_vm2, %v2246_v20, 0.0 }
 0x88a   : > { %5910 = vmatprep.subr.mxu1 %v6629_v13 }
 0x88b   : > { %1910 = vrot.lane.b32.xlu1 %v1829_v17, %s7924_s3 }
 0x88f   : > { %2347 = vrot.lane.b32.xlu1 %v1899_v11, %s7926_s24 }
 0x8a6   : > { %2251 = vadd.xlane.f32.xlu0 %v2250_v21 }
 0x8f9   : > { %v1905_v25 = vpop.permute.xlu1 %1904  ;;  %v1908_v26 = vpop.permute.xlu0 %1907 }
 0x8fa   : > { %v2247_v27 = vmul.f32 %v5452_v23, %v1905_v25  ;;  %v2248_v28 = vmul.f32 %v5453_v24, %v1908_v26  ;;  %5903 = vmatmul.mubr.msk.f32.vlgmr.msra.gmra.mrb[12].mxu1 %vm882_vm2, %v1905_v25  ;;  %5908 = vmatmul.mubr.msk.f32.vlgmr.msra.gmra.mrb[16].mxu0 %vm882_vm2, %v1908_v26 }
 0x8fb   : > { %5911 = vmatpush3.xpose.msk.msra.mxu1 %vm882_vm2, %v1919_v22  ;;  %5912 = vmatprep.mubr.msk.f32.mxu1 %vm6628_vm1, %v6629_v13 }
 0x8fc   : > { %v2253_v30 = vsel %vm882_vm2, %v2247_v27, 0.0  ;;  %v2256_v31 = vsel %vm882_vm2, %v2248_v28, 0.0  ;;  %5917 = vmatprep.mubr.msk.f32.mxu0 %vm6628_vm1, %v6629_v13  ;;  %5920 = vmatprep.subr.mxu1 %v6629_v13  ;;  %v5455_v27 = vld [vmem:[%s7929_s14] ss:$0 sm:$0xff] }
 0x8fd   : > { %v1911_v32 = vpop.permute.xlu1 %1910  ;;  %2254 = vadd.xlane.f32.xlu0 %v2253_v30  ;;  %2257 = vadd.xlane.f32.xlu1 %v2256_v31 }
 0x8fe   : > { %v2249_v33 = vmul.f32 %v5454_v29, %v1911_v32  ;;  %5913 = vmatmul.mubr.msk.f32.vlgmr.msra.gmra.mrb[14].mxu1 %vm882_vm2, %v1911_v32 }
 0x8ff   : > { %5922 = vmatprep.mubr.msk.f32.mxu1 %vm6628_vm1, %v6629_v13 }
 0x900   : > { %v2259_v34 = vsel %vm882_vm2, %v2249_v33, 0.0 }
 0x901   : > { %v2348_v35 = vpop.permute.xlu1 %2347  ;;  %2260 = vadd.xlane.f32.xlu1 %v2259_v34 }
 0x902   : > { %5916 = vmatpush3.msk.msra.mxu0 %vm2352_vm6, %v2348_v35 }
 0x903   : > { %5925 = vmatprep.subr.mxu0 %v6629_v13 }
 0x933   : > { %v2252_v55 = vpop.xlane.xlu0 %2251 }
 0x95b   : > { %v1996_v37 = vpop.f32.mrb[10].mxu1 }
 0x95c   : > { %v1997_v38 = vadd.f32 %v5442_v36, %v1996_v37  ;;  %v5899_v39 = vpop.f32.mrb[11].mxu1 }
 0x95e   : > { %v2263_v41 = vsel %vm2262_vm7, %v1997_v38, -inf }
 0x95f   : > { %2264 = vmax.xlane.f32.xlu1 %v2263_v41 }
 0x970   : > { %2502 = vrot.lane.b32.xlu1 %v1917_v15, %s7926_s24 }
 0x974   : > { %2579 = vrot.lane.b32.xlu1 %v1919_v22, %s7926_s24 }
 0x98a   : > { %v7147_v53 = vpop.xlane.xlu1 %2257  ;;  %v2255_v63 = vpop.xlane.xlu0 %2254 }
 0x98e   : > { %v7149_v54 = vpop.xlane.xlu1 %2260 }
 0x9cd   : > { %v2070_v42 = vpop.f32.mrb[12].mxu1  ;;  %v2144_v43 = vpop.f32.mrb[16].mxu0 }
 0x9ce   : > { %v2071_v44 = vadd.f32 %v5442_v36, %v2070_v42  ;;  %v5904_v45 = vpop.f32.mrb[13].mxu1  ;;  %v5909_v46 = vpop.f32.mrb[17].mxu0  ;;  %v2145_v47 = vadd.f32 %v5442_v36, %v2144_v43 }
 0x9d0   : > { %v2266_v48 = vsel %vm2262_vm7, %v2071_v44, -inf  ;;  %v2269_v51 = vsel %vm2262_vm7, %v2145_v47, -inf }
 0x9d1   : > { %2267 = vmax.xlane.f32.xlu0 %v2266_v48  ;;  %v2218_v0 = vpop.f32.mrb[14].mxu1 }
 0x9d2   : > { %v5914_v49 = vpop.f32.mrb[15].mxu1  ;;  %v2219_v50 = vadd.f32 %v5442_v36, %v2218_v0  ;;  %v1744_v0 = vld [vmem:[%s7930_s12] sm:$0xff] }
 0x9d3   : > { %v1745_v49 = vld [vmem:[%s7930_s12 + $0x8] sm:$0xff] }
 0x9d4   : > { %v2272_v52 = vsel %vm2262_vm7, %v2219_v50, -inf }
 0x9d5   : > { %2270 = vmax.xlane.f32.xlu0 %v2269_v51 }
 0x9d9   : > { %2273 = vmax.xlane.f32.xlu0 %v2272_v52 }
 0x9ec   : > { %v2265_v56 = vpop.xlane.xlu1 %2264 }
 0x9ed   : > { %v2275_v57 = vmax.f32 %v2265_v56, %v2252_v55 }
 0x9ef   : > { %v2291_v58 = vsub.f32 %v1997_v38, %v2275_v57  ;;  %2425 = vrot.lane.b32.xlu0 %v7091_v14, %s7926_s24  ;;  %v2279_v24 = vsub.f32 %v2252_v55, %v2275_v57  ;;  %v1747_v55 = vld [vmem:[%s7930_s12 + $0x18] sm:$0xff] }
 0x9f0   : > { %v2503_v62 = vpop.permute.xlu1 %2502 }
 0x9f1   : > { %v2295_v59 = vmul.f32 1.442695, %v2291_v58  ;;  %v2283_v25 = vmul.f32 1.442695, %v2279_v24 }
 0x9f3   : > { %6436 = vpow2.f32 %v2295_v59  ;;  %v5457_v59 = vld [vmem:[%s7929_s14 + $0x2] ss:$0 sm:$0xff] }
 0x9f4   : > { %v2580_v17 = vpop.permute.xlu1 %2579 }
 0x9fd   : > { %v6437_v60 = vpop.eup %6436 }
 0x9fe   : > { %5918 = vmatmul.mubr.msk.f32.vlgmr.msra.gmra.mrb[18].mxu0 %vm2262_vm7, %v6437_v60  ;;  %v2303_v23 = vsel %vm2262_vm7, %v6437_v60, 0.0 }
 0x9ff   : > { %5926 = vmatpush3.msk.msra.mxu0 %vm2352_vm6, %v2503_v62  ;;  %5927 = vmatprep.mubr.msk.f32.mxu0 %vm6628_vm1, %v6629_v13 }
 0xa00   : > { %6220 = vmatprep.subr.bf16.mxu0 %v6627_v10 }
 0xa5e   : > { %v2268_v1 = vpop.xlane.xlu0 %2267 }
 0xa5f   : > { %v2276_v61 = vmax.f32 %v2268_v1, %v2255_v63 }
 0xa61   : > { %v2280_v2 = vsub.f32 %v2255_v63, %v2276_v61  ;;  %v2292_v3 = vsub.f32 %v2071_v44, %v2276_v61 }
 0xa62   : > { %v2271_v4 = vpop.xlane.xlu0 %2270 }
 0xa63   : > { %v2297_v5 = vmul.f32 1.442695, %v2292_v3  ;;  %v2277_v6 = vmax.f32 %v2271_v4, %v7147_v53  ;;  %v2285_v38 = vmul.f32 1.442695, %v2280_v2  ;;  %v5458_v3 = vld [vmem:[%s7929_s14 + $0x3] ss:$0 sm:$0xff] }
 0xa65   : > { %v2293_v7 = vsub.f32 %v2145_v47, %v2277_v6  ;;  %6438 = vpow2.f32 %v2297_v5  ;;  %v2281_v39 = vsub.f32 %v7147_v53, %v2277_v6  ;;  %v5456_v53 = vld [vmem:[%s7929_s14 + $0x1] ss:$0 sm:$0xff]  ;;  %s7934_s14 = sld [smem:[#allocation17_spill]] }
 0xa66   : > { %v2274_v8 = vpop.xlane.xlu0 %2273 }
 0xa67   : > { %v2299_v9 = vmul.f32 1.442695, %v2293_v7  ;;  %v2278_v11 = vmax.f32 %v2274_v8, %v7149_v54  ;;  %v2287_v41 = vmul.f32 1.442695, %v2281_v39  ;;  %v2782_v39 = vld [vmem:[%s7853_s16 + $0x20] sm:$0xff] }
 0xa69   : > { %v2294_v12 = vsub.f32 %v2219_v50, %v2278_v11  ;;  %6440 = vpow2.f32 %v2299_v9  ;;  %v2282_v42 = vsub.f32 %v7149_v54, %v2278_v11  ;;  %v6221_v50 = vpack.c.bf16 %v1745_v49, %v1744_v0  ;;  %v1746_v54 = vld [vmem:[%s7930_s12 + $0x10] sm:$0xff] }
 0xa6a   : > { %v2426_v14 = vpop.permute.xlu0 %2425  ;;  %v6224_v56 = vpack.c.bf16 %v1747_v55, %v1746_v54 }
 0xa6b   : > { %v2301_v15 = vmul.f32 1.442695, %v2294_v12  ;;  %5921 = vmatpush3.msk.msra.mxu1 %vm2352_vm6, %v2426_v14  ;;  %v2289_v43 = vmul.f32 1.442695, %v2282_v42 }
 0xa6c   : > { %5930 = vmatprep.subr.mxu1 %v6629_v13 }
 0xa6d   : > { %6442 = vpow2.f32 %v2301_v15 }
 0xa6e   : > { %6444 = vpow2.f32 %v2283_v25 }
 0xa6f   : > { %v6439_v16 = vpop.eup %6438 }
 0xa70   : > { %5923 = vmatmul.mubr.msk.f32.vlgmr.msra.gmra.mrb[16].mxu1 %vm2262_vm7, %v6439_v16  ;;  %v2306_v18 = vsel %vm2262_vm7, %v6439_v16, 0.0 }
 0xa71   : > { %5931 = vmatpush3.msk.msra.mxu1 %vm2352_vm6, %v2580_v17  ;;  %2307 = vadd.xlane.f32.xlu0 %v2306_v18 }
 0xa72   : > { %5932 = vmatprep.mubr.msk.f32.mxu1 %vm6628_vm1, %v6629_v13 }
 0xa73   : > { %v6441_v19 = vpop.eup %6440 }
 0xa74   : > { %5928 = vmatmul.mubr.msk.f32.vlgmr.msra.gmra.mrb[20].mxu0 %vm2262_vm7, %v6441_v19  ;;  %v2309_v20 = vsel %vm2262_vm7, %v6441_v19, 0.0 }
 0xa75   : > { %2310 = vadd.xlane.f32.xlu1 %v2309_v20  ;;  %5943 = vmatprep.mubr.msk.f32.mxu0 %vm6628_vm1, %v6629_v13 }
 0xa76   : > { %6222 = vmatpush3.bf16.msra.mxu0 %v6221_v50 }
 0xa77   : > { %v6443_v21 = vpop.eup %6442  ;;  %6223 = vmatprep.subr.bf16.mxu0 %v6627_v10 }
 0xa78   : > { %5933 = vmatmul.mubr.msk.f32.vlgmr.msra.gmra.mrb[18].mxu1 %vm2262_vm7, %v6443_v21  ;;  %v2312_v22 = vsel %vm2262_vm7, %v6443_v21, 0.0  ;;  %v6445_v26 = vpop.eup %6444 }
 0xa79   : > { %2313 = vadd.xlane.f32.xlu0 %v2312_v22  ;;  %2857 = vmatprep.mubr.f32.mxu1 %v6629_v13  ;;  %v2343_v28 = vmul.f32 %v6445_v26, %v5455_v27 }
 0xa7a   : > { %6225 = vmatpush3.bf16.msra.mxu0 %v6224_v56 }
 0xa7b   : > { %6238 = vmatprep.subr.bf16.mxu0 %v6627_v10 }
 0xa7d   : > { %2304 = vadd.xlane.f32.xlu0 %v2303_v23 }
 0xad1   : > { %v2421_v29 = vpop.f32.mrb[18].mxu0 }
 0xad2   : > { %v2656_v30 = vadd.f32 %v2421_v29, %v2343_v28  ;;  %v5919_v31 = vpop.f32.mrb[19].mxu0 }
 0xad3   : > { %v2779_v31 = vld [vmem:[%s7853_s16 + $0x8] sm:$0xff] }
 0xafe   : > { %v2308_v32 = vpop.xlane.xlu0 %2307 }
 0xb02   : > { %v2311_v46 = vpop.xlane.xlu1 %2310 }
 0xb06   : > { %v2314_v33 = vpop.xlane.xlu0 %2313 }
 0xb0a   : > { %v2305_v34 = vpop.xlane.xlu0 %2304 }
 0xb0b   : > { %v2315_v35 = vadd.f32 %v6445_v26, %v2305_v34  ;;  %v2780_v34 = vld [vmem:[%s7853_s16 + $0x10] sm:$0xff] }
 0xb0d   : > { %6446 = vrcp.f32 %v2315_v35 }
 0xb0e   : > { %6448 = vpow2.f32 %v2285_v38 }
 0xb0f   : > { %6450 = vpow2.f32 %v2287_v41  ;;  %v2784_v41 = vld [vmem:[%s7853_s16 + $0x30] sm:$0xff] }
 0xb10   : > { %6452 = vpow2.f32 %v2289_v43  ;;  %v6232_v42 = vpack.c.bf16 %v2784_v41, %v2782_v39  ;;  %v2787_v43 = vld [vmem:[%s7853_s16 + $0x48] sm:$0xff] }
 0xb17   : > { %v6447_v36 = vpop.eup %6446 }
 0xb18   : > { %v2661_v37 = vmul.f32 %v6447_v36, %v2656_v30  ;;  %v6449_v44 = vpop.eup %6448  ;;  %v2783_v36 = vld [vmem:[%s7853_s16 + $0x28] sm:$0xff] }
 0xb19   : > { %v2316_v45 = vadd.f32 %v6449_v44, %v2308_v32  ;;  %v6451_v47 = vpop.eup %6450  ;;  %v2344_v57 = vmul.f32 %v6449_v44, %v5456_v53  ;;  %v2789_v44 = vld [vmem:[%s7853_s16 + $0x58] sm:$0xff] }
 0xb1a   : > { %v2317_v48 = vadd.f32 %v6451_v47, %v2311_v46  ;;  %v6453_v51 = vpop.eup %6452  ;;  %v2345_v61 = vmul.f32 %v6451_v47, %v5457_v59  ;;  %v2786_v46 = vld [vmem:[%s7853_s16 + $0x40] sm:$0xff]  ;;  %v2788_v47 = vld [vmem:[%s7853_s16 + $0x50] sm:$0xff] }
 0xb1b   : > { %6454 = vrcp.f32 %v2316_v45  ;;  %v2318_v52 = vadd.f32 %v6453_v51, %v2314_v33  ;;  %v2346_v8 = vmul.f32 %v6453_v51, %v5458_v3  ;;  %v2778_v33 = vld [vmem:[%s7853_s16] sm:$0xff]  ;;  %v6234_v45 = vpack.c.bf16 %v2789_v44, %v2787_v43 }
 0xb1c   : > { %6456 = vrcp.f32 %v2317_v48  ;;  %v6228_v35 = vpack.c.bf16 %v2780_v34, %v2778_v33  ;;  %v6236_v48 = vpack.c.bf16 %v2788_v47, %v2786_v46  ;;  %v5470_v34 = vld [vmem:[%s7854_s17] ss:$0 sm:$0xff]  ;;  %v5472_v47 = vld [vmem:[%s7920_s29 + $0x30] sm:$0xff] }
 0xb1d   : > { %6458 = vrcp.f32 %v2318_v52  ;;  %v5468_v52 = vld [vmem:[%s7852_s15] ss:$0 sm:$0xff] }
 0xb25   : > { %v6455_v63 = vpop.eup %6454 }
 0xb26   : > { %v6457_v6 = vpop.eup %6456 }
 0xb27   : > { %v6459_v14 = vpop.eup %6458 }
 0xb43   : > { %v2498_v58 = vpop.f32.mrb[16].mxu1 }
 0xb44   : > { %v2657_v60 = vadd.f32 %v2498_v58, %v2344_v57  ;;  %v5924_v62 = vpop.f32.mrb[17].mxu1 }
 0xb46   : > { %v2663_v1 = vmul.f32 %v6455_v63, %v2657_v60 }
 0xb47   : > { %v2575_v2 = vpop.f32.mrb[20].mxu0 }
 0xb48   : > { %v2658_v4 = vadd.f32 %v2575_v2, %v2345_v61  ;;  %2669 = vrot.lane.b32.xlu1 %v2663_v1, %s7931_s1  ;;  %v5929_v5 = vpop.f32.mrb[21].mxu0  ;;  %v2890_v1 = vld [vmem:[%s7855_s18] sm:$0xff]  ;;  %v2891_v61 = vld [vmem:[%s7855_s18 + $0x8] sm:$0xff]  ;;  %v2892_v2 = vld [vmem:[%s7855_s18 + $0x10] sm:$0xff] }
 0xb49   : > { %v6239_v3 = vpack.c.bf16 %v2891_v61, %v2890_v1  ;;  %v5480_v61 = vld [vmem:[%s7842_s5 + $0x40] sm:$0xff] }
 0xb4a   : > { %v2665_v7 = vmul.f32 %v6457_v6, %v2658_v4  ;;  %v2893_v4 = vld [vmem:[%s7855_s18 + $0x18] sm:$0xff]  ;;  %v2894_v6 = vld [vmem:[%s7855_s18 + $0x20] sm:$0xff] }
 0xb4b   : > { %v2652_v9 = vpop.f32.mrb[18].mxu1  ;;  %v6242_v5 = vpack.c.bf16 %v2893_v4, %v2892_v2  ;;  %v5481_v2 = vld [vmem:[%s7842_s5 + $0x48] sm:$0xff]  ;;  %v5482_v4 = vld [vmem:[%s7842_s5 + $0x50] sm:$0xff] }
 0xb4c   : > { %v2659_v11 = vadd.f32 %v2652_v9, %v2346_v8  ;;  %v5934_v12 = vpop.f32.mrb[19].mxu1  ;;  %2673 = vrot.lane.b32.xlu0 %v2665_v7, %s7932_s28  ;;  %v2895_v7 = vld [vmem:[%s7855_s18 + $0x28] sm:$0xff] }
 0xb4d   : > { %v6245_v8 = vpack.c.bf16 %v2895_v7, %v2894_v6 }
 0xb4e   : > { %v2667_v15 = vmul.f32 %v6459_v14, %v2659_v11 }
 0xb50   : > { %2677 = vrot.lane.b32.xlu1 %v2667_v15, %s7933_s26  ;;  %v2896_v15 = vld [vmem:[%s7855_s18 + $0x30] sm:$0xff] }
 0xbba   : > { %v2670_v16 = vpop.permute.xlu1 %2669 }
 0xbbb   : > { %v2680_v18 = vsel %vm882_vm2, %v2661_v37, %v2670_v16  ;;  %v2785_v37 = vld [vmem:[%s7853_s16 + $0x38] sm:$0xff] }
 0xbbc   : > { %v6230_v38 = vpack.c.bf16 %v2785_v37, %v2783_v36  ;;  %v2897_v16 = vld [vmem:[%s7855_s18 + $0x38] sm:$0xff] }
 0xbbe   : > { %v2674_v17 = vpop.permute.xlu0 %2673 }
 0xbbf   : > { %v2681_v19 = vsel %vm1632_vm3, %v2680_v18, %v2674_v17  ;;  %v6248_v17 = vpack.c.bf16 %v2897_v16, %v2896_v15  ;;  %v2898_v18 = vld [vmem:[%s7855_s18 + $0x40] sm:$0xff] }
 0xbc2   : > { %v2678_v20 = vpop.permute.xlu1 %2677 }
 0xbc3   : > { %v2682_v21 = vsel %vm1634_vm4, %v2681_v19, %v2678_v20  ;;  %v2899_v19 = vld [vmem:[%s7855_s18 + $0x48] sm:$0xff] }
 0xbc4   : > { %5944 = vmatmul.mubr.msk.f32.vlgmr.msra.gmra.mrb[22].mxu0 %vm1636_vm5, %v2682_v21  ;;  %v6251_v20 = vpack.c.bf16 %v2899_v19, %v2898_v18  ;;  %v2900_v21 = vld [vmem:[%s7855_s18 + $0x50] sm:$0xff] }
 0xbc5   : > { %5978 = vmatprep.mubr.msk.f32.mxu0 %vm6628_vm1, %v6629_v13  ;;  %6240 = vmatpush3.bf16.msra.mxu0 %v6239_v3  ;;  %v6275_v3 = vpack.c.bf16 %v5481_v2, %v5480_v61 }
 0xbc6   : > { %6241 = vmatprep.subr.bf16.mxu0 %v6627_v10 }
 0xbc9   : > { %6243 = vmatpush3.bf16.msra.mxu0 %v6242_v5  ;;  %v5483_v5 = vld [vmem:[%s7842_s5 + $0x58] sm:$0xff] }
 0xbca   : > { %6244 = vmatprep.subr.bf16.mxu0 %v6627_v10  ;;  %v6278_v6 = vpack.c.bf16 %v5483_v5, %v5482_v4 }
 0xbcd   : > { %6246 = vmatpush3.bf16.msra.mxu0 %v6245_v8 }
 0xbce   : > { %6247 = vmatprep.subr.bf16.mxu0 %v6627_v10 }
 0xbd1   : > { %6249 = vmatpush3.bf16.msra.mxu0 %v6248_v17  ;;  %v5507_v17 = vld [vmem:[%s7844_s7 + $0x5] ss:$0 sm:$0xff] }
 0xbd2   : > { %6250 = vmatprep.subr.bf16.mxu0 %v6627_v10 }
 0xbd5   : > { %6252 = vmatpush3.bf16.msra.mxu0 %v6251_v20 }
 0xbd6   : > { %6253 = vmatprep.subr.bf16.mxu0 %v6627_v10 }
 0xc97   : > { %v2752_v22 = vpop.f32.mrb[22].mxu0 }
 0xc98   : > { %v7213_v23 = vadd.f32 %v2752_v22, %v7021_v40  ;;  %v5945_v24 = vpop.f32.mrb[23].mxu0  ;;  %v2781_v40 = vld [vmem:[%s7853_s16 + $0x18] sm:$0xff] }
 0xc99   : > { %v6226_v32 = vpack.c.bf16 %v2781_v40, %v2779_v31  ;;  %v2901_v22 = vld [vmem:[%s7855_s18 + $0x58] sm:$0xff] }
 0xc9a   : > { %v2758_v25 = vsel %vm675_vm0, %v7213_v23, 0.0  ;;  %v6254_v24 = vpack.c.bf16 %v2901_v22, %v2900_v21 }
 0xc9b   : > { %2759 = vadd.xlane.f32.xlu1 %v2758_v25  ;;  %6227 = vmatprep.subr.bf16.mxu1 %v6226_v32  ;;  %v2902_v25 = vld [vmem:[%s7855_s18 + $0x60] sm:$0xff] }
 0xc9c   : > { %6229 = vmatpush1.bf16.msra.mxu1 %v6228_v35  ;;  %6255 = vmatpush3.bf16.msra.mxu0 %v6254_v24  ;;  %v5508_v24 = vld [vmem:[%s7844_s7 + $0x6] ss:$0 sm:$0xff] }
 0xc9d   : > { %6231 = vmatprep.subr.bf16.mxu1 %v6230_v38  ;;  %6256 = vmatprep.subr.bf16.mxu0 %v6627_v10 }
 0xca0   : > { %6233 = vmatpush1.bf16.msra.mxu1 %v6232_v42 }
 0xca1   : > { %6235 = vmatprep.subr.bf16.mxu1 %v6234_v45 }
 0xca4   : > { %6237 = vmatpush1.bf16.msra.mxu1 %v6236_v48 }
 0xca5   : > { %6262 = vmatprep.subr.bf16.mxu1 %v6627_v10 }
 0xd28   : > { %v2760_v26 = vpop.xlane.xlu1 %2759 }
 0xd29   : > { %v2761_v27 = vmul.f32 0.020833334, %v2760_v26  ;;  %v2903_v26 = vld [vmem:[%s7855_s18 + $0x68] sm:$0xff] }
 0xd2b   : > { %v2762_v28 = vsub.f32 %v7213_v23, %v2761_v27  ;;  %v6257_v27 = vpack.c.bf16 %v2903_v26, %v2902_v25 }
 0xd2d   : > { %v2763_v29 = vmul.f32 %v2762_v28, %v2762_v28  ;;  %6258 = vmatpush3.bf16.msra.mxu0 %v6257_v27 }
 0xd2e   : > { %6259 = vmatprep.subr.bf16.mxu0 %v6627_v10 }
 0xd2f   : > { %v2764_v30 = vsel %vm675_vm0, %v2763_v29, 0.0  ;;  %v2905_v29 = vld [vmem:[%s7855_s18 + $0x78] sm:$0xff] }
 0xd30   : > { %2765 = vadd.xlane.f32.xlu0 %v2764_v30 }
 0xdbd   : > { %v2766_v0 = vpop.xlane.xlu0 %2765 }
 0xdbe   : > { %v2767_v49 = vmul.f32 0.020833334, %v2766_v0  ;;  %v5474_v0 = vld [vmem:[%s7920_s29 + $0x40] sm:$0xff] }
 0xdc0   : > { %v2768_v50 = vadd.f32 1e-05, %v2767_v49  ;;  %v5475_v49 = vld [vmem:[%s7920_s29 + $0x48] sm:$0xff] }
 0xdc2   : > { %6460 = vrsqrt.f32 %v2768_v50  ;;  %v6266_v50 = vpack.c.bf16 %v5475_v49, %v5474_v0 }
 0xdcc   : > { %v6461_v51 = vpop.eup %6460 }
 0xdcd   : > { %v2770_v53 = vmul.f32 %v6461_v51, %v2762_v28  ;;  %v2904_v28 = vld [vmem:[%s7855_s18 + $0x70] sm:$0xff] }
 0xdce   : > { %v6260_v30 = vpack.c.bf16 %v2905_v29, %v2904_v28  ;;  %v5476_v51 = vld [vmem:[%s7920_s29 + $0x50] sm:$0xff]  ;;  %v5509_v29 = vld [vmem:[%s7844_s7 + $0x7] ss:$0 sm:$0xff] }
 0xdcf   : > { %v2777_v54 = vmul.f32 %v5468_v52, %v2770_v53  ;;  %v5477_v52 = vld [vmem:[%s7920_s29 + $0x58] sm:$0xff] }
 0xdd0   : > { %6261 = vmatpush3.bf16.msra.mxu0 %v6260_v30  ;;  %v6269_v53 = vpack.c.bf16 %v5477_v52, %v5476_v51 }
 0xdd1   : > { %5469 = vmatmul.mubr.msk.f32.vlgmr.msra.gmra.mrb[20].mxu1 %vm675_vm0, %v2777_v54  ;;  %6016 = vmatprep.subr.mxu0 %v6629_v13 }
 0xdd2   : > { %5993 = vmatprep.mubr.msk.f32.mxu1 %vm6628_vm1, %v6629_v13 }
 0xea4   : > { %v2859_v55 = vpop.f32.mrb[20].mxu1 }
 0xea5   : > { %v2865_v56 = vmul.f32 0.70710677, %v2859_v55  ;;  %v2861_v57 = vpop.f32.mrb[21].mxu1  ;;  %v2864_v59 = vmul.f32 0.5, %v2859_v55 }
 0xea7   : > { %6462 = verf.f32 %v2865_v56 }
 0xeb1   : > { %v6463_v58 = vpop.eup %6462 }
 0xeb2   : > { %v2867_v60 = vadd.f32 1.0, %v6463_v58  ;;  %v5479_v58 = vld [vmem:[%s7842_s5 + $0x38] sm:$0xff] }
 0xeb4   : > { %v2868_v62 = vmul.f32 %v2867_v60, %v2864_v59  ;;  %v5471_v60 = vld [vmem:[#allocation2 + $0x1] ss:$0 sm:$0xff] }
 0xeb6   : > { %v2869_v63 = vmul.f32 %v2868_v62, %v2861_v57  ;;  %v5478_v57 = vld [vmem:[%s7842_s5 + $0x30] sm:$0xff] }
 0xeb8   : > { %2871 = vadd.xlane.f32.xlu0 %v2869_v63 }
 0xf45   : > { %v2872_v9 = vpop.xlane.xlu0 %2871 }
 0xf46   : > { %v2874_v11 = vmul.f32 0.0078125, %v2872_v9 }
 0xf48   : > { %v2875_v12 = vsub.f32 %v2869_v63, %v2874_v11  ;;  %v6272_v63 = vpack.c.bf16 %v5479_v58, %v5478_v57 }
 0xf4a   : > { %v2876_v14 = vmul.f32 %v2875_v12, %v2875_v12 }
 0xf4c   : > { %2877 = vadd.xlane.f32.xlu1 %v2876_v14  ;;  %v5506_v14 = vld [vmem:[%s7844_s7 + $0x4] ss:$0 sm:$0xff] }
 0xfd9   : > { %v2878_v31 = vpop.xlane.xlu1 %2877 }
 0xfda   : > { %v2879_v40 = vmul.f32 0.0078125, %v2878_v31 }
 0xfdc   : > { %v2880_v32 = vadd.f32 1e-05, %v2879_v40 }
 0xfde   : > { %6464 = vrsqrt.f32 %v2880_v32 }
 0xfe8   : > { %v6465_v33 = vpop.eup %6464 }
 0xfe9   : > { %v2882_v35 = vmul.f32 %v6465_v33, %v2875_v12 }
 0xfeb   : > { %v2889_v36 = vmul.f32 %v5470_v34, %v2882_v35 }
 0xfed   : > { %5979 = vmatmul.mubr.f32.vlgmr.msra.gmra.mrb[24].mxu0 %v2889_v36 }
 0xfee   : > { %6018 = vmatprep.mubr.msk.f32.mxu0 %vm6628_vm1, %v6629_v13 }
0x10c0   : > { %v2972_v37 = vpop.f32.mrb[24].mxu0 }
0x10c1   : > { %v7324_v38 = vadd.f32 %v2972_v37, %v7213_v23  ;;  %v5980_v39 = vpop.f32.mrb[25].mxu0  ;;  %v5473_v23 = vld [vmem:[%s7920_s29 + $0x38] sm:$0xff] }
0x10c2   : > { %v6263_v48 = vpack.c.bf16 %v5473_v23, %v5472_v47 }
0x10c3   : > { %v2979_v41 = vsel %vm675_vm0, %v7324_v38, 0.0 }
0x10c4   : > { %2980 = vadd.xlane.f32.xlu0 %v2979_v41  ;;  %6264 = vmatpush3.bf16.msra.mxu1 %v6263_v48 }
0x10c5   : > { %6265 = vmatprep.subr.bf16.mxu1 %v6627_v10 }
0x10c8   : > { %6267 = vmatpush3.bf16.msra.mxu1 %v6266_v50 }
0x10c9   : > { %6268 = vmatprep.subr.bf16.mxu1 %v6627_v10 }
0x10cc   : > { %6270 = vmatpush3.bf16.msra.mxu1 %v6269_v53 }
0x10cd   : > { %6271 = vmatprep.subr.bf16.mxu1 %v6627_v10 }
0x1151   : > { %v2981_v42 = vpop.xlane.xlu0 %2980 }
0x1152   : > { %v2982_v43 = vmul.f32 0.020833334, %v2981_v42 }
0x1154   : > { %v2983_v44 = vsub.f32 %v7324_v38, %v2982_v43 }
0x1156   : > { %v2984_v45 = vmul.f32 %v2983_v44, %v2983_v44 }
0x1158   : > { %v2985_v46 = vsel %vm675_vm0, %v2984_v45, 0.0 }
0x1159   : > { %2986 = vadd.xlane.f32.xlu1 %v2985_v46 }
0x11e6   : > { %v2987_v54 = vpop.xlane.xlu1 %2986 }
0x11e7   : > { %v2988_v55 = vmul.f32 0.020833334, %v2987_v54 }
0x11e9   : > { %v2989_v56 = vadd.f32 1e-05, %v2988_v55 }
0x11eb   : > { %6466 = vrsqrt.f32 %v2989_v56 }
0x11f5   : > { %v6467_v59 = vpop.eup %6466 }
0x11f6   : > { %v2991_v62 = vmul.f32 %v6467_v59, %v2983_v44 }
0x11f8   : > { %v2998_v1 = vmul.f32 %v5471_v60, %v2991_v62 }
0x11fa   : > { %5994 = vmatmul.mubr.msk.f32.vlgmr.msra.gmra.mrb[22].mxu1 %vm675_vm0, %v2998_v1 }
0x11fb   : > { %6273 = vmatpush3.bf16.msra.mxu1 %v6272_v63  ;;  %6008 = vmatprep.mubr.msk.f32.mxu1 %vm6628_vm1, %v6629_v13 }
0x11fc   : > { %6274 = vmatprep.subr.bf16.mxu1 %v6627_v10 }
0x11ff   : > { %6276 = vmatpush3.bf16.msra.mxu1 %v6275_v3 }
0x1200   : > { %6277 = vmatprep.subr.bf16.mxu1 %v6627_v10 }
0x1203   : > { %6279 = vmatpush3.bf16.msra.mxu1 %v6278_v6 }
0x1204   : > { %6011 = vmatprep.subr.mxu1 %v6629_v13 }
0x1206   : > { %6009 = vmatmul.mubr.msk.f32.vlgmr.msra.gmra.mrb[24].mxu1 %vm675_vm0, %v2998_v1 }
0x1207   : > { %6013 = vmatprep.mubr.msk.f32.mxu1 %vm6628_vm1, %v6629_v13 }
0x12cd   : > { %v3097_v7 = vpop.f32.mrb[22].mxu1 }
0x12ce   : > { %v3101_v8 = vmul.f32 0.35355338, %v3097_v7  ;;  %v5995_v9 = vpop.f32.mrb[23].mxu1 }
0x12d0   : > { %3173 = vrot.lane.b32.xlu1 %v3101_v8, %s7923_s30  ;;  %v3509_v15 = vmul.f32 %v5506_v14, %v3101_v8 }
0x12d2   : > { %v3513_v16 = vsel %vm882_vm2, %v3509_v15, 0.0 }
0x12d9   : > { %v3168_v11 = vpop.f32.mrb[24].mxu1 }
0x12da   : > { %3185 = vrot.lane.b32.xlu1 %v3168_v11, %s7925_s23  ;;  %3183 = vrot.lane.b32.xlu0 %v3168_v11, %s7923_s30  ;;  %v6010_v12 = vpop.f32.mrb[25].mxu1 }
0x12db   : > { %6012 = vmatpush3.xpose.msk.msra.mxu1 %vm882_vm2, %v3168_v11 }
0x12dc   : > { %6021 = vmatprep.subr.mxu1 %v6629_v13 }
0x12de   : > { %6014 = vmatmul.mubr.msk.f32.vlgmr.msra.gmra.mrb[26].mxu1 %vm882_vm2, %v3101_v8  ;;  %3176 = vrot.lane.b32.xlu1 %v3101_v8, %s7925_s23 }
0x12df   : > { %3187 = vrot.lane.b32.xlu0 %v3168_v11, %s7924_s3  ;;  %6023 = vmatprep.mubr.msk.f32.mxu1 %vm6628_vm1, %v6629_v13 }
0x12e3   : > { %3179 = vrot.lane.b32.xlu0 %v3101_v8, %s7924_s3 }
0x1302   : > { %3514 = vadd.xlane.f32.xlu1 %v3513_v16 }
0x1342   : > { %v3174_v18 = vpop.permute.xlu1 %3173 }
0x1343   : > { %v3510_v19 = vmul.f32 %v5507_v17, %v3174_v18 }
0x1345   : > { %v3516_v20 = vsel %vm882_vm2, %v3510_v19, 0.0 }
0x1346   : > { %3517 = vadd.xlane.f32.xlu0 %v3516_v20 }
0x134c   : > { %v3186_v21 = vpop.permute.xlu1 %3185  ;;  %v3184_v22 = vpop.permute.xlu0 %3183 }
0x134d   : > { %6017 = vmatpush3.xpose.msk.msra.mxu0 %vm882_vm2, %v3184_v22  ;;  %3685 = vrot.lane.b32.xlu1 %v3184_v22, %s7926_s24 }
0x134e   : > { %6022 = vmatpush3.xpose.msk.msra.mxu1 %vm882_vm2, %v3186_v21  ;;  %6026 = vmatprep.subr.mxu0 %v6629_v13 }
0x134f   : > { %6031 = vmatprep.subr.mxu1 %v6629_v13 }
0x1350   : > { %v3177_v25 = vpop.permute.xlu1 %3176  ;;  %6019 = vmatmul.mubr.msk.f32.vlgmr.msra.gmra.mrb[26].mxu0 %vm882_vm2, %v3174_v18  ;;  %v5510_v18 = vld [vmem:[%s7845_s8 + $0x4] ss:$0 sm:$0xff] }
0x1351   : > { %v3511_v26 = vmul.f32 %v5508_v24, %v3177_v25  ;;  %v3188_v27 = vpop.permute.xlu0 %3187  ;;  %6024 = vmatmul.mubr.msk.f32.vlgmr.msra.gmra.mrb[28].mxu1 %vm882_vm2, %v3177_v25  ;;  %6028 = vmatprep.mubr.msk.f32.mxu0 %vm6628_vm1, %v6629_v13 }
0x1352   : > { %6027 = vmatpush3.xpose.msk.msra.mxu0 %vm882_vm2, %v3188_v27  ;;  %6033 = vmatprep.mubr.msk.f32.mxu1 %vm6628_vm1, %v6629_v13 }
0x1353   : > { %v3519_v28 = vsel %vm882_vm2, %v3511_v26, 0.0  ;;  %6036 = vmatprep.subr.mxu0 %v6629_v13 }
0x1354   : > { %3520 = vadd.xlane.f32.xlu0 %v3519_v28 }
0x1355   : > { %v3180_v30 = vpop.permute.xlu0 %3179 }
0x1356   : > { %v3512_v31 = vmul.f32 %v5509_v29, %v3180_v30  ;;  %6029 = vmatmul.mubr.msk.f32.vlgmr.msra.gmra.mrb[28].mxu0 %vm882_vm2, %v3180_v30 }
0x1357   : > { %6038 = vmatprep.mubr.msk.f32.mxu0 %vm6628_vm1, %v6629_v13 }
0x1358   : > { %v3522_v40 = vsel %vm882_vm2, %v3512_v31, 0.0 }
0x1359   : > { %3523 = vadd.xlane.f32.xlu0 %v3522_v40 }
0x138f   : > { %v7422_v35 = vpop.xlane.xlu1 %3514 }
0x13b1   : > { %v3259_v32 = vpop.f32.mrb[26].mxu1 }
0x13b2   : > { %v6015_v33 = vpop.f32.mrb[27].mxu1  ;;  %v3525_v34 = vsel %vm882_vm2, %v3259_v32, -inf }
0x13b3   : > { %3526 = vmax.xlane.f32.xlu0 %v3525_v34 }
0x13bf   : > { %v3686_v36 = vpop.permute.xlu1 %3685 }
0x13c0   : > { %6037 = vmatpush3.msra.mxu0 %v3686_v36 }
0x13c1   : > { %6046 = vmatprep.subr.mxu0 %v6629_v13 }
0x13c9   : > { %3609 = vrot.lane.b32.xlu0 %v3168_v11, %s7926_s24 }
0x13cd   : > { %3837 = vrot.lane.b32.xlu0 %v3188_v27, %s7926_s24 }
0x13d3   : > { %v7430_v23 = vpop.xlane.xlu0 %3517 }
0x13e1   : > { %v7432_v48 = vpop.xlane.xlu0 %3520 }
0x13e6   : > { %v7434_v0 = vpop.xlane.xlu0 %3523 }
0x1423   : > { %v3333_v37 = vpop.f32.mrb[26].mxu0 }
0x1424   : > { %v6020_v39 = vpop.f32.mrb[27].mxu0  ;;  %v3407_v41 = vpop.f32.mrb[28].mxu1  ;;  %v3528_v42 = vsel %vm882_vm2, %v3333_v37, -inf }
0x1425   : > { %v6025_v43 = vpop.f32.mrb[29].mxu1  ;;  %3529 = vmax.xlane.f32.xlu1 %v3528_v42  ;;  %v3531_v44 = vsel %vm882_vm2, %v3407_v41, -inf  ;;  %v5485_v42 = vld [vmem:[%s7843_s6 + $0x28] sm:$0xff] }
0x1429   : > { %v3481_v45 = vpop.f32.mrb[28].mxu0  ;;  %3532 = vmax.xlane.f32.xlu1 %v3531_v44 }
0x142a   : > { %v6030_v46 = vpop.f32.mrb[29].mxu0  ;;  %v3534_v47 = vsel %vm882_vm2, %v3481_v45, -inf }
0x142d   : > { %3535 = vmax.xlane.f32.xlu1 %v3534_v47  ;;  %v5511_v47 = vld [vmem:[%s7845_s8 + $0x5] ss:$0 sm:$0xff] }
0x143e   : > { %3761 = vrot.lane.b32.xlu1 %v3186_v21, %s7926_s24 }
0x1440   : > { %v3527_v49 = vpop.xlane.xlu0 %3526 }
0x1441   : > { %v3537_v50 = vmax.f32 %v3527_v49, %v7422_v35 }
0x1443   : > { %v3553_v51 = vsub.f32 %v3259_v32, %v3537_v50  ;;  %v3541_v15 = vsub.f32 %v7422_v35, %v3537_v50 }
0x1444   : > { %v3610_v52 = vpop.permute.xlu0 %3609 }
0x1445   : > { %v3557_v53 = vmul.f32 1.442695, %v3553_v51  ;;  %6032 = vmatpush3.msra.mxu1 %v3610_v52  ;;  %v3545_v16 = vmul.f32 1.442695, %v3541_v15  ;;  %v5512_v51 = vld [vmem:[%s7845_s8 + $0x6] ss:$0 sm:$0xff] }
0x1446   : > { %6041 = vmatprep.subr.mxu1 %v6629_v13 }
0x1447   : > { %6468 = vpow2.f32 %v3557_v53 }
0x1448   : > { %v3838_v6 = vpop.permute.xlu0 %3837 }
0x1451   : > { %v6469_v54 = vpop.eup %6468 }
0x1452   : > { %6034 = vmatmul.mubr.msk.f32.vlgmr.msra.gmra.mrb[30].mxu1 %vm882_vm2, %v6469_v54  ;;  %v3565_v11 = vsel %vm882_vm2, %v6469_v54, 0.0 }
0x1453   : > { %6043 = vmatprep.mubr.msk.f32.mxu1 %vm6628_vm1, %v6629_v13 }
0x14b2   : > { %v3530_v55 = vpop.xlane.xlu1 %3529 }
0x14b3   : > { %v3538_v56 = vmax.f32 %v3530_v55, %v7430_v23 }
0x14b5   : > { %v3554_v57 = vsub.f32 %v3333_v37, %v3538_v56  ;;  %v3542_v29 = vsub.f32 %v7430_v23, %v3538_v56  ;;  %v5486_v23 = vld [vmem:[%s7843_s6 + $0x30] sm:$0xff] }
0x14b6   : > { %v3533_v58 = vpop.xlane.xlu1 %3532 }
0x14b7   : > { %v3559_v59 = vmul.f32 1.442695, %v3554_v57  ;;  %v3539_v60 = vmax.f32 %v3533_v58, %v7432_v48  ;;  %v3547_v30 = vmul.f32 1.442695, %v3542_v29  ;;  %v5513_v58 = vld [vmem:[%s7845_s8 + $0x7] ss:$0 sm:$0xff] }
0x14b8   : > { %v5521_v29 = vld [vmem:[%s7847_s10 + $0x30] sm:$0xff] }
0x14b9   : > { %v3555_v62 = vsub.f32 %v3407_v41, %v3539_v60  ;;  %6470 = vpow2.f32 %v3559_v59  ;;  %v3543_v31 = vsub.f32 %v7432_v48, %v3539_v60  ;;  %v5484_v41 = vld [vmem:[%s7843_s6 + $0x20] sm:$0xff]  ;;  %v5487_v48 = vld [vmem:[%s7843_s6 + $0x38] sm:$0xff] }
0x14ba   : > { %v3536_v63 = vpop.xlane.xlu1 %3535  ;;  %v6281_v44 = vpack.c.bf16 %v5485_v42, %v5484_v41  ;;  %v5526_v41 = vld [vmem:[%s7847_s10 + $0x58] sm:$0xff] }
0x14bb   : > { %v3561_v1 = vmul.f32 1.442695, %v3555_v62  ;;  %v3540_v61 = vmax.f32 %v3536_v63, %v7434_v0  ;;  %v3549_v40 = vmul.f32 1.442695, %v3543_v31 }
0x14bd   : > { %v3556_v2 = vsub.f32 %v3481_v45, %v3540_v61  ;;  %6472 = vpow2.f32 %v3561_v1  ;;  %v3544_v32 = vsub.f32 %v7434_v0, %v3540_v61  ;;  %v6284_v0 = vpack.c.bf16 %v5487_v48, %v5486_v23 }
0x14be   : > { %v3762_v3 = vpop.permute.xlu1 %3761 }
0x14bf   : > { %v3563_v4 = vmul.f32 1.442695, %v3556_v2  ;;  %6042 = vmatpush3.msra.mxu1 %v3762_v3  ;;  %v3551_v33 = vmul.f32 1.442695, %v3544_v32  ;;  %v5532_v32 = vld [vmem:[%s7848_s11 + $0x58] sm:$0xff] }
0x14c0   : > { %6280 = vmatprep.subr.bf16.mxu1 %v6627_v10 }
0x14c1   : > { %6474 = vpow2.f32 %v3563_v4 }
0x14c2   : > { %6476 = vpow2.f32 %v3545_v16 }
0x14c3   : > { %v6471_v5 = vpop.eup %6470 }
0x14c4   : > { %6039 = vmatmul.mubr.msk.f32.vlgmr.msra.gmra.mrb[30].mxu0 %vm882_vm2, %v6471_v5  ;;  %v3568_v7 = vsel %vm882_vm2, %v6471_v5, 0.0 }
0x14c5   : > { %6047 = vmatpush3.msra.mxu0 %v3838_v6  ;;  %3569 = vadd.xlane.f32.xlu1 %v3568_v7 }
0x14c6   : > { %6048 = vmatprep.mubr.msk.f32.mxu0 %vm6628_vm1, %v6629_v13  ;;  %6286 = vmatprep.subr.bf16.mxu0 %v6627_v10 }
0x14c7   : > { %v6473_v8 = vpop.eup %6472 }
0x14c8   : > { %6044 = vmatmul.mubr.msk.f32.vlgmr.msra.gmra.mrb[32].mxu1 %vm882_vm2, %v6473_v8  ;;  %v3571_v9 = vsel %vm882_vm2, %v6473_v8, 0.0 }
0x14c9   : > { %3572 = vadd.xlane.f32.xlu0 %v3571_v9  ;;  %3566 = vadd.xlane.f32.xlu1 %v3565_v11 }
0x14ca   : > { %6059 = vmatprep.mubr.msk.f32.mxu1 %vm6628_vm1, %v6629_v13  ;;  %6282 = vmatpush3.bf16.msra.mxu1 %v6281_v44 }
0x14cb   : > { %v6475_v12 = vpop.eup %6474  ;;  %6283 = vmatprep.subr.bf16.mxu1 %v6627_v10 }
0x14cc   : > { %6049 = vmatmul.mubr.msk.f32.vlgmr.msra.gmra.mrb[32].mxu0 %vm882_vm2, %v6475_v12  ;;  %v3574_v14 = vsel %vm882_vm2, %v6475_v12, 0.0  ;;  %v6477_v17 = vpop.eup %6476 }
0x14cd   : > { %3575 = vadd.xlane.f32.xlu0 %v3574_v14  ;;  %6074 = vmatprep.mubr.msk.f32.mxu0 %vm6628_vm1, %v6629_v13  ;;  %v3605_v19 = vmul.f32 %v6477_v17, %v5510_v18 }
0x14ce   : > { %6285 = vmatpush3.bf16.msra.mxu1 %v6284_v0 }
0x14cf   : > { %6295 = vmatprep.subr.bf16.mxu1 %v6627_v10 }
0x1525   : > { %v3681_v20 = vpop.f32.mrb[30].mxu1 }
0x1526   : > { %v3913_v21 = vadd.f32 %v3681_v20, %v3605_v19  ;;  %v6035_v22 = vpop.f32.mrb[31].mxu1 }
0x1552   : > { %v3570_v24 = vpop.xlane.xlu1 %3569 }
0x1556   : > { %v3567_v25 = vpop.xlane.xlu1 %3566  ;;  %v3573_v35 = vpop.xlane.xlu0 %3572 }
0x1557   : > { %v3577_v26 = vadd.f32 %v6477_v17, %v3567_v25 }
0x1559   : > { %6478 = vrcp.f32 %v3577_v26  ;;  %v5529_v26 = vld [vmem:[%s7848_s11 + $0x40] sm:$0xff] }
0x155a   : > { %6480 = vpow2.f32 %v3547_v30  ;;  %v3576_v43 = vpop.xlane.xlu0 %3575  ;;  %v5522_v30 = vld [vmem:[%s7847_s10 + $0x38] sm:$0xff] }
0x155b   : > { %6482 = vpow2.f32 %v3549_v40  ;;  %v6287_v31 = vpack.c.bf16 %v5522_v30, %v5521_v29  ;;  %v5531_v40 = vld [vmem:[%s7848_s11 + $0x50] sm:$0xff] }
0x155c   : > { %6484 = vpow2.f32 %v3551_v33  ;;  %v6302_v33 = vpack.c.bf16 %v5532_v32, %v5531_v40 }
0x155d   : > { %6288 = vmatpush3.bf16.msra.mxu0 %v6287_v31 }
0x155e   : > { %6289 = vmatprep.subr.bf16.mxu0 %v6627_v10 }
0x1563   : > { %v6479_v27 = vpop.eup %6478 }
0x1564   : > { %v3918_v28 = vmul.f32 %v6479_v27, %v3913_v21  ;;  %v6481_v34 = vpop.eup %6480  ;;  %v5530_v27 = vld [vmem:[%s7848_s11 + $0x48] sm:$0xff] }
0x1565   : > { %v3578_v36 = vadd.f32 %v6481_v34, %v3570_v24  ;;  %v6483_v37 = vpop.eup %6482  ;;  %v3606_v49 = vmul.f32 %v6481_v34, %v5511_v47  ;;  %v5527_v24 = vld [vmem:[%s7848_s11 + $0x30] sm:$0xff]  ;;  %v5523_v34 = vld [vmem:[%s7847_s10 + $0x40] sm:$0xff] }
0x1566   : > { %v3579_v39 = vadd.f32 %v6483_v37, %v3573_v35  ;;  %v6485_v45 = vpop.eup %6484  ;;  %v3607_v56 = vmul.f32 %v6483_v37, %v5512_v51  ;;  %v5524_v35 = vld [vmem:[%s7847_s10 + $0x48] sm:$0xff]  ;;  %v6526_v37 = vld [vmem:[%s7058_s27] sm:$0x3f] }
0x1567   : > { %6486 = vrcp.f32 %v3578_v36  ;;  %v3580_v46 = vadd.f32 %v6485_v45, %v3576_v43  ;;  %v3608_v1 = vmul.f32 %v6485_v45, %v5513_v58  ;;  %v6290_v36 = vpack.c.bf16 %v5524_v35, %v5523_v34  ;;  %v5520_v47 = vld [vmem:[%s7846_s9 + $0x1] ss:$0 sm:$0xff] }
0x1568   : > { %6488 = vrcp.f32 %v3579_v39  ;;  %v5525_v39 = vld [vmem:[%s7847_s10 + $0x50] sm:$0xff] }
0x1569   : > { %6490 = vrcp.f32 %v3580_v46  ;;  %6291 = vmatpush3.bf16.msra.mxu0 %v6290_v36  ;;  %v6293_v42 = vpack.c.bf16 %v5526_v41, %v5525_v39 }
0x156a   : > { %6292 = vmatprep.subr.bf16.mxu0 %v6627_v10 }
0x156d   : > { %6294 = vmatpush3.bf16.msra.mxu0 %v6293_v42 }
0x156e   : > { %6092 = vmatprep.subr.mxu0 %v6629_v13 }
0x1571   : > { %v6487_v54 = vpop.eup %6486 }
0x1572   : > { %v6489_v62 = vpop.eup %6488 }
0x1573   : > { %v6491_v4 = vpop.eup %6490 }
0x1597   : > { %v3757_v50 = vpop.f32.mrb[30].mxu0 }
0x1598   : > { %v3914_v52 = vadd.f32 %v3757_v50, %v3606_v49  ;;  %v6040_v53 = vpop.f32.mrb[31].mxu0 }
0x159a   : > { %v3920_v55 = vmul.f32 %v6487_v54, %v3914_v52 }
0x159b   : > { %v3833_v57 = vpop.f32.mrb[32].mxu1 }
0x159c   : > { %v3915_v59 = vadd.f32 %v3833_v57, %v3607_v56  ;;  %v6045_v60 = vpop.f32.mrb[33].mxu1  ;;  %3926 = vrot.lane.b32.xlu0 %v3920_v55, %s7931_s1  ;;  %v5555_v55 = vld [vmem:[%s7850_s13 + $0x4] ss:$0 sm:$0xff] }
0x159d   : > { %v5556_v60 = vld [vmem:[%s7850_s13 + $0x5] ss:$0 sm:$0xff] }
0x159e   : > { %v3922_v63 = vmul.f32 %v6489_v62, %v3915_v59  ;;  %v5557_v59 = vld [vmem:[%s7850_s13 + $0x6] ss:$0 sm:$0xff] }
0x159f   : > { %v3909_v61 = vpop.f32.mrb[32].mxu0 }
0x15a0   : > { %v3916_v2 = vadd.f32 %v3909_v61, %v3608_v1  ;;  %3930 = vrot.lane.b32.xlu1 %v3922_v63, %s7932_s28  ;;  %v6050_v3 = vpop.f32.mrb[33].mxu0 }
0x15a2   : > { %v3924_v5 = vmul.f32 %v6491_v4, %v3916_v2  ;;  %v5558_v2 = vld [vmem:[%s7850_s13 + $0x7] ss:$0 sm:$0xff] }
0x15a4   : > { %3934 = vrot.lane.b32.xlu1 %v3924_v5, %s7933_s26 }
0x160e   : > { %v3927_v6 = vpop.permute.xlu0 %3926 }
0x160f   : > { %v3937_v8 = vsel %vm882_vm2, %v3918_v28, %v3927_v6  ;;  %v6299_v28 = vpack.c.bf16 %v5530_v27, %v5529_v26 }
0x1612   : > { %v3931_v7 = vpop.permute.xlu1 %3930 }
0x1613   : > { %v3938_v9 = vsel %vm1632_vm3, %v3937_v8, %v3931_v7 }
0x1616   : > { %v3935_v11 = vpop.permute.xlu1 %3934 }
0x1617   : > { %v3939_v12 = vsel %vm1634_vm4, %v3938_v9, %v3935_v11  ;;  %v6527_v11 = vld [vmem:[%s7934_s14] ss:$0 sm:$0xff]  ;;  %s5607_s14 = sshll.u32 %s7938_s2, 7 }
0x1618   : > { %6060 = vmatmul.mubr.msk.f32.vlgmr.msra.gmra.mrb[34].mxu1 %vm1636_vm5, %v3939_v12 }
0x1619   : > { %6089 = vmatprep.mubr.msk.f32.mxu1 %vm6628_vm1, %v6629_v13 }
0x16eb   : > { %v4009_v14 = vpop.f32.mrb[34].mxu1 }
0x16ec   : > { %v7500_v15 = vadd.f32 %v4009_v14, %v7324_v38  ;;  %v6061_v16 = vpop.f32.mrb[35].mxu1  ;;  %v5528_v38 = vld [vmem:[%s7848_s11 + $0x38] sm:$0xff] }
0x16ed   : > { %v6296_v25 = vpack.c.bf16 %v5528_v38, %v5527_v24 }
0x16ee   : > { %v4016_v17 = vsel %vm675_vm0, %v7500_v15, 0.0 }
0x16ef   : > { %4017 = vadd.xlane.f32.xlu0 %v4016_v17  ;;  %6297 = vmatpush3.bf16.msra.mxu1 %v6296_v25 }
0x16f0   : > { %6298 = vmatprep.subr.bf16.mxu1 %v6627_v10 }
0x16f3   : > { %6300 = vmatpush3.bf16.msra.mxu1 %v6299_v28 }
0x16f4   : > { %6301 = vmatprep.subr.bf16.mxu1 %v6627_v10 }
0x16f7   : > { %6303 = vmatpush3.bf16.msra.mxu1 %v6302_v33 }
0x16f8   : > { %6102 = vmatprep.subr.mxu1 %v6629_v13 }
0x16fa   : > { %6090 = vmatmul.mubr.msk.f32.vlgmr.msra.gmra.mrb[36].mxu1 %vm675_vm0, %v6526_v37 }
0x16fb   : > { %6104 = vmatprep.mubr.msk.f32.mxu1 %vm6628_vm1, %v6629_v13 }
0x177c   : > { %v4018_v18 = vpop.xlane.xlu0 %4017 }
0x177d   : > { %v4019_v19 = vmul.f32 0.020833334, %v4018_v18 }
0x177f   : > { %v4020_v20 = vsub.f32 %v7500_v15, %v4019_v19 }
0x1781   : > { %v4021_v21 = vmul.f32 %v4020_v20, %v4020_v20 }
0x1783   : > { %v4022_v22 = vsel %vm675_vm0, %v4021_v21, 0.0 }
0x1784   : > { %4023 = vadd.xlane.f32.xlu1 %v4022_v22 }
0x17cd   : > { %v4205_v0 = vpop.f32.mrb[36].mxu1 }
0x17ce   : > { %4220 = vrot.lane.b32.xlu0 %v4205_v0, %s7923_s30  ;;  %4224 = vrot.lane.b32.xlu1 %v4205_v0, %s7924_s3  ;;  %v6091_v49 = vpop.f32.mrb[37].mxu1 }
0x17d2   : > { %4222 = vrot.lane.b32.xlu0 %v4205_v0, %s7925_s23 }
0x1811   : > { %v4024_v43 = vpop.xlane.xlu1 %4023 }
0x1812   : > { %v4025_v44 = vmul.f32 0.020833334, %v4024_v43 }
0x1814   : > { %v4026_v45 = vadd.f32 1e-05, %v4025_v44 }
0x1816   : > { %6492 = vrsqrt.f32 %v4026_v45 }
0x1820   : > { %v6493_v46 = vpop.eup %6492 }
0x1821   : > { %v4028_v23 = vmul.f32 %v6493_v46, %v4020_v20 }
0x1823   : > { %v4035_v48 = vmul.f32 %v5520_v47, %v4028_v23 }
0x1825   : > { %6075 = vmatmul.mubr.msk.f32.vlgmr.msra.gmra.mrb[34].mxu0 %vm675_vm0, %v4035_v48 }
0x1826   : > { %6094 = vmatprep.mubr.msk.f32.mxu0 %vm6628_vm1, %v6629_v13  ;;  %6093 = vmatpush3.xpose.msk.msra.mxu0 %vm882_vm2, %v4205_v0 }
0x1827   : > { %6097 = vmatprep.subr.mxu0 %v6629_v13 }
0x1840   : > { %v7563_v50 = vpop.permute.xlu0 %4220  ;;  %v4225_v58 = vpop.permute.xlu1 %4224 }
0x1844   : > { %v4223_v51 = vpop.permute.xlu0 %4222 }
0x1845   : > { %6103 = vmatpush3.xpose.msk.msra.mxu1 %vm882_vm2, %v4223_v51 }
0x1846   : > { %6112 = vmatprep.subr.mxu1 %v6629_v13 }
0x18f8   : > { %v4134_v52 = vpop.f32.mrb[34].mxu0 }
0x18f9   : > { %v4138_v53 = vmul.f32 0.35355338, %v4134_v52  ;;  %v6076_v54 = vpop.f32.mrb[35].mxu0 }
0x18fb   : > { %4213 = vrot.lane.b32.xlu0 %v4138_v53, %s7925_s23  ;;  %4210 = vrot.lane.b32.xlu1 %v4138_v53, %s7923_s30  ;;  %v4546_v56 = vmul.f32 %v5555_v55, %v4138_v53  ;;  %s7939_s30 = sld [smem:[#allocation15_spill]]  ;;  %s657_s23 = sand.u32 1, %s7937_s19  }
0x18fc   : > { %6095 = vmatmul.mubr.msk.f32.vlgmr.msra.gmra.mrb[36].mxu0 %vm882_vm2, %v4138_v53  ;;  %s5412_s4 = sshll.u32 %s657_s23, 3 }
0x18fd   : > { %6098 = vmatpush3.xpose.msk.msra.mxu0 %vm882_vm2, %v7563_v50  ;;  %6099 = vmatprep.mubr.msk.f32.mxu0 %vm6628_vm1, %v6629_v13  ;;  %v4550_v57 = vsel %vm882_vm2, %v4546_v56, 0.0 }
0x18fe   : > { %6107 = vmatprep.subr.mxu0 %v6629_v13 }
0x18ff   : > { %4216 = vrot.lane.b32.xlu1 %v4138_v53, %s7924_s3 }
0x1901   : > { %p7942_p9 = scmp.ne.s32.totalorder %s7939_s30, 0 }
0x1903   : > { %4646 = vrot.lane.b32.xlu1 %v4205_v0, %s7926_s24 }
0x191a   : > { %4551 = vadd.xlane.f32.xlu0 %v4550_v57 }
0x196d   : > { %v4214_v62 = vpop.permute.xlu0 %4213  ;;  %v4211_v63 = vpop.permute.xlu1 %4210 }
0x196e   : > { %v4548_v1 = vmul.f32 %v5557_v59, %v4214_v62  ;;  %v4547_v61 = vmul.f32 %v5556_v60, %v4211_v63  ;;  %6100 = vmatmul.mubr.msk.f32.vlgmr.msra.gmra.mrb[38].mxu0 %vm882_vm2, %v4211_v63  ;;  %6105 = vmatmul.mubr.msk.f32.vlgmr.msra.gmra.mrb[38].mxu1 %vm882_vm2, %v4214_v62 }
0x196f   : > { %6108 = vmatpush3.xpose.msk.msra.mxu0 %vm882_vm2, %v4225_v58  ;;  %6109 = vmatprep.mubr.msk.f32.mxu0 %vm6628_vm1, %v6629_v13 }
0x1970   : > { %v4556_v3 = vsel %vm882_vm2, %v4548_v1, 0.0  ;;  %v4553_v4 = vsel %vm882_vm2, %v4547_v61, 0.0  ;;  %6114 = vmatprep.mubr.msk.f32.mxu1 %vm6628_vm1, %v6629_v13  ;;  %6117 = vmatprep.subr.mxu0 %v6629_v13  ;;  %v5559_v1 = vld [vmem:[%s7935_s20 + $0x4] ss:$0 sm:$0xff] }
0x1971   : > { %4557 = vadd.xlane.f32.xlu1 %v4556_v3  ;;  %v4217_v5 = vpop.permute.xlu1 %4216  ;;  %4554 = vadd.xlane.f32.xlu0 %v4553_v4 }
0x1972   : > { %v4549_v6 = vmul.f32 %v5558_v2, %v4217_v5  ;;  %6110 = vmatmul.mubr.msk.f32.vlgmr.msra.gmra.mrb[40].mxu0 %vm882_vm2, %v4217_v5 }
0x1973   : > { %6119 = vmatprep.mubr.msk.f32.mxu0 %vm6628_vm1, %v6629_v13 }
0x1974   : > { %v4559_v7 = vsel %vm882_vm2, %v4549_v6, 0.0 }
0x1975   : > { %4560 = vadd.xlane.f32.xlu1 %v4559_v7  ;;  %v4647_v8 = vpop.permute.xlu1 %4646 }
0x1976   : > { %6113 = vmatpush3.msk.msra.mxu1 %vm2352_vm6, %v4647_v8 }
0x1977   : > { %6122 = vmatprep.subr.mxu1 %v6629_v13 }
0x19a7   : > { %v4552_v31 = vpop.xlane.xlu0 %4551 }
0x19cf   : > { %v4296_v9 = vpop.f32.mrb[36].mxu0 }
0x19d0   : > { %v4297_v12 = vadd.f32 %v6527_v11, %v4296_v9  ;;  %v6096_v14 = vpop.f32.mrb[37].mxu0 }
0x19d2   : > { %v4562_v16 = vsel %vm2262_vm7, %v4297_v12, -inf }
0x19d3   : > { %4563 = vmax.xlane.f32.xlu1 %v4562_v16 }
0x19e4   : > { %4800 = vrot.lane.b32.xlu1 %v4223_v51, %s7926_s24 }
0x19e8   : > { %4877 = vrot.lane.b32.xlu1 %v4225_v58, %s7926_s24 }
0x19fe   : > { %v7613_v29 = vpop.xlane.xlu1 %4557  ;;  %v4555_v37 = vpop.xlane.xlu0 %4554 }
0x1a02   : > { %v7615_v30 = vpop.xlane.xlu1 %4560 }
0x1a41   : > { %v4370_v17 = vpop.f32.mrb[38].mxu0  ;;  %v4444_v18 = vpop.f32.mrb[38].mxu1 }
0x1a42   : > { %v4371_v19 = vadd.f32 %v6527_v11, %v4370_v17  ;;  %v6101_v20 = vpop.f32.mrb[39].mxu0  ;;  %v6106_v21 = vpop.f32.mrb[39].mxu1  ;;  %v4445_v22 = vadd.f32 %v6527_v11, %v4444_v18 }
0x1a44   : > { %v4565_v24 = vsel %vm2262_vm7, %v4371_v19, -inf  ;;  %v4568_v27 = vsel %vm2262_vm7, %v4445_v22, -inf }
0x1a45   : > { %4566 = vmax.xlane.f32.xlu0 %v4565_v24  ;;  %v4518_v38 = vpop.f32.mrb[40].mxu0 }
0x1a46   : > { %v6111_v25 = vpop.f32.mrb[41].mxu0  ;;  %v4519_v26 = vadd.f32 %v6527_v11, %v4518_v38  ;;  %v5533_v38 = vld [vmem:[%s7936_s25 + $0x20] sm:$0xff] }
0x1a47   : > { %v5534_v25 = vld [vmem:[%s7936_s25 + $0x28] sm:$0xff] }
0x1a48   : > { %v4571_v28 = vsel %vm2262_vm7, %v4519_v26, -inf }
0x1a49   : > { %4569 = vmax.xlane.f32.xlu0 %v4568_v27 }
0x1a4d   : > { %4572 = vmax.xlane.f32.xlu0 %v4571_v28 }
0x1a60   : > { %v4564_v40 = vpop.xlane.xlu1 %4563 }
0x1a61   : > { %v4574_v32 = vmax.f32 %v4564_v40, %v4552_v31 }
0x1a63   : > { %v4590_v33 = vsub.f32 %v4297_v12, %v4574_v32  ;;  %4723 = vrot.lane.b32.xlu0 %v7563_v50, %s7926_s24  ;;  %v4578_v60 = vsub.f32 %v4552_v31, %v4574_v32  ;;  %v5536_v31 = vld [vmem:[%s7936_s25 + $0x38] sm:$0xff]  ;;  %s659_s24 = scalar_lea.vmem [#allocation5], %s5412_s4 }
0x1a64   : > { %v4801_v36 = vpop.permute.xlu1 %4800  ;;  %s5314_s21 = sshll.u32 %s659_s24, 4  ;;  %s7796_s21 = int_to_ptr.vmem [resolvable:$true] %s5314_s21 }
0x1a65   : > { %v4594_v34 = vmul.f32 1.442695, %v4590_v33  ;;  %v4582_v62 = vmul.f32 1.442695, %v4578_v60  ;;  %s6556_s27 = scalar_lea.vmem %s7796_s21, 128 }
0x1a66   : > { %p6557_p6 = scmp.ne.s32.totalorder %s7796_s21, %s6556_s27 }
0x1a67   : > { %6494 = vpow2.f32 %v4594_v34  ;;  %v5561_v34 = vld [vmem:[%s7935_s20 + $0x6] ss:$0 sm:$0xff] }
0x1a68   : > { %v4878_v53 = vpop.permute.xlu1 %4877  ;;  %p6558_p10 = pnand %p6557_p6, %p7942_p9 }
0x1a6a   : > { %p6559_p12 = pneg %p6558_p10 }
0x1a71   : > { %v6495_v35 = vpop.eup %6494 }
0x1a72   : > { %6115 = vmatmul.mubr.msk.f32.vlgmr.msra.gmra.mrb[40].mxu1 %vm2262_vm7, %v6495_v35  ;;  %v4602_v59 = vsel %vm2262_vm7, %v6495_v35, 0.0 }
0x1a73   : > { %6123 = vmatpush3.msk.msra.mxu1 %vm2352_vm6, %v4801_v36  ;;  %6124 = vmatprep.mubr.msk.f32.mxu1 %vm6628_vm1, %v6629_v13 }
0x1a74   : > { %6304 = vmatprep.subr.bf16.mxu1 %v6627_v10 }
0x1ad2   : > { %v4567_v39 = vpop.xlane.xlu0 %4566 }
0x1ad3   : > { %v4575_v41 = vmax.f32 %v4567_v39, %v4555_v37 }
0x1ad5   : > { %v4579_v42 = vsub.f32 %v4555_v37, %v4575_v41  ;;  %v4591_v43 = vsub.f32 %v4371_v19, %v4575_v41 }
0x1ad6   : > { %v4570_v44 = vpop.xlane.xlu0 %4569 }
0x1ad7   : > { %v4596_v45 = vmul.f32 1.442695, %v4591_v43  ;;  %v4576_v46 = vmax.f32 %v4570_v44, %v7613_v29  ;;  %v4584_v12 = vmul.f32 1.442695, %v4579_v42  ;;  %v5562_v43 = vld [vmem:[%s7935_s20 + $0x7] ss:$0 sm:$0xff] }
0x1ad9   : > { %v4592_v47 = vsub.f32 %v4445_v22, %v4576_v46  ;;  %6496 = vpow2.f32 %v4596_v45  ;;  %v4580_v14 = vsub.f32 %v7613_v29, %v4576_v46  ;;  %v5560_v29 = vld [vmem:[%s7935_s20 + $0x5] ss:$0 sm:$0xff]  ;;  %s5301_s20 = scalar_lea.sflag [#allocation4], %s657_s23 }
0x1ada   : > { %v4573_v23 = vpop.xlane.xlu0 %4572 }
0x1adb   : > { %v4598_v48 = vmul.f32 1.442695, %v4592_v47  ;;  %v4577_v0 = vmax.f32 %v4573_v23, %v7615_v30  ;;  %v4586_v16 = vmul.f32 1.442695, %v4580_v14  ;;  %v5580_v14 = vld [vmem:[%s7853_s16 + $0x90] sm:$0xff] }
0x1add   : > { %v4593_v49 = vsub.f32 %v4519_v26, %v4577_v0  ;;  %6498 = vpow2.f32 %v4598_v48  ;;  %v4581_v17 = vsub.f32 %v7615_v30, %v4577_v0  ;;  %v6305_v26 = vpack.c.bf16 %v5534_v25, %v5533_v38  ;;  %v5535_v30 = vld [vmem:[%s7936_s25 + $0x30] sm:$0xff]  ;;  %s6637_s25 = smov [#allocation5]  }
0x1ade   : > { %v4724_v50 = vpop.permute.xlu0 %4723  ;;  %v6308_v40 = vpack.c.bf16 %v5536_v31, %v5535_v30  ;;  %s6560_s19 = sshll.u32 %s6637_s25, 4  ;;  %s6561_s19 = int_to_ptr.vmem [resolvable:$false] %s6560_s19 }
0x1adf   : > { %v4600_v51 = vmul.f32 1.442695, %v4593_v49  ;;  %6118 = vmatpush3.msk.msra.mxu0 %vm2352_vm6, %v4724_v50  ;;  %v4588_v18 = vmul.f32 1.442695, %v4581_v17  ;;  %v5583_v17 = vld [vmem:[%s7853_s16 + $0xa8] sm:$0xff]  ;;  %s6562_s2 = scalar_lea.vmem %s6561_s19, 256  ;;  %p6563_p2 = scmp.lt.s32.totalorder %s7796_s21, %s6561_s19 }
0x1ae0   : > { %6127 = vmatprep.subr.mxu0 %v6629_v13  ;;  %p6564_p3 = scmp.lt.s32.totalorder %s6562_s2, %s6556_s27 }
0x1ae1   : > { %6500 = vpow2.f32 %v4600_v51 }
0x1ae2   : > { %6502 = vpow2.f32 %v4582_v62  ;;  %p6565_p4 = por %p6564_p3, %p6563_p2 }
0x1ae3   : > { %v6497_v52 = vpop.eup %6496 }
0x1ae4   : > { %6120 = vmatmul.mubr.msk.f32.vlgmr.msra.gmra.mrb[42].mxu0 %vm2262_vm7, %v6497_v52  ;;  %v4605_v54 = vsel %vm2262_vm7, %v6497_v52, 0.0  ;;  %p6566_p7 = pnand %p6565_p4, %p6559_p12 }
0x1ae5   : > { %6128 = vmatpush3.msk.msra.mxu0 %vm2352_vm6, %v4878_v53  ;;  %4606 = vadd.xlane.f32.xlu0 %v4605_v54 }
0x1ae6   : > { %6129 = vmatprep.mubr.msk.f32.mxu0 %vm6628_vm1, %v6629_v13 }
0x1ae7   : > { %v6499_v55 = vpop.eup %6498 }
0x1ae8   : > { %6125 = vmatmul.mubr.msk.f32.vlgmr.msra.gmra.mrb[42].mxu1 %vm2262_vm7, %v6499_v55  ;;  %v4608_v56 = vsel %vm2262_vm7, %v6499_v55, 0.0 }
0x1ae9   : > { %4609 = vadd.xlane.f32.xlu1 %v4608_v56  ;;  %6140 = vmatprep.mubr.msk.f32.mxu1 %vm6628_vm1, %v6629_v13 }
0x1aea   : > { %6306 = vmatpush3.bf16.msra.mxu1 %v6305_v26 }
0x1aeb   : > { %v6501_v57 = vpop.eup %6500  ;;  %6307 = vmatprep.subr.bf16.mxu1 %v6627_v10 }
0x1aec   : > { %6130 = vmatmul.mubr.msk.f32.vlgmr.msra.gmra.mrb[44].mxu0 %vm2262_vm7, %v6501_v57  ;;  %v4611_v58 = vsel %vm2262_vm7, %v6501_v57, 0.0  ;;  %v6503_v63 = vpop.eup %6502 }
0x1aed   : > { %4612 = vadd.xlane.f32.xlu0 %v4611_v58  ;;  %5157 = vmatprep.mubr.f32.mxu0 %v6629_v13  ;;  %v4642_v61 = vmul.f32 %v6503_v63, %v5559_v1 }
0x1aee   : > { %6309 = vmatpush3.bf16.msra.mxu1 %v6308_v40 }
0x1aef   : > { %6322 = vmatprep.subr.bf16.mxu1 %v6627_v10 }
0x1af1   : > { %4603 = vadd.xlane.f32.xlu0 %v4602_v59 }
0x1b45   : > { %v4719_v2 = vpop.f32.mrb[40].mxu1 }
0x1b46   : > { %v4954_v3 = vadd.f32 %v4719_v2, %v4642_v61  ;;  %v6116_v4 = vpop.f32.mrb[41].mxu1 }
0x1b72   : > { %v4607_v5 = vpop.xlane.xlu0 %4606 }
0x1b76   : > { %v4610_v21 = vpop.xlane.xlu1 %4609 }
0x1b7a   : > { %v4613_v6 = vpop.xlane.xlu0 %4612 }
0x1b7e   : > { %v4604_v7 = vpop.xlane.xlu0 %4603 }
0x1b7f   : > { %v4614_v8 = vadd.f32 %v6503_v63, %v4604_v7 }
0x1b81   : > { %6504 = vrcp.f32 %v4614_v8  ;;  %v5579_v8 = vld [vmem:[%s7853_s16 + $0x88] sm:$0xff] }
0x1b82   : > { %6506 = vpow2.f32 %v4584_v12  ;;  %v5578_v12 = vld [vmem:[%s7853_s16 + $0x80] sm:$0xff] }
0x1b83   : > { %6508 = vpow2.f32 %v4586_v16  ;;  %v6316_v16 = vpack.c.bf16 %v5580_v14, %v5578_v12 }
0x1b84   : > { %6510 = vpow2.f32 %v4588_v18  ;;  %v5585_v18 = vld [vmem:[%s7853_s16 + $0xb8] sm:$0xff] }
0x1b8b   : > { %v6505_v9 = vpop.eup %6504 }
0x1b8c   : > { %v4959_v11 = vmul.f32 %v6505_v9, %v4954_v3  ;;  %v6507_v19 = vpop.eup %6506  ;;  %v5581_v9 = vld [vmem:[%s7853_s16 + $0x98] sm:$0xff] }
0x1b8d   : > { %v4615_v20 = vadd.f32 %v6507_v19, %v4607_v5  ;;  %v6509_v22 = vpop.eup %6508  ;;  %v4643_v32 = vmul.f32 %v6507_v19, %v5560_v29  ;;  %v5574_v5 = vld [vmem:[%s7853_s16 + $0x60] sm:$0xff]  ;;  %v6318_v19 = vpack.c.bf16 %v5585_v18, %v5583_v17 }
0x1b8e   : > { %v4616_v24 = vadd.f32 %v6509_v22, %v4610_v21  ;;  %v6511_v27 = vpop.eup %6510  ;;  %v4644_v41 = vmul.f32 %v6509_v22, %v5561_v34  ;;  %v5584_v21 = vld [vmem:[%s7853_s16 + $0xb0] sm:$0xff] }
0x1b8f   : > { %6512 = vrcp.f32 %v4615_v20  ;;  %v4617_v28 = vadd.f32 %v6511_v27, %v4613_v6  ;;  %v4645_v23 = vmul.f32 %v6511_v27, %v5562_v43  ;;  %v5576_v6 = vld [vmem:[%s7853_s16 + $0x70] sm:$0xff]  ;;  %v5582_v20 = vld [vmem:[%s7853_s16 + $0xa0] sm:$0xff]  ;;  %v5592_v43 = vld [vmem:[%s7855_s18 + $0x98] sm:$0xff] }
0x1b90   : > { %6514 = vrcp.f32 %v4616_v24  ;;  %v6312_v7 = vpack.c.bf16 %v5576_v6, %v5574_v5  ;;  %v6320_v22 = vpack.c.bf16 %v5584_v21, %v5582_v20  ;;  %v5573_v27 = vld [vmem:[%s7852_s15 + $0x1] ss:$0 sm:$0xff] }
0x1b91   : > { %6516 = vrcp.f32 %v4617_v28  ;;  %v5588_v5 = vld [vmem:[%s7854_s17 + $0x1] ss:$0 sm:$0xff] }
0x1b99   : > { %v6513_v37 = vpop.eup %6512 }
0x1b9a   : > { %v6515_v46 = vpop.eup %6514 }
0x1b9b   : > { %v6517_v50 = vpop.eup %6516 }
0x1bb7   : > { %v4796_v33 = vpop.f32.mrb[42].mxu0 }
0x1bb8   : > { %v4955_v35 = vadd.f32 %v4796_v33, %v4643_v32  ;;  %v6121_v36 = vpop.f32.mrb[43].mxu0 }
0x1bba   : > { %v4961_v39 = vmul.f32 %v6513_v37, %v4955_v35  ;;  %v5589_v37 = vld [vmem:[%s7855_s18 + $0x80] sm:$0xff] }
0x1bbb   : > { %v4873_v42 = vpop.f32.mrb[42].mxu1 }
0x1bbc   : > { %v4956_v44 = vadd.f32 %v4873_v42, %v4644_v41  ;;  %v6126_v45 = vpop.f32.mrb[43].mxu1  ;;  %4967 = vrot.lane.b32.xlu1 %v4961_v39, %s7931_s1  ;;  %v5590_v39 = vld [vmem:[%s7855_s18 + $0x88] sm:$0xff]  ;;  %v5591_v41 = vld [vmem:[%s7855_s18 + $0x90] sm:$0xff] }
0x1bbd   : > { %v6323_v42 = vpack.c.bf16 %v5590_v39, %v5589_v37  ;;  %v5593_v45 = vld [vmem:[%s7855_s18 + $0xa0] sm:$0xff] }
0x1bbe   : > { %v4963_v47 = vmul.f32 %v6515_v46, %v4956_v44  ;;  %v6326_v44 = vpack.c.bf16 %v5592_v43, %v5591_v41  ;;  %v5594_v46 = vld [vmem:[%s7855_s18 + $0xa8] sm:$0xff] }
0x1bbf   : > { %v4950_v48 = vpop.f32.mrb[44].mxu0 }
0x1bc0   : > { %v4957_v0 = vadd.f32 %v4950_v48, %v4645_v23  ;;  %4971 = vrot.lane.b32.xlu0 %v4963_v47, %s7932_s28  ;;  %v6131_v49 = vpop.f32.mrb[45].mxu0  ;;  %v6329_v47 = vpack.c.bf16 %v5594_v46, %v5593_v45  ;;  %s7941_s28 = sld [smem:[#allocation26_spill]] }
0x1bc2   : > { %v4965_v51 = vmul.f32 %v6517_v50, %v4957_v0  ;;  %v5595_v50 = vld [vmem:[%s7855_s18 + $0xb0] sm:$0xff] }
0x1bc4   : > { %4975 = vrot.lane.b32.xlu1 %v4965_v51, %s7933_s26  ;;  %v5596_v51 = vld [vmem:[%s7855_s18 + $0xb8] sm:$0xff] }
0x1bc6   : > { %s7794_s26 = scalar_lea.hbm %s7941_s28, %s5607_s14 }
0x1c2e   : > { %v4968_v52 = vpop.permute.xlu1 %4967 }
0x1c2f   : > { %v4978_v54 = vsel %vm882_vm2, %v4959_v11, %v4968_v52  ;;  %v6314_v11 = vpack.c.bf16 %v5581_v9, %v5579_v8  ;;  %v6332_v52 = vpack.c.bf16 %v5596_v51, %v5595_v50 }
0x1c32   : > { %v4972_v53 = vpop.permute.xlu0 %4971 }
0x1c33   : > { %v4979_v55 = vsel %vm1632_vm3, %v4978_v54, %v4972_v53  ;;  %v5597_v53 = vld [vmem:[%s7855_s18 + $0xc0] sm:$0xff]  ;;  %v5598_v54 = vld [vmem:[%s7855_s18 + $0xc8] sm:$0xff] }
0x1c36   : > { %v4976_v56 = vpop.permute.xlu1 %4975 }
0x1c37   : > { %v4980_v57 = vsel %vm1634_vm4, %v4979_v55, %v4976_v56  ;;  %v6335_v55 = vpack.c.bf16 %v5598_v54, %v5597_v53  ;;  %v5599_v56 = vld [vmem:[%s7855_s18 + $0xd0] sm:$0xff] }
0x1c38   : > { %6141 = vmatmul.mubr.msk.f32.vlgmr.msra.gmra.mrb[44].mxu1 %vm1636_vm5, %v4980_v57  ;;  %v5600_v57 = vld [vmem:[%s7855_s18 + $0xd8] sm:$0xff] }
0x1c39   : > { %6175 = vmatprep.mubr.msk.f32.mxu1 %vm6628_vm1, %v6629_v13  ;;  %v5575_v13 = vld [vmem:[%s7853_s16 + $0x68] sm:$0xff]  ;;  %6324 = vmatpush3.bf16.msra.mxu1 %v6323_v42 }
0x1c3a   : > { %6325 = vmatprep.subr.bf16.mxu1 %v6627_v10 }
0x1c3d   : > { %6327 = vmatpush3.bf16.msra.mxu1 %v6326_v44 }
0x1c3e   : > { %6328 = vmatprep.subr.bf16.mxu1 %v6627_v10 }
0x1c41   : > { %6330 = vmatpush3.bf16.msra.mxu1 %v6329_v47 }
0x1c42   : > { %6331 = vmatprep.subr.bf16.mxu1 %v6627_v10 }
0x1c45   : > { %6333 = vmatpush3.bf16.msra.mxu1 %v6332_v52 }
0x1c46   : > { %6334 = vmatprep.subr.bf16.mxu1 %v6627_v10 }
0x1c49   : > { %6336 = vmatpush3.bf16.msra.mxu1 %v6335_v55 }
0x1c4a   : > { %6337 = vmatprep.subr.bf16.mxu1 %v6627_v10 }
0x1d0b   : > { %v5050_v58 = vpop.f32.mrb[44].mxu1 }
0x1d0c   : > { %v7679_v59 = vadd.f32 %v5050_v58, %v7500_v15  ;;  %v6142_v60 = vpop.f32.mrb[45].mxu1  ;;  %v5577_v15 = vld [vmem:[%s7853_s16 + $0x78] sm:$0xff]  ;;  %v6338_v58 = vpack.c.bf16 %v5600_v57, %v5599_v56 }
0x1d0d   : > { %v6310_v4 = vpack.c.bf16 %v5577_v15, %v5575_v13  ;;  %v5601_v60 = vld [vmem:[%s7855_s18 + $0xe0] sm:$0xff] }
0x1d0e   : > { %v5057_v62 = vsel %vm675_vm0, %v7679_v59, 0.0  ;;  %6339 = vmatpush3.bf16.msra.mxu1 %v6338_v58 }
0x1d0f   : > { %5058 = vadd.xlane.f32.xlu1 %v5057_v62  ;;  %6311 = vmatprep.subr.bf16.mxu0 %v6310_v4  ;;  %v5602_v62 = vld [vmem:[%s7855_s18 + $0xe8] sm:$0xff] }
0x1d10   : > { %6313 = vmatpush1.bf16.msra.mxu0 %v6312_v7  ;;  %6340 = vmatprep.subr.bf16.mxu1 %v6627_v10 }
0x1d11   : > { %6315 = vmatprep.subr.bf16.mxu0 %v6314_v11 }
0x1d14   : > { %6317 = vmatpush1.bf16.msra.mxu0 %v6316_v16 }
0x1d15   : > { %6319 = vmatprep.subr.bf16.mxu0 %v6318_v19 }
0x1d18   : > { %6321 = vmatpush1.bf16.msra.mxu0 %v6320_v22  ;;  %v5605_v22 = vld [vmem:[%s7940_s22] ss:$0 sm:$0xff] }
0x1d9c   : > { %v5059_v63 = vpop.xlane.xlu1 %5058 }
0x1d9d   : > { %v5060_v1 = vmul.f32 0.020833334, %v5059_v63  ;;  %v6341_v63 = vpack.c.bf16 %v5602_v62, %v5601_v60 }
0x1d9f   : > { %v5061_v61 = vsub.f32 %v7679_v59, %v5060_v1  ;;  %v5603_v1 = vld [vmem:[%s7855_s18 + $0xf0] sm:$0xff]  ;;  %6342 = vmatpush3.bf16.msra.mxu1 %v6341_v63 }
0x1da0   : > { %6343 = vmatprep.subr.bf16.mxu1 %v6627_v10 }
0x1da1   : > { %v5062_v2 = vmul.f32 %v5061_v61, %v5061_v61 }
0x1da3   : > { %v5063_v3 = vsel %vm675_vm0, %v5062_v2, 0.0 }
0x1da4   : > { %5064 = vadd.xlane.f32.xlu0 %v5063_v3 }
0x1e31   : > { %v5065_v24 = vpop.xlane.xlu0 %5064 }
0x1e32   : > { %v5066_v38 = vmul.f32 0.020833334, %v5065_v24 }
0x1e34   : > { %v5067_v25 = vadd.f32 1e-05, %v5066_v38 }
0x1e36   : > { %6518 = vrsqrt.f32 %v5067_v25 }
0x1e40   : > { %v6519_v26 = vpop.eup %6518 }
0x1e41   : > { %v5069_v28 = vmul.f32 %v6519_v26, %v5061_v61  ;;  %v5604_v61 = vld [vmem:[%s7855_s18 + $0xf8] sm:$0xff] }
0x1e42   : > { %v6344_v2 = vpack.c.bf16 %v5604_v61, %v5603_v1 }
0x1e43   : > { %v5076_v29 = vmul.f32 %v5573_v27, %v5069_v28 }
0x1e44   : > { %6345 = vmatpush3.bf16.msra.mxu1 %v6344_v2 }
0x1e45   : > { %5586 = vmatmul.mubr.msk.f32.vlgmr.msra.gmra.mrb[46].mxu0 %vm675_vm0, %v5076_v29 }
0x1f18   : > { %v5159_v30 = vpop.f32.mrb[46].mxu0 }
0x1f19   : > { %v5165_v31 = vmul.f32 0.70710677, %v5159_v30  ;;  %v5161_v40 = vpop.f32.mrb[47].mxu0  ;;  %v5164_v33 = vmul.f32 0.5, %v5159_v30 }
0x1f1b   : > { %6520 = verf.f32 %v5165_v31 }
0x1f25   : > { %v6521_v32 = vpop.eup %6520 }
0x1f26   : > { %v5167_v34 = vadd.f32 1.0, %v6521_v32 }
0x1f28   : > { %v5168_v35 = vmul.f32 %v5167_v34, %v5164_v33 }
0x1f2a   : > { %v5169_v36 = vmul.f32 %v5168_v35, %v5161_v40 }
0x1f2c   : > { %5172 = vadd.xlane.f32.xlu0 %v5169_v36 }
0x1fb9   : > { %v5173_v23 = vpop.xlane.xlu0 %5172 }
0x1fba   : > { %v5174_v48 = vmul.f32 0.0078125, %v5173_v23 }
0x1fbc   : > { %v5175_v0 = vsub.f32 %v5169_v36, %v5174_v48 }
0x1fbe   : > { %v5176_v49 = vmul.f32 %v5175_v0, %v5175_v0 }
0x1fc0   : > { %5177 = vadd.xlane.f32.xlu1 %v5176_v49 }
0x204d   : > { %v5178_v3 = vpop.xlane.xlu1 %5177 }
0x204e   : > { %v5179_v13 = vmul.f32 0.0078125, %v5178_v3 }
0x2050   : > { %v5180_v15 = vadd.f32 1e-05, %v5179_v13 }
0x2052   : > { %6522 = vrsqrt.f32 %v5180_v15 }
0x205c   : > { %v6523_v4 = vpop.eup %6522 }
0x205d   : > { %v5182_v6 = vmul.f32 %v6523_v4, %v5175_v0 }
0x205f   : > { %v5189_v7 = vmul.f32 %v5588_v5, %v5182_v6 }
0x2061   : > { %6176 = vmatmul.mubr.f32.vlgmr.msra.gmra.mrb[46].mxu1 %v5189_v7 }
0x2134   : > { %v5273_v8 = vpop.f32.mrb[46].mxu1 }
0x2135   : > { %v5277_v9 = vadd.f32 %v5273_v8, %v7679_v59  ;;  %v6177_v11 = vpop.f32.mrb[47].mxu1 }
0x2137   : > { %v5279_v10 = vsel %vm675_vm0, %v5277_v9, 0.0 }
0x2138   : > { %5280 = vadd.xlane.f32.xlu0 %v5279_v10 }
0x21c5   : > { %v5281_v12 = vpop.xlane.xlu0 %5280 }
0x21c6   : > { %v5282_v14 = vmul.f32 0.020833334, %v5281_v12 }
0x21c8   : > { %v5283_v16 = vsub.f32 %v5277_v9, %v5282_v14 }
0x21ca   : > { %v5284_v17 = vmul.f32 %v5283_v16, %v5283_v16 }
0x21cc   : > { %v5285_v18 = vsel %vm675_vm0, %v5284_v17, 0.0 }
0x21cd   : > { %5286 = vadd.xlane.f32.xlu1 %v5285_v18 }
0x225a   : > { %v5287_v19 = vpop.xlane.xlu1 %5286 }
0x225b   : > { %v5288_v20 = vmul.f32 0.020833334, %v5287_v19 }
0x225d   : > { %v5289_v21 = vadd.f32 1e-05, %v5288_v20 }
0x225f   : > { %6524 = vrsqrt.f32 %v5289_v21 }
0x2269   : > { %v6525_v59 = vpop.eup %6524 }
0x226a   : > { %v5291_v24 = vmul.f32 %v6525_v59, %v5283_v16 }
0x226c   : > { %v5298_v38 = vmul.f32 %v5605_v22, %v5291_v24 }
0x226e   : > { %5299 = vst.msk [vmem:[%s659_s24] sm:$0xff] %vm675_vm0, %v5298_v38 }
0x226f   : > { %6569 = shalt.err (!%p6566_p7)
}
0x2270   : > { %s6570_s23 = scalar_lea.hbm %s7794_s26, 128  ;;  %s6574_s3 = scalar_lea.hbm %s7941_s28, 256 }
0x2271   : > { %p6571_p8 = scmp.ne.s32.totalorder %s7794_s26, %s6570_s23  ;;  %p6575_p1 = scmp.lt.u32.totalorder %s7794_s26, %s7941_s28 }
0x2272   : > { %p6576_p0 = scmp.lt.u32.totalorder %s6574_s3, %s6570_s23  ;;  %p6578_p6 = scmp.lt.u32.totalorder %s6570_s23, %s7794_s26 }
0x2273   : > { %p6572_p11 = pnand %p6571_p8, %p7942_p9 }
0x2274   : > { %p6577_p5 = por %p6576_p0, %p6575_p1 }
0x2275   : > { %p6573_p13 = pneg %p6572_p11 }
0x2276   : > { %p6579_p10 = por %p6578_p6, %p6577_p5 }
0x2278   : > { %p6580_p12 = pnand %p6579_p10, %p6573_p13 }
0x227a   : > { %6583 = shalt.err (!%p6580_p12)
}
0x227b   : > { %6350 = dma.vmem_to_hbm [thread:$0]  (%p7942_p9), %s7796_s21, 128, %s7794_s26, %s5301_s20  }
0x227c PF: > { %s7943_s24 = sld [smem:[#allocation11_spill]]  ;;  %s7944_s0 = sld [smem:[#allocation8_spill]] }
0x227d   : > { %s7945_s1 = sld [smem:[#allocation16_spill]] }
0x2282   : > { %p6362_p2 = scmp.ge.s32.totalorder %s7943_s24, 2  ;;  %s5326_s27 = sand.u32 1, %s7944_s0  }
0x2283   : > { %p7946_p3 = scmp.ne.s32.totalorder %s7945_s1, 0  ;;  %s5327_s25 = scalar_lea.sflag [#allocation4], %s5326_s27 }
0x2285   : > { %p6357_p4 = pnand %p6362_p2, %p7946_p3 }
0x2287   : > { %6605 = dma.done.wait (!%p6357_p4), %s5327_s25, 128  }
0x2288   : > { %6607 = vsyncadd (!%p6357_p4), %s5327_s25, 4294967168  ;;  %s7947_s24 = sld [smem:[#allocation13_spill]]  ;;  %s7948_s1 = sld [smem:[#allocation9_spill]] }
0x2289   : > { %s7949_s22 = sld [smem:[#allocation10_spill]]  ;;  %s7950_s23 = sld [smem:[#allocation14_spill]] }
0x228e   : > { %p31_p7 = scmp.ge.s32.totalorder %s7947_s24, 4  }
0x2290   :  { %33 = sbr.rel (!%p31_p7) target bundleno = 14 (0xe), region = 162 }
0x2297   :  { %5332 = vsyncpa [#allocation3], 1 }
0x2298   :  { %5334 = vsyncpa [#allocation3 + $0x1], 1 }
0x2299   :  { %5335 = vsyncpa [#allocation4], 1 }
0x229a   :  { %5337 = vsyncpa [#allocation4 + $0x1], 1 }

</bundles_post_ra>
